<compile_context>
chip_gen: v5e
topology: v5e:2x2
jax: 0.10.0
libtpu: 0.0.40
codegen_flags: <defaults>
</compile_context>

<pallas_src>
import numpy as np

import jax
import jax.numpy as jnp
from jax import lax
from jax.experimental import pallas as pl
from jax.experimental.pallas import tpu as pltpu

_NB = 16   # images per grid step (multiple of the bf16 sublane tile = 16)

# conv1 row-patch selector: _HSEL[dh, h, kh] = 2*h + dh + kh   (always < 28)
_HSEL = (2 * np.arange(12)[None, :, None]
         + np.arange(2)[:, None, None]
         + np.arange(5)[None, None, :]).astype(np.int32)          # (2, 12, 5)


# ---------------------------------------------------------------------------
# Fused kernel: conv1+pool1 -> conv2+pool2 -> fc1 -> fc2 -> fc3 -> softmax
# ---------------------------------------------------------------------------
def _net_kernel(p1_ref, w1_ref, b1_ref, w2_ref, b2_ref,
                fc1w_ref, fc1b_ref, fc2w_ref, fc2b_ref, fc3w_ref, fc3b_ref,
                out_ref):
    nb = out_ref.shape[0]

    # ---- conv1 + ReLU + 2x2 pool -------------------------------------------
    # One matmul per pooling quadrant (dh, dw): (12*nb, 140) @ (140, 96).
    # Rows are (h, n) h-major; lanes pack (pooled width w, channel c) = w*8+c.
    zmax = None
    for dh in range(2):
        a = p1_ref[dh].reshape(12 * nb, 140)                     # bf16 patches
        for dw in range(2):
            z = jnp.dot(a, w1_ref[dw], preferred_element_type=jnp.float32)
            zmax = z if zmax is None else jnp.maximum(zmax, z)
    pooled = jnp.maximum(zmax + b1_ref[...], 0.0).astype(jnp.bfloat16)  # (12nb,96)

    # ---- conv2 + ReLU --------------------------------------------------------
    # 5 kh taps x 2 output-column parities, each (8*nb, 96) @ (96, 64).
    # Rows are (i, n); lanes pack (pooled output column q, out channel) = q*16+oc.
    acc_e = jnp.zeros((8 * nb, 64), jnp.float32)
    acc_o = jnp.zeros((8 * nb, 64), jnp.float32)
    for kh in range(5):
        win = pooled[kh * nb:(kh + 8) * nb, :]                   # rows h = i + kh
        acc_e = acc_e + jnp.dot(win, w2_ref[2 * kh],
                                preferred_element_type=jnp.float32)
        acc_o = acc_o + jnp.dot(win, w2_ref[2 * kh + 1],
                                preferred_element_type=jnp.float32)
    b2 = b2_ref[...]
    a2 = jnp.maximum(jnp.maximum(acc_e + b2, 0.0),
                     jnp.maximum(acc_o + b2, 0.0))               # width half of pool2
    a2 = a2.reshape(4, 2, nb, 64)                                # rows i = 2p + d
    m = jnp.maximum(a2[:, 0], a2[:, 1])                          # height half of pool2
    m = m.reshape(4 * nb, 64).astype(jnp.bfloat16)               # rows (p, n)

    # ---- flatten + fc1 + ReLU -----------------------------------------------
    # 4 accumulated (nb, 64) @ (64, 256) matmuls; torch's flatten column
    # permutation is baked into fc1w in pack_params.
    h1 = jnp.zeros((nb, 256), jnp.float32)
    for p in range(4):
        h1 = h1 + jnp.dot(m[p * nb:(p + 1) * nb, :], fc1w_ref[p],
                          preferred_element_type=jnp.float32)
    h1 = jnp.maximum(h1 + fc1b_ref[...], 0.0).astype(jnp.bfloat16)

    # ---- fc2 + ReLU -----------------------------------------------------------
    h2 = jnp.maximum(
        jnp.dot(h1, fc2w_ref[...], preferred_element_type=jnp.float32)
        + fc2b_ref[...], 0.0).astype(jnp.bfloat16)

    # ---- fc3 + softmax --------------------------------------------------------
    logits = (jnp.dot(h2, fc3w_ref[...], preferred_element_type=jnp.float32)
              + fc3b_ref[...])
    mx = jnp.max(logits, axis=-1, keepdims=True)
    e = jnp.exp(logits - mx)
    out_ref[...] = (e / jnp.sum(e, axis=-1, keepdims=True)).astype(out_ref.dtype)


# ---------------------------------------------------------------------------
# Parameters: PyTorch-native init, then rearranged ONCE into kernel layouts.
# ---------------------------------------------------------------------------
def init_raw_params(key):
    """PyTorch-default-init parameters in native nn.Conv2d / nn.Linear layouts."""
    def uniform(k, shape, fan_in):
        bound = 1.0 / float(np.sqrt(fan_in))
        return jax.random.uniform(k, shape, jnp.float32, -bound, bound)

    ks = jax.random.split(key, 10)
    return {
        "conv1_w": uniform(ks[0], (8, 1, 5, 5), 25),
        "conv1_b": uniform(ks[1], (8,), 25),
        "conv2_w": uniform(ks[2], (16, 8, 5, 5), 200),
        "conv2_b": uniform(ks[3], (16,), 200),
        "fc1_w": uniform(ks[4], (256, 256), 256),
        "fc1_b": uniform(ks[5], (256,), 256),
        "fc2_w": uniform(ks[6], (64, 256), 256),
        "fc2_b": uniform(ks[7], (64,), 256),
        "fc3_w": uniform(ks[8], (10, 64), 64),
        "fc3_b": uniform(ks[9], (10,), 64),
    }


def pack_params(raw):
    """Rearrange native-layout weights once into the kernel's matmul layouts."""
    c1w = np.asarray(raw["conv1_w"], np.float32)     # (oc=8, 1, kh, kw)
    c2w = np.asarray(raw["conv2_w"], np.float32)     # (oc=16, c=8, kh, kw)
    f1w = np.asarray(raw["fc1_w"], np.float32)       # (256, 256)
    f2w = np.asarray(raw["fc2_w"], np.float32)       # (64, 256)
    f3w = np.asarray(raw["fc3_w"], np.float32)       # (10, 64)

    # conv1: per pooling width-phase dw, map a 140-wide (kh, x) image-row patch
    # to all 12 pooled output columns x 8 channels (lane = w*8 + c).
    w1 = np.zeros((2, 140, 96), np.float32)
    for dw in range(2):
        for kh in range(5):
            for kw in range(5):
                for w in range(12):
                    x = 2 * w + dw + kw
                    w1[dw, kh * 28 + x, w * 8:(w + 1) * 8] = c1w[:, 0, kh, kw]
    b1 = np.tile(np.asarray(raw["conv1_b"], np.float32), 12)[None, :]      # (1, 96)

    # conv2: per (kh tap, output-column parity), map the 96-wide (w, c) pooled
    # row to the 4 even/odd output columns x 16 channels (lane = q*16 + oc).
    w2 = np.zeros((10, 96, 64), np.float32)
    for kh in range(5):
        for par in range(2):
            for q in range(4):
                j = 2 * q + par
                for kw in range(5):
                    w = j + kw
                    w2[2 * kh + par,
                       w * 8:(w + 1) * 8,
                       q * 16:(q + 1) * 16] = c2w[:, :, kh, kw].T
    b2 = np.tile(np.asarray(raw["conv2_b"], np.float32), 4)[None, :]       # (1, 64)

    # fc1: kernel consumes pool2 as 4 row blocks (p = pooled height) with
    # lane = q*16 + oc; torch flattens as oc*16 + p*4 + q.
    w3 = np.zeros((4, 64, 256), np.float32)
    for p in range(4):
        for q in range(4):
            for oc in range(16):
                w3[p, q * 16 + oc, :] = f1w[:, oc * 16 + p * 4 + q]

    return {
        "w1": jnp.asarray(w1, jnp.bfloat16),
        "b1": jnp.asarray(b1, jnp.float32),
        "w2": jnp.asarray(w2, jnp.bfloat16),
        "b2": jnp.asarray(b2, jnp.float32),
        "fc1_w": jnp.asarray(w3, jnp.bfloat16),
        "fc1_b": jnp.asarray(np.asarray(raw["fc1_b"], np.float32)[None, :]),
        "fc2_w": jnp.asarray(f2w.T, jnp.bfloat16),                         # (256, 64)
        "fc2_b": jnp.asarray(np.asarray(raw["fc2_b"], np.float32)[None, :]),
        "fc3_w": jnp.asarray(f3w.T, jnp.bfloat16),                         # (64, 10)
        "fc3_b": jnp.asarray(np.asarray(raw["fc3_b"], np.float32)[None, :]),
    }


# ---------------------------------------------------------------------------
# Forward: one tiny XLA row-patch gather + ONE batch-gridded pallas_call.
# ---------------------------------------------------------------------------
@jax.jit
def net_forward(params, x):
    n = x.shape[0]
    npad = ((n + _NB - 1) // _NB) * _NB
    img = x.reshape(n, 28, 28).astype(jnp.float32)
    if npad != n:
        img = jnp.pad(img, ((0, npad - n), (0, 0), (0, 0)))

    # conv1 row patches: p1[dh, h, m, kh*28 + x] = img[m, 2h + dh + kh, x].
    # TODO(synk): this stays one small out-of-kernel XLA gather (~7 KiB/image
    # in bf16); building it in-kernel from the raw 3 KiB image would need
    # strided sublane gathers.
    p1 = img[:, _HSEL, :]                                  # (npad, 2, 12, 5, 28)
    p1 = p1.transpose(1, 2, 0, 3, 4).reshape(2, 12, npad, 140).astype(jnp.bfloat16)

    w = params
    out = pl.pallas_call(
        _net_kernel,
        out_shape=jax.ShapeDtypeStruct((npad, 10), jnp.float32),
        grid=(npad // _NB,),
        in_specs=[
            pl.BlockSpec((2, 12, _NB, 140), lambda b: (0, 0, b, 0)),   # patches
            pl.BlockSpec((2, 140, 96), lambda b: (0, 0, 0)),           # conv1 w
            pl.BlockSpec((1, 96), lambda b: (0, 0)),                   # conv1 b
            pl.BlockSpec((10, 96, 64), lambda b: (0, 0, 0)),           # conv2 w
            pl.BlockSpec((1, 64), lambda b: (0, 0)),                   # conv2 b
            pl.BlockSpec((4, 64, 256), lambda b: (0, 0, 0)),           # fc1 w
            pl.BlockSpec((1, 256), lambda b: (0, 0)),                  # fc1 b
            pl.BlockSpec((256, 64), lambda b: (0, 0)),                 # fc2 w
            pl.BlockSpec((1, 64), lambda b: (0, 0)),                   # fc2 b
            pl.BlockSpec((64, 10), lambda b: (0, 0)),                  # fc3 w
            pl.BlockSpec((1, 10), lambda b: (0, 0)),                   # fc3 b
        ],
        out_specs=pl.BlockSpec((_NB, 10), lambda b: (b, 0)),
        compiler_params=pltpu.CompilerParams(
            dimension_semantics=("parallel",)),
    )(p1, w["w1"], w["b1"], w["w2"], w["b2"],
      w["fc1_w"], w["fc1_b"], w["fc2_w"], w["fc2_b"], w["fc3_w"], w["fc3_b"])
    return out[:n]


# ---------------------------------------------------------------------------
# Pure-JAX f32 reference of the PyTorch forward pass (for validation).
# ---------------------------------------------------------------------------
def reference_forward(raw, x):
    def pool2x2(v):
        n, c, h, w = v.shape
        return v.reshape(n, c, h // 2, 2, w // 2, 2).max(axis=(3, 5))

    v = lax.conv_general_dilated(x, raw["conv1_w"], (1, 1), "VALID",
                                 dimension_numbers=("NCHW", "OIHW", "NCHW"))
    v = pool2x2(jnp.maximum(v + raw["conv1_b"][None, :, None, None], 0.0))
    v = lax.conv_general_dilated(v, raw["conv2_w"], (1, 1), "VALID",
                                 dimension_numbers=("NCHW", "OIHW", "NCHW"))
    v = pool2x2(jnp.maximum(v + raw["conv2_b"][None, :, None, None], 0.0))
    v = v.reshape(v.shape[0], 256)
    v = jnp.maximum(v @ raw["fc1_w"].T + raw["fc1_b"], 0.0)
    v = jnp.maximum(v @ raw["fc2_w"].T + raw["fc2_b"], 0.0)
    logits = v @ raw["fc3_w"].T + raw["fc3_b"]
    return jax.nn.softmax(logits, axis=-1)


if __name__ == "__main__":
    key = jax.random.PRNGKey(0)
    pkey, xkey = jax.random.split(key)
    raw = init_raw_params(pkey)
    params = pack_params(raw)
    x = jax.random.normal(xkey, (2, 1, 28, 28), dtype=jnp.float32)

    out = jax.block_until_ready(net_forward(params, x))

    assert out.shape == (2, 10), out.shape
    assert bool(jnp.all(jnp.isfinite(out)))
    assert bool(jnp.allclose(jnp.sum(out, axis=1), 1.0, atol=1e-4))
    # bf16-matmul kernel vs f32 XLA reference.
    ref = reference_forward(raw, x)
    assert bool(jnp.allclose(out, ref, atol=3e-2)), float(jnp.max(jnp.abs(out - ref)))
    print("KERNEL_OK")
</pallas_src>

<mosaic_0001>
module attributes {stable_mosaic.version = 11 : i64} {
  func.func @_net_kernel(%arg0: i32, %arg1: memref<2x12x16x140xbf16, #tpu.memory_space<vmem>>, %arg2: memref<2x140x96xbf16, #tpu.memory_space<vmem>>, %arg3: memref<1x96xf32, #tpu.memory_space<vmem>>, %arg4: memref<10x96x64xbf16, #tpu.memory_space<vmem>>, %arg5: memref<1x64xf32, #tpu.memory_space<vmem>>, %arg6: memref<4x64x256xbf16, #tpu.memory_space<vmem>>, %arg7: memref<1x256xf32, #tpu.memory_space<vmem>>, %arg8: memref<256x64xbf16, #tpu.memory_space<vmem>>, %arg9: memref<1x64xf32, #tpu.memory_space<vmem>>, %arg10: memref<64x10xbf16, #tpu.memory_space<vmem>>, %arg11: memref<1x10xf32, #tpu.memory_space<vmem>>, %arg12: memref<16x10xf32, #tpu.memory_space<vmem>>) attributes {dimension_semantics = [#tpu.dimension_semantics<parallel>], iteration_bounds = array<i64: 1>, scalar_prefetch = 0 : i64, scratch_operands = 0 : i64, tpu.core_type = #tpu.core_type<tc>, window_params = [{transform_indices = @transform_0, window_bounds = array<i64: 2, 12, 16, 140>}, {pipeline_mode = #tpu.pipeline_mode<synchronous>, transform_indices = @transform_1, window_bounds = array<i64: 2, 140, 96>}, {pipeline_mode = #tpu.pipeline_mode<synchronous>, transform_indices = @transform_2, window_bounds = array<i64: 1, 96>}, {pipeline_mode = #tpu.pipeline_mode<synchronous>, transform_indices = @transform_3, window_bounds = array<i64: 10, 96, 64>}, {pipeline_mode = #tpu.pipeline_mode<synchronous>, transform_indices = @transform_4, window_bounds = array<i64: 1, 64>}, {pipeline_mode = #tpu.pipeline_mode<synchronous>, transform_indices = @transform_5, window_bounds = array<i64: 4, 64, 256>}, {pipeline_mode = #tpu.pipeline_mode<synchronous>, transform_indices = @transform_6, window_bounds = array<i64: 1, 256>}, {pipeline_mode = #tpu.pipeline_mode<synchronous>, transform_indices = @transform_7, window_bounds = array<i64: 256, 64>}, {pipeline_mode = #tpu.pipeline_mode<synchronous>, transform_indices = @transform_8, window_bounds = array<i64: 1, 64>}, {pipeline_mode = #tpu.pipeline_mode<synchronous>, transform_indices = @transform_9, window_bounds = array<i64: 64, 10>}, {pipeline_mode = #tpu.pipeline_mode<synchronous>, transform_indices = @transform_10, window_bounds = array<i64: 1, 10>}, {transform_indices = @transform_11, window_bounds = array<i64: 16, 10>}]} {
    %c0 = arith.constant 0 : index
    %c0_0 = arith.constant 0 : index
    %c0_1 = arith.constant 0 : index
    %c0_2 = arith.constant 0 : index
    %0 = vector.load %arg1[%c0, %c0_0, %c0_1, %c0_2] : memref<2x12x16x140xbf16, #tpu.memory_space<vmem>>, vector<1x12x16x140xbf16>
    %1 = vector.shape_cast %0 : vector<1x12x16x140xbf16> to vector<12x16x140xbf16>
    %2 = vector.shape_cast %1 : vector<12x16x140xbf16> to vector<192x140xbf16>
    %c0_3 = arith.constant 0 : index
    %c0_4 = arith.constant 0 : index
    %c0_5 = arith.constant 0 : index
    %3 = vector.load %arg2[%c0_3, %c0_4, %c0_5] : memref<2x140x96xbf16, #tpu.memory_space<vmem>>, vector<1x140x96xbf16>
    %4 = vector.shape_cast %3 : vector<1x140x96xbf16> to vector<140x96xbf16>
    %cst = arith.constant dense<0.000000e+00> : vector<192x96xf32>
    %5 = tpu.matmul %2, %4, %cst {dimension_numbers = #tpu.dot_dimension_numbers<[1], [0], [0], [1], [0, 0, 1, 1], [], []>} : vector<192x140xbf16>, vector<140x96xbf16>, vector<192x96xf32> -> vector<192x96xf32>
    %c1 = arith.constant 1 : index
    %c0_6 = arith.constant 0 : index
    %c0_7 = arith.constant 0 : index
    %6 = vector.load %arg2[%c1, %c0_6, %c0_7] : memref<2x140x96xbf16, #tpu.memory_space<vmem>>, vector<1x140x96xbf16>
    %7 = vector.shape_cast %6 : vector<1x140x96xbf16> to vector<140x96xbf16>
    %cst_8 = arith.constant dense<0.000000e+00> : vector<192x96xf32>
    %8 = tpu.matmul %2, %7, %cst_8 {dimension_numbers = #tpu.dot_dimension_numbers<[1], [0], [0], [1], [0, 0, 1, 1], [], []>} : vector<192x140xbf16>, vector<140x96xbf16>, vector<192x96xf32> -> vector<192x96xf32>
    %9 = arith.maximumf %5, %8 : vector<192x96xf32>
    %c1_9 = arith.constant 1 : index
    %c0_10 = arith.constant 0 : index
    %c0_11 = arith.constant 0 : index
    %c0_12 = arith.constant 0 : index
    %10 = vector.load %arg1[%c1_9, %c0_10, %c0_11, %c0_12] : memref<2x12x16x140xbf16, #tpu.memory_space<vmem>>, vector<1x12x16x140xbf16>
    %11 = vector.shape_cast %10 : vector<1x12x16x140xbf16> to vector<12x16x140xbf16>
    %12 = vector.shape_cast %11 : vector<12x16x140xbf16> to vector<192x140xbf16>
    %c0_13 = arith.constant 0 : index
    %c0_14 = arith.constant 0 : index
    %c0_15 = arith.constant 0 : index
    %13 = vector.load %arg2[%c0_13, %c0_14, %c0_15] : memref<2x140x96xbf16, #tpu.memory_space<vmem>>, vector<1x140x96xbf16>
    %14 = vector.shape_cast %13 : vector<1x140x96xbf16> to vector<140x96xbf16>
    %cst_16 = arith.constant dense<0.000000e+00> : vector<192x96xf32>
    %15 = tpu.matmul %12, %14, %cst_16 {dimension_numbers = #tpu.dot_dimension_numbers<[1], [0], [0], [1], [0, 0, 1, 1], [], []>} : vector<192x140xbf16>, vector<140x96xbf16>, vector<192x96xf32> -> vector<192x96xf32>
    %16 = arith.maximumf %9, %15 : vector<192x96xf32>
    %c1_17 = arith.constant 1 : index
    %c0_18 = arith.constant 0 : index
    %c0_19 = arith.constant 0 : index
    %17 = vector.load %arg2[%c1_17, %c0_18, %c0_19] : memref<2x140x96xbf16, #tpu.memory_space<vmem>>, vector<1x140x96xbf16>
    %18 = vector.shape_cast %17 : vector<1x140x96xbf16> to vector<140x96xbf16>
    %cst_20 = arith.constant dense<0.000000e+00> : vector<192x96xf32>
    %19 = tpu.matmul %12, %18, %cst_20 {dimension_numbers = #tpu.dot_dimension_numbers<[1], [0], [0], [1], [0, 0, 1, 1], [], []>} : vector<192x140xbf16>, vector<140x96xbf16>, vector<192x96xf32> -> vector<192x96xf32>
    %20 = arith.maximumf %16, %19 : vector<192x96xf32>
    %c0_21 = arith.constant 0 : index
    %c0_22 = arith.constant 0 : index
    %21 = vector.load %arg3[%c0_21, %c0_22] : memref<1x96xf32, #tpu.memory_space<vmem>>, vector<1x96xf32>
    %22 = vector.broadcast %21 : vector<1x96xf32> to vector<192x96xf32>
    %23 = arith.addf %20, %22 : vector<192x96xf32>
    %cst_23 = arith.constant 0.000000e+00 : f32
    %24 = vector.broadcast %cst_23 : f32 to vector<192x96xf32>
    %25 = arith.maximumf %23, %24 : vector<192x96xf32>
    %26 = arith.truncf %25 : vector<192x96xf32> to vector<192x96xbf16>
    %cst_24 = arith.constant 0.000000e+00 : f32
    %27 = vector.broadcast %cst_24 : f32 to vector<128x64xf32>
    %cst_25 = arith.constant 0.000000e+00 : f32
    %28 = vector.broadcast %cst_25 : f32 to vector<128x64xf32>
    %29 = vector.extract_strided_slice %26 {offsets = [0, 0], sizes = [128, 96], strides = [1, 1]} : vector<192x96xbf16> to vector<128x96xbf16>
    %c0_26 = arith.constant 0 : index
    %c0_27 = arith.constant 0 : index
    %c0_28 = arith.constant 0 : index
    %30 = vector.load %arg4[%c0_26, %c0_27, %c0_28] : memref<10x96x64xbf16, #tpu.memory_space<vmem>>, vector<1x96x64xbf16>
    %31 = vector.shape_cast %30 : vector<1x96x64xbf16> to vector<96x64xbf16>
    %cst_29 = arith.constant dense<0.000000e+00> : vector<128x64xf32>
    %32 = tpu.matmul %29, %31, %cst_29 {dimension_numbers = #tpu.dot_dimension_numbers<[1], [0], [0], [1], [0, 0, 1, 1], [], []>} : vector<128x96xbf16>, vector<96x64xbf16>, vector<128x64xf32> -> vector<128x64xf32>
    %33 = arith.addf %27, %32 : vector<128x64xf32>
    %c1_30 = arith.constant 1 : index
    %c0_31 = arith.constant 0 : index
    %c0_32 = arith.constant 0 : index
    %34 = vector.load %arg4[%c1_30, %c0_31, %c0_32] : memref<10x96x64xbf16, #tpu.memory_space<vmem>>, vector<1x96x64xbf16>
    %35 = vector.shape_cast %34 : vector<1x96x64xbf16> to vector<96x64xbf16>
    %cst_33 = arith.constant dense<0.000000e+00> : vector<128x64xf32>
    %36 = tpu.matmul %29, %35, %cst_33 {dimension_numbers = #tpu.dot_dimension_numbers<[1], [0], [0], [1], [0, 0, 1, 1], [], []>} : vector<128x96xbf16>, vector<96x64xbf16>, vector<128x64xf32> -> vector<128x64xf32>
    %37 = arith.addf %28, %36 : vector<128x64xf32>
    %38 = vector.extract_strided_slice %26 {offsets = [16, 0], sizes = [128, 96], strides = [1, 1]} : vector<192x96xbf16> to vector<128x96xbf16>
    %c2 = arith.constant 2 : index
    %c0_34 = arith.constant 0 : index
    %c0_35 = arith.constant 0 : index
    %39 = vector.load %arg4[%c2, %c0_34, %c0_35] : memref<10x96x64xbf16, #tpu.memory_space<vmem>>, vector<1x96x64xbf16>
    %40 = vector.shape_cast %39 : vector<1x96x64xbf16> to vector<96x64xbf16>
    %cst_36 = arith.constant dense<0.000000e+00> : vector<128x64xf32>
    %41 = tpu.matmul %38, %40, %cst_36 {dimension_numbers = #tpu.dot_dimension_numbers<[1], [0], [0], [1], [0, 0, 1, 1], [], []>} : vector<128x96xbf16>, vector<96x64xbf16>, vector<128x64xf32> -> vector<128x64xf32>
    %42 = arith.addf %33, %41 : vector<128x64xf32>
    %c3 = arith.constant 3 : index
    %c0_37 = arith.constant 0 : index
    %c0_38 = arith.constant 0 : index
    %43 = vector.load %arg4[%c3, %c0_37, %c0_38] : memref<10x96x64xbf16, #tpu.memory_space<vmem>>, vector<1x96x64xbf16>
    %44 = vector.shape_cast %43 : vector<1x96x64xbf16> to vector<96x64xbf16>
    %cst_39 = arith.constant dense<0.000000e+00> : vector<128x64xf32>
    %45 = tpu.matmul %38, %44, %cst_39 {dimension_numbers = #tpu.dot_dimension_numbers<[1], [0], [0], [1], [0, 0, 1, 1], [], []>} : vector<128x96xbf16>, vector<96x64xbf16>, vector<128x64xf32> -> vector<128x64xf32>
    %46 = arith.addf %37, %45 : vector<128x64xf32>
    %47 = vector.extract_strided_slice %26 {offsets = [32, 0], sizes = [128, 96], strides = [1, 1]} : vector<192x96xbf16> to vector<128x96xbf16>
    %c4 = arith.constant 4 : index
    %c0_40 = arith.constant 0 : index
    %c0_41 = arith.constant 0 : index
    %48 = vector.load %arg4[%c4, %c0_40, %c0_41] : memref<10x96x64xbf16, #tpu.memory_space<vmem>>, vector<1x96x64xbf16>
    %49 = vector.shape_cast %48 : vector<1x96x64xbf16> to vector<96x64xbf16>
    %cst_42 = arith.constant dense<0.000000e+00> : vector<128x64xf32>
    %50 = tpu.matmul %47, %49, %cst_42 {dimension_numbers = #tpu.dot_dimension_numbers<[1], [0], [0], [1], [0, 0, 1, 1], [], []>} : vector<128x96xbf16>, vector<96x64xbf16>, vector<128x64xf32> -> vector<128x64xf32>
    %51 = arith.addf %42, %50 : vector<128x64xf32>
    %c5 = arith.constant 5 : index
    %c0_43 = arith.constant 0 : index
    %c0_44 = arith.constant 0 : index
    %52 = vector.load %arg4[%c5, %c0_43, %c0_44] : memref<10x96x64xbf16, #tpu.memory_space<vmem>>, vector<1x96x64xbf16>
    %53 = vector.shape_cast %52 : vector<1x96x64xbf16> to vector<96x64xbf16>
    %cst_45 = arith.constant dense<0.000000e+00> : vector<128x64xf32>
    %54 = tpu.matmul %47, %53, %cst_45 {dimension_numbers = #tpu.dot_dimension_numbers<[1], [0], [0], [1], [0, 0, 1, 1], [], []>} : vector<128x96xbf16>, vector<96x64xbf16>, vector<128x64xf32> -> vector<128x64xf32>
    %55 = arith.addf %46, %54 : vector<128x64xf32>
    %56 = vector.extract_strided_slice %26 {offsets = [48, 0], sizes = [128, 96], strides = [1, 1]} : vector<192x96xbf16> to vector<128x96xbf16>
    %c6 = arith.constant 6 : index
    %c0_46 = arith.constant 0 : index
    %c0_47 = arith.constant 0 : index
    %57 = vector.load %arg4[%c6, %c0_46, %c0_47] : memref<10x96x64xbf16, #tpu.memory_space<vmem>>, vector<1x96x64xbf16>
    %58 = vector.shape_cast %57 : vector<1x96x64xbf16> to vector<96x64xbf16>
    %cst_48 = arith.constant dense<0.000000e+00> : vector<128x64xf32>
    %59 = tpu.matmul %56, %58, %cst_48 {dimension_numbers = #tpu.dot_dimension_numbers<[1], [0], [0], [1], [0, 0, 1, 1], [], []>} : vector<128x96xbf16>, vector<96x64xbf16>, vector<128x64xf32> -> vector<128x64xf32>
    %60 = arith.addf %51, %59 : vector<128x64xf32>
    %c7 = arith.constant 7 : index
    %c0_49 = arith.constant 0 : index
    %c0_50 = arith.constant 0 : index
    %61 = vector.load %arg4[%c7, %c0_49, %c0_50] : memref<10x96x64xbf16, #tpu.memory_space<vmem>>, vector<1x96x64xbf16>
    %62 = vector.shape_cast %61 : vector<1x96x64xbf16> to vector<96x64xbf16>
    %cst_51 = arith.constant dense<0.000000e+00> : vector<128x64xf32>
    %63 = tpu.matmul %56, %62, %cst_51 {dimension_numbers = #tpu.dot_dimension_numbers<[1], [0], [0], [1], [0, 0, 1, 1], [], []>} : vector<128x96xbf16>, vector<96x64xbf16>, vector<128x64xf32> -> vector<128x64xf32>
    %64 = arith.addf %55, %63 : vector<128x64xf32>
    %65 = vector.extract_strided_slice %26 {offsets = [64, 0], sizes = [128, 96], strides = [1, 1]} : vector<192x96xbf16> to vector<128x96xbf16>
    %c8 = arith.constant 8 : index
    %c0_52 = arith.constant 0 : index
    %c0_53 = arith.constant 0 : index
    %66 = vector.load %arg4[%c8, %c0_52, %c0_53] : memref<10x96x64xbf16, #tpu.memory_space<vmem>>, vector<1x96x64xbf16>
    %67 = vector.shape_cast %66 : vector<1x96x64xbf16> to vector<96x64xbf16>
    %cst_54 = arith.constant dense<0.000000e+00> : vector<128x64xf32>
    %68 = tpu.matmul %65, %67, %cst_54 {dimension_numbers = #tpu.dot_dimension_numbers<[1], [0], [0], [1], [0, 0, 1, 1], [], []>} : vector<128x96xbf16>, vector<96x64xbf16>, vector<128x64xf32> -> vector<128x64xf32>
    %69 = arith.addf %60, %68 : vector<128x64xf32>
    %c9 = arith.constant 9 : index
    %c0_55 = arith.constant 0 : index
    %c0_56 = arith.constant 0 : index
    %70 = vector.load %arg4[%c9, %c0_55, %c0_56] : memref<10x96x64xbf16, #tpu.memory_space<vmem>>, vector<1x96x64xbf16>
    %71 = vector.shape_cast %70 : vector<1x96x64xbf16> to vector<96x64xbf16>
    %cst_57 = arith.constant dense<0.000000e+00> : vector<128x64xf32>
    %72 = tpu.matmul %65, %71, %cst_57 {dimension_numbers = #tpu.dot_dimension_numbers<[1], [0], [0], [1], [0, 0, 1, 1], [], []>} : vector<128x96xbf16>, vector<96x64xbf16>, vector<128x64xf32> -> vector<128x64xf32>
    %73 = arith.addf %64, %72 : vector<128x64xf32>
    %c0_58 = arith.constant 0 : index
    %c0_59 = arith.constant 0 : index
    %74 = vector.load %arg5[%c0_58, %c0_59] : memref<1x64xf32, #tpu.memory_space<vmem>>, vector<1x64xf32>
    %75 = vector.broadcast %74 : vector<1x64xf32> to vector<128x64xf32>
    %76 = arith.addf %69, %75 : vector<128x64xf32>
    %cst_60 = arith.constant 0.000000e+00 : f32
    %77 = vector.broadcast %cst_60 : f32 to vector<128x64xf32>
    %78 = arith.maximumf %76, %77 : vector<128x64xf32>
    %79 = vector.broadcast %74 : vector<1x64xf32> to vector<128x64xf32>
    %80 = arith.addf %73, %79 : vector<128x64xf32>
    %cst_61 = arith.constant 0.000000e+00 : f32
    %81 = vector.broadcast %cst_61 : f32 to vector<128x64xf32>
    %82 = arith.maximumf %80, %81 : vector<128x64xf32>
    %83 = arith.maximumf %78, %82 : vector<128x64xf32>
    %84 = vector.shape_cast %83 : vector<128x64xf32> to vector<4x2x16x64xf32>
    %85 = vector.extract_strided_slice %84 {offsets = [0, 0, 0, 0], sizes = [4, 1, 16, 64], strides = [1, 1, 1, 1]} : vector<4x2x16x64xf32> to vector<4x1x16x64xf32>
    %86 = vector.shape_cast %85 : vector<4x1x16x64xf32> to vector<4x16x64xf32>
    %87 = vector.extract_strided_slice %84 {offsets = [0, 1, 0, 0], sizes = [4, 1, 16, 64], strides = [1, 1, 1, 1]} : vector<4x2x16x64xf32> to vector<4x1x16x64xf32>
    %88 = vector.shape_cast %87 : vector<4x1x16x64xf32> to vector<4x16x64xf32>
    %89 = arith.maximumf %86, %88 : vector<4x16x64xf32>
    %90 = vector.shape_cast %89 : vector<4x16x64xf32> to vector<64x64xf32>
    %91 = arith.truncf %90 : vector<64x64xf32> to vector<64x64xbf16>
    %cst_62 = arith.constant 0.000000e+00 : f32
    %92 = vector.broadcast %cst_62 : f32 to vector<16x256xf32>
    %93 = vector.extract_strided_slice %91 {offsets = [0, 0], sizes = [16, 64], strides = [1, 1]} : vector<64x64xbf16> to vector<16x64xbf16>
    %c0_63 = arith.constant 0 : index
    %c0_64 = arith.constant 0 : index
    %c0_65 = arith.constant 0 : index
    %94 = vector.load %arg6[%c0_63, %c0_64, %c0_65] : memref<4x64x256xbf16, #tpu.memory_space<vmem>>, vector<1x64x256xbf16>
    %95 = vector.shape_cast %94 : vector<1x64x256xbf16> to vector<64x256xbf16>
    %cst_66 = arith.constant dense<0.000000e+00> : vector<16x256xf32>
    %96 = tpu.matmul %93, %95, %cst_66 {dimension_numbers = #tpu.dot_dimension_numbers<[1], [0], [0], [1], [0, 0, 1, 1], [], []>} : vector<16x64xbf16>, vector<64x256xbf16>, vector<16x256xf32> -> vector<16x256xf32>
    %97 = arith.addf %92, %96 : vector<16x256xf32>
    %98 = vector.extract_strided_slice %91 {offsets = [16, 0], sizes = [16, 64], strides = [1, 1]} : vector<64x64xbf16> to vector<16x64xbf16>
    %c1_67 = arith.constant 1 : index
    %c0_68 = arith.constant 0 : index
    %c0_69 = arith.constant 0 : index
    %99 = vector.load %arg6[%c1_67, %c0_68, %c0_69] : memref<4x64x256xbf16, #tpu.memory_space<vmem>>, vector<1x64x256xbf16>
    %100 = vector.shape_cast %99 : vector<1x64x256xbf16> to vector<64x256xbf16>
    %cst_70 = arith.constant dense<0.000000e+00> : vector<16x256xf32>
    %101 = tpu.matmul %98, %100, %cst_70 {dimension_numbers = #tpu.dot_dimension_numbers<[1], [0], [0], [1], [0, 0, 1, 1], [], []>} : vector<16x64xbf16>, vector<64x256xbf16>, vector<16x256xf32> -> vector<16x256xf32>
    %102 = arith.addf %97, %101 : vector<16x256xf32>
    %103 = vector.extract_strided_slice %91 {offsets = [32, 0], sizes = [16, 64], strides = [1, 1]} : vector<64x64xbf16> to vector<16x64xbf16>
    %c2_71 = arith.constant 2 : index
    %c0_72 = arith.constant 0 : index
    %c0_73 = arith.constant 0 : index
    %104 = vector.load %arg6[%c2_71, %c0_72, %c0_73] : memref<4x64x256xbf16, #tpu.memory_space<vmem>>, vector<1x64x256xbf16>
    %105 = vector.shape_cast %104 : vector<1x64x256xbf16> to vector<64x256xbf16>
    %cst_74 = arith.constant dense<0.000000e+00> : vector<16x256xf32>
    %106 = tpu.matmul %103, %105, %cst_74 {dimension_numbers = #tpu.dot_dimension_numbers<[1], [0], [0], [1], [0, 0, 1, 1], [], []>} : vector<16x64xbf16>, vector<64x256xbf16>, vector<16x256xf32> -> vector<16x256xf32>
    %107 = arith.addf %102, %106 : vector<16x256xf32>
    %108 = vector.extract_strided_slice %91 {offsets = [48, 0], sizes = [16, 64], strides = [1, 1]} : vector<64x64xbf16> to vector<16x64xbf16>
    %c3_75 = arith.constant 3 : index
    %c0_76 = arith.constant 0 : index
    %c0_77 = arith.constant 0 : index
    %109 = vector.load %arg6[%c3_75, %c0_76, %c0_77] : memref<4x64x256xbf16, #tpu.memory_space<vmem>>, vector<1x64x256xbf16>
    %110 = vector.shape_cast %109 : vector<1x64x256xbf16> to vector<64x256xbf16>
    %cst_78 = arith.constant dense<0.000000e+00> : vector<16x256xf32>
    %111 = tpu.matmul %108, %110, %cst_78 {dimension_numbers = #tpu.dot_dimension_numbers<[1], [0], [0], [1], [0, 0, 1, 1], [], []>} : vector<16x64xbf16>, vector<64x256xbf16>, vector<16x256xf32> -> vector<16x256xf32>
    %112 = arith.addf %107, %111 : vector<16x256xf32>
    %c0_79 = arith.constant 0 : index
    %c0_80 = arith.constant 0 : index
    %113 = vector.load %arg7[%c0_79, %c0_80] : memref<1x256xf32, #tpu.memory_space<vmem>>, vector<1x256xf32>
    %114 = vector.broadcast %113 : vector<1x256xf32> to vector<16x256xf32>
    %115 = arith.addf %112, %114 : vector<16x256xf32>
    %cst_81 = arith.constant 0.000000e+00 : f32
    %116 = vector.broadcast %cst_81 : f32 to vector<16x256xf32>
    %117 = arith.maximumf %115, %116 : vector<16x256xf32>
    %118 = arith.truncf %117 : vector<16x256xf32> to vector<16x256xbf16>
    %c0_82 = arith.constant 0 : index
    %c0_83 = arith.constant 0 : index
    %119 = vector.load %arg8[%c0_82, %c0_83] : memref<256x64xbf16, #tpu.memory_space<vmem>>, vector<256x64xbf16>
    %cst_84 = arith.constant dense<0.000000e+00> : vector<16x64xf32>
    %120 = tpu.matmul %118, %119, %cst_84 {dimension_numbers = #tpu.dot_dimension_numbers<[1], [0], [0], [1], [0, 0, 1, 1], [], []>} : vector<16x256xbf16>, vector<256x64xbf16>, vector<16x64xf32> -> vector<16x64xf32>
    %c0_85 = arith.constant 0 : index
    %c0_86 = arith.constant 0 : index
    %121 = vector.load %arg9[%c0_85, %c0_86] : memref<1x64xf32, #tpu.memory_space<vmem>>, vector<1x64xf32>
    %122 = vector.broadcast %121 : vector<1x64xf32> to vector<16x64xf32>
    %123 = arith.addf %120, %122 : vector<16x64xf32>
    %cst_87 = arith.constant 0.000000e+00 : f32
    %124 = vector.broadcast %cst_87 : f32 to vector<16x64xf32>
    %125 = arith.maximumf %123, %124 : vector<16x64xf32>
    %126 = arith.truncf %125 : vector<16x64xf32> to vector<16x64xbf16>
    %c0_88 = arith.constant 0 : index
    %c0_89 = arith.constant 0 : index
    %127 = vector.load %arg10[%c0_88, %c0_89] : memref<64x10xbf16, #tpu.memory_space<vmem>>, vector<64x10xbf16>
    %cst_90 = arith.constant dense<0.000000e+00> : vector<16x10xf32>
    %128 = tpu.matmul %126, %127, %cst_90 {dimension_numbers = #tpu.dot_dimension_numbers<[1], [0], [0], [1], [0, 0, 1, 1], [], []>} : vector<16x64xbf16>, vector<64x10xbf16>, vector<16x10xf32> -> vector<16x10xf32>
    %c0_91 = arith.constant 0 : index
    %c0_92 = arith.constant 0 : index
    %129 = vector.load %arg11[%c0_91, %c0_92] : memref<1x10xf32, #tpu.memory_space<vmem>>, vector<1x10xf32>
    %130 = vector.broadcast %129 : vector<1x10xf32> to vector<16x10xf32>
    %131 = arith.addf %128, %130 : vector<16x10xf32>
    %cst_93 = arith.constant dense<0xFF800000> : vector<16xf32>
    %132 = vector.multi_reduction <maximumf>, %131, %cst_93 [1] : vector<16x10xf32> to vector<16xf32>
    %133 = vector.shape_cast %132 : vector<16xf32> to vector<16x1xf32>
    %134 = vector.broadcast %133 : vector<16x1xf32> to vector<16x10xf32>
    %135 = arith.subf %131, %134 : vector<16x10xf32>
    %136 = math.exp %135 : vector<16x10xf32>
    %cst_94 = arith.constant dense<0.000000e+00> : vector<16xf32>
    %137 = vector.multi_reduction <add>, %136, %cst_94 [1] : vector<16x10xf32> to vector<16xf32>
    %138 = vector.shape_cast %137 : vector<16xf32> to vector<16x1xf32>
    %139 = vector.broadcast %138 : vector<16x1xf32> to vector<16x10xf32>
    %140 = arith.divf %136, %139 : vector<16x10xf32>
    %c0_95 = arith.constant 0 : index
    %c0_96 = arith.constant 0 : index
    %141 = vector.load %arg12[%c0_95, %c0_96] : memref<16x10xf32, #tpu.memory_space<vmem>>, vector<16x10xf32>
    tpu.vector_store %arg12[%c0_95, %c0_96], %140 {strides = array<i32>} : memref<16x10xf32, #tpu.memory_space<vmem>>, vector<16x10xf32>,
    return
  }
  func.func @transform_0(%arg0: i32) -> (i32, i32, i32, i32) {
    %c0_i32 = arith.constant 0 : i32
    %c0_i32_0 = arith.constant 0 : i32
    %c0_i32_1 = arith.constant 0 : i32
    %c0_i32_2 = arith.constant 0 : i32
    return %c0_i32, %c0_i32_0, %arg0, %c0_i32_1 : i32, i32, i32, i32
  }
  func.func @transform_1(%arg0: i32) -> (i32, i32, i32) {
    %c0_i32 = arith.constant 0 : i32
    %c0_i32_0 = arith.constant 0 : i32
    %c0_i32_1 = arith.constant 0 : i32
    %c0_i32_2 = arith.constant 0 : i32
    return %c0_i32, %c0_i32_0, %c0_i32_1 : i32, i32, i32
  }
  func.func @transform_2(%arg0: i32) -> (i32, i32) {
    %c0_i32 = arith.constant 0 : i32
    %c0_i32_0 = arith.constant 0 : i32
    %c0_i32_1 = arith.constant 0 : i32
    return %c0_i32, %c0_i32_0 : i32, i32
  }
  func.func @transform_3(%arg0: i32) -> (i32, i32, i32) {
    %c0_i32 = arith.constant 0 : i32
    %c0_i32_0 = arith.constant 0 : i32
    %c0_i32_1 = arith.constant 0 : i32
    %c0_i32_2 = arith.constant 0 : i32
    return %c0_i32, %c0_i32_0, %c0_i32_1 : i32, i32, i32
  }
  func.func @transform_4(%arg0: i32) -> (i32, i32) {
    %c0_i32 = arith.constant 0 : i32
    %c0_i32_0 = arith.constant 0 : i32
    %c0_i32_1 = arith.constant 0 : i32
    return %c0_i32, %c0_i32_0 : i32, i32
  }
  func.func @transform_5(%arg0: i32) -> (i32, i32, i32) {
    %c0_i32 = arith.constant 0 : i32
    %c0_i32_0 = arith.constant 0 : i32
    %c0_i32_1 = arith.constant 0 : i32
    %c0_i32_2 = arith.constant 0 : i32
    return %c0_i32, %c0_i32_0, %c0_i32_1 : i32, i32, i32
  }
  func.func @transform_6(%arg0: i32) -> (i32, i32) {
    %c0_i32 = arith.constant 0 : i32
    %c0_i32_0 = arith.constant 0 : i32
    %c0_i32_1 = arith.constant 0 : i32
    return %c0_i32, %c0_i32_0 : i32, i32
  }
  func.func @transform_7(%arg0: i32) -> (i32, i32) {
    %c0_i32 = arith.constant 0 : i32
    %c0_i32_0 = arith.constant 0 : i32
    %c0_i32_1 = arith.constant 0 : i32
    return %c0_i32, %c0_i32_0 : i32, i32
  }
  func.func @transform_8(%arg0: i32) -> (i32, i32) {
    %c0_i32 = arith.constant 0 : i32
    %c0_i32_0 = arith.constant 0 : i32
    %c0_i32_1 = arith.constant 0 : i32
    return %c0_i32, %c0_i32_0 : i32, i32
  }
  func.func @transform_9(%arg0: i32) -> (i32, i32) {
    %c0_i32 = arith.constant 0 : i32
    %c0_i32_0 = arith.constant 0 : i32
    %c0_i32_1 = arith.constant 0 : i32
    return %c0_i32, %c0_i32_0 : i32, i32
  }
  func.func @transform_10(%arg0: i32) -> (i32, i32) {
    %c0_i32 = arith.constant 0 : i32
    %c0_i32_0 = arith.constant 0 : i32
    %c0_i32_1 = arith.constant 0 : i32
    return %c0_i32, %c0_i32_0 : i32, i32
  }
  func.func @transform_11(%arg0: i32) -> (i32, i32) {
    %c0_i32 = arith.constant 0 : i32
    %c0_i32_0 = arith.constant 0 : i32
    return %arg0, %c0_i32 : i32, i32
  }
}

</mosaic_0001>

<bundles_post_ra>
// kernel: net_forward.1
= control target key start
LH: loop header
LB: loop body
LE: loop exit
PB: predicated region body
PF: predicated region fallthrough
CT: control target
= control target key end

     0   :  { %vm279_vm0 = vcmask 1045504   ;;  %vm242_vm1 = vcmask 97280   ;;  %vm1341_vm2 = vcmask 785408   ;;  %vm2561_vm3 = vcmask 523264   ;;  %s5998_s1 = inlined_call_operand.vmem [shape: bf16[2,140,96], index: 1, kind: input, shape index: {}]   ;;  %s5999_s0 = inlined_call_operand.vmem [shape: bf16[2,12,16,140], index: 0, kind: input, shape index: {}]   ;;  %s6000_s3 = inlined_call_operand.vmem [shape: bf16[10,96,64], index: 3, kind: input, shape index: {}]   ;;  %s6001_s2 = inlined_call_operand.vmem [shape: f32[1,96], index: 2, kind: input, shape index: {}]   ;;  %s6002_s4 = inlined_call_operand.vmem [shape: f32[1,64], index: 4, kind: input, shape index: {}]   ;;  %s6003_s5 = inlined_call_operand.vmem [shape: bf16[4,64,256], index: 5, kind: input, shape index: {}]   ;;  %s6004_s8 = inlined_call_operand.vmem [shape: f32[1,64], index: 8, kind: input, shape index: {}]   ;;  %s6005_s7 = inlined_call_operand.vmem [shape: bf16[256,64], index: 7, kind: input, shape index: {}]   ;;  %s6006_s6 = inlined_call_operand.vmem [shape: f32[1,256], index: 6, kind: input, shape index: {}]   ;;  %s6007_s10 = inlined_call_operand.vmem [shape: f32[1,10], index: 10, kind: input, shape index: {}]   ;;  %s6008_s9 = inlined_call_operand.vmem [shape: bf16[64,10], index: 9, kind: input, shape index: {}]   ;;  %s6009_s11 = inlined_call_operand.vmem [shape: f32[16,10], index: 11, kind: output, shape index: {}]  }
   0x1   :  { %v4188_v0 = vld [vmem:[%s5998_s1 + $0x38] sm:$0xff]  ;;  %v4413_v1 = vld [vmem:[%s5998_s1 + $0x80] sm:$0xff]  ;;  %v3330_v4 = vld [vmem:[%s5998_s1 + $0x88] sm:$0xf]  ;;  %vm3079_vm4 = vcmask 80896  }
   0x2   :  { %v3264_v2 = vld [vmem:[%s5998_s1 + $0x40] sm:$0xf]  ;;  %v4189_v3 = vld [vmem:[%s5998_s1 + $0x40] sm:$0x30]  ;;  %v4198_v5 = vld [vmem:[%s5998_s1 + $0x88] sm:$0x30]  ;;  %283 = vmatpush.bf16.msra.mxu0 %v4188_v0  ;;  %496 = vmatpush.bf16.msra.mxu2 %v4413_v1 }
   0x3   :  { %v3265_v6 = vor.u32 %v4189_v3, %v3264_v2  ;;  %v3331_v7 = vor.u32 %v4198_v5, %v3330_v4  ;;  %v4187_v8 = vld [vmem:[%s5998_s1 + $0x30] sm:$0xff]  ;;  %v4157_v9 = vld [vmem:[%s5999_s0 + $0x4] sm:$0xf]  ;;  %v3138_v10 = vld [vmem:[%s5999_s0 + $0x8] sm:$0xf0] }
   0x4   :  { %v4196_v11 = vld [vmem:[%s5998_s1 + $0x78] sm:$0xff]  ;;  %v3141_v14 = vor.u32 %v4157_v9, %v3138_v10  ;;  %v4186_v15 = vld [vmem:[%s5998_s1 + $0x28] sm:$0xff]  ;;  %v4195_v16 = vld [vmem:[%s5998_s1 + $0x70] sm:$0xff] }
   0x5   :  { %v281_v12 = vsel %vm279_vm0, %v3265_v6, 0  ;;  %v494_v13 = vsel %vm279_vm0, %v3331_v7, 0  ;;  %v4185_v17 = vld [vmem:[%s5998_s1 + $0x20] sm:$0xff]  ;;  %v4194_v18 = vld [vmem:[%s5998_s1 + $0x68] sm:$0xff]  ;;  %v4184_v19 = vld [vmem:[%s5998_s1 + $0x18] sm:$0xff] }
   0x6   :  { %359 = vmatpush.bf16.msra.mxu1 %v281_v12  ;;  %572 = vmatpush.bf16.msra.mxu3 %v494_v13  ;;  %v4193_v20 = vld [vmem:[%s5998_s1 + $0x60] sm:$0xff]  ;;  %v4159_v21 = vld [vmem:[%s5999_s0 + $0x14] sm:$0xf]  ;;  %v3146_v22 = vld [vmem:[%s5999_s0 + $0x18] sm:$0xf0] }
   0x7   :  { %284 = vmatpush.bf16.msra.mxu0 %v4187_v8  ;;  %497 = vmatpush.bf16.msra.mxu2 %v4196_v11  ;;  %v4183_v23 = vld [vmem:[%s5998_s1 + $0x10] sm:$0xff]  ;;  %v4192_v24 = vld [vmem:[%s5998_s1 + $0x58] sm:$0xff]  ;;  %v3149_v25 = vor.u32 %v4159_v21, %v3146_v22  ;;  %v4182_v26 = vld [vmem:[%s5998_s1 + $0x8] sm:$0xff] }
   0x8   :  { %v4191_v27 = vld [vmem:[%s5998_s1 + $0x50] sm:$0xff]  ;;  %v4181_v28 = vld [vmem:[%s5998_s1] sm:$0xff]  ;;  %v4190_v29 = vld [vmem:[%s5998_s1 + $0x48] sm:$0xff] }
   0x9   :  { %3266 = vmatmul.msk.bf16.vlgmr.msra.gmra.mxu1 %vm242_vm1, %v3141_v14  ;;  %3332 = vmatmul.msk.bf16.vlgmr.msra.gmra.mxu3 %vm242_vm1, %v3141_v14  ;;  %v3136_v30 = vld [vmem:[%s5999_s0] sm:$0xf]  ;;  %v4158_v31 = vld [vmem:[%s5999_s0 + $0x4] sm:$0xf0]  ;;  %v4161_v33 = vld [vmem:[%s5999_s0 + $0x24] sm:$0xf] }
   0xa   :  { %903 = vmatpush.bf16.msrb.mxu3 %v281_v12  ;;  %827 = vmatpush.bf16.msrb.mxu1 %v4188_v0  ;;  %v3137_v32 = vor.u32 %v4158_v31, %v3136_v30  ;;  %v3154_v34 = vld [vmem:[%s5999_s0 + $0x28] sm:$0xf0]  ;;  %v3144_v36 = vld [vmem:[%s5999_s0 + $0x10] sm:$0xf]  ;;  %v4160_v37 = vld [vmem:[%s5999_s0 + $0x14] sm:$0xf0] }
   0xb   :  { %285 = vmatpush.bf16.msra.mxu0 %v4186_v15  ;;  %498 = vmatpush.bf16.msra.mxu2 %v4195_v16  ;;  %v3157_v35 = vor.u32 %v4161_v33, %v3154_v34  ;;  %v3145_v38 = vor.u32 %v4160_v37, %v3144_v36  ;;  %v4163_v39 = vld [vmem:[%s5999_s0 + $0x34] sm:$0xf]  ;;  %v3162_v40 = vld [vmem:[%s5999_s0 + $0x38] sm:$0xf0]  ;;  %v3152_v42 = vld [vmem:[%s5999_s0 + $0x20] sm:$0xf] }
   0xc   :  { %v3165_v41 = vor.u32 %v4163_v39, %v3162_v40  ;;  %v4162_v43 = vld [vmem:[%s5999_s0 + $0x24] sm:$0xf0]  ;;  %v4165_v45 = vld [vmem:[%s5999_s0 + $0x44] sm:$0xf]  ;;  %v3170_v46 = vld [vmem:[%s5999_s0 + $0x48] sm:$0xf0] }
   0xd   :  { %v3153_v44 = vor.u32 %v4162_v43, %v3152_v42  ;;  %v3173_v47 = vor.u32 %v4165_v45, %v3170_v46  ;;  %v3160_v48 = vld [vmem:[%s5999_s0 + $0x30] sm:$0xf]  ;;  %v4164_v49 = vld [vmem:[%s5999_s0 + $0x34] sm:$0xf0]  ;;  %v4167_v51 = vld [vmem:[%s5999_s0 + $0x54] sm:$0xf] }
   0xe   :  { %828 = vmatpush.bf16.msrb.mxu1 %v4187_v8  ;;  %v3161_v50 = vor.u32 %v4164_v49, %v3160_v48  ;;  %v3178_v52 = vld [vmem:[%s5999_s0 + $0x58] sm:$0xf0]  ;;  %v3168_v54 = vld [vmem:[%s5999_s0 + $0x40] sm:$0xf]  ;;  %v4166_v55 = vld [vmem:[%s5999_s0 + $0x44] sm:$0xf0] }
   0xf   :  { %286 = vmatpush.bf16.msra.mxu0 %v4185_v17  ;;  %499 = vmatpush.bf16.msra.mxu2 %v4194_v18  ;;  %v3181_v53 = vor.u32 %v4167_v51, %v3178_v52  ;;  %v3169_v56 = vor.u32 %v4166_v55, %v3168_v54  ;;  %v4169_v57 = vld [vmem:[%s5999_s0 + $0x64] sm:$0xf]  ;;  %v3186_v58 = vld [vmem:[%s5999_s0 + $0x68] sm:$0xf0]  ;;  %v3176_v60 = vld [vmem:[%s5999_s0 + $0x50] sm:$0xf] }
  0x10   :  { %v3189_v59 = vor.u32 %v4169_v57, %v3186_v58  ;;  %v4168_v61 = vld [vmem:[%s5999_s0 + $0x54] sm:$0xf0]  ;;  %v4171_v63 = vld [vmem:[%s5999_s0 + $0x74] sm:$0xf]  ;;  %v3194_v0 = vld [vmem:[%s5999_s0 + $0x78] sm:$0xf0] }
  0x11   :  { %v3177_v62 = vor.u32 %v4168_v61, %v3176_v60  ;;  %v3184_v2 = vld [vmem:[%s5999_s0 + $0x60] sm:$0xf]  ;;  %v4170_v3 = vld [vmem:[%s5999_s0 + $0x64] sm:$0xf0]  ;;  %v4173_v5 = vld [vmem:[%s5999_s0 + $0x84] sm:$0xf] }
  0x12   :  { %829 = vmatpush.bf16.msrb.mxu1 %v4186_v15  ;;  %v3185_v4 = vor.u32 %v4170_v3, %v3184_v2  ;;  %v3202_v6 = vld [vmem:[%s5999_s0 + $0x88] sm:$0xf0]  ;;  %v3192_v9 = vld [vmem:[%s5999_s0 + $0x70] sm:$0xf]  ;;  %v4172_v10 = vld [vmem:[%s5999_s0 + $0x74] sm:$0xf0] }
  0x13   :  { %287 = vmatpush.bf16.msra.mxu0 %v4184_v19  ;;  %500 = vmatpush.bf16.msra.mxu2 %v4193_v20  ;;  %v3205_v7 = vor.u32 %v4173_v5, %v3202_v6  ;;  %v4175_v14 = vld [vmem:[%s5999_s0 + $0x94] sm:$0xf]  ;;  %v3210_v15 = vld [vmem:[%s5999_s0 + $0x98] sm:$0xf0]  ;;  %v4228_v36 = vld [vmem:[%s6000_s3 + $0x28] sm:$0xff] }
  0x14   :  { %v3208_v37 = vld [vmem:[%s5999_s0 + $0x90] sm:$0xf]  ;;  %1461 = vmatpush.bf16.msra.mxu3 %v4228_v36  ;;  %v4179_v48 = vld [vmem:[%s5999_s0 + $0xb4] sm:$0xf]  ;;  %v3226_v49 = vld [vmem:[%s5999_s0 + $0xb8] sm:$0xf0] }
  0x15   :  { %v3229_v52 = vor.u32 %v4179_v48, %v3226_v49  ;;  %v3216_v58 = vld [vmem:[%s5999_s0 + $0xa0] sm:$0xf]  ;;  %v4200_v5 = vld [vmem:[%s5999_s0 + $0xc4] sm:$0xf0]  ;;  %v4199_v6 = vld [vmem:[%s5999_s0 + $0xc4] sm:$0xf] }
  0x16   :  { %830 = vmatpush.bf16.msrb.mxu1 %v4185_v17  ;;  %v3213_v17 = vor.u32 %v4175_v14, %v3210_v15  ;;  %v3380_v36 = vld [vmem:[%s5999_s0 + $0xd8] sm:$0xf0] }
  0x17   :  { %288 = vmatpush.bf16.msra.mxu0 %v4183_v23  ;;  %501 = vmatpush.bf16.msra.mxu2 %v4192_v24 }
  0x19   :  { %3267 = vmatmul.msk.bf16.gmra.mxu1 %vm242_vm1, %v3149_v25  ;;  %3333 = vmatmul.msk.bf16.gmra.mxu3 %vm242_vm1, %v3149_v25 }
  0x1a   :  { %831 = vmatpush.bf16.msrb.mxu1 %v4184_v19  ;;  %v3200_v19 = vld [vmem:[%s5999_s0 + $0x80] sm:$0xf] }
  0x1b   :  { %289 = vmatpush.bf16.msra.mxu0 %v4182_v26  ;;  %502 = vmatpush.bf16.msra.mxu2 %v4191_v27 }
  0x1e   :  { %832 = vmatpush.bf16.msrb.mxu1 %v4183_v23 }
  0x1f   :  { %290 = vmatpush.bf16.msra.mxu0 %v4181_v28  ;;  %503 = vmatpush.bf16.msra.mxu2 %v4190_v29 }
  0x22   :  { %833 = vmatpush.bf16.msrb.mxu1 %v4182_v26  ;;  %291 = vmatmul.bf16.vlgmr.msra.gmra.mxu0 %v3137_v32  ;;  %v4177_v26 = vld [vmem:[%s5999_s0 + $0xa4] sm:$0xf] }
  0x23   :  { %1065 = vmatpush.bf16.msrb.mxu2 %v494_v13  ;;  %989 = vmatpush.bf16.msrb.mxu0 %v4413_v1  ;;  %v3197_v1 = vor.u32 %v4171_v63, %v3194_v0  ;;  %v3193_v13 = vor.u32 %v4172_v10, %v3192_v9 }
  0x24   :  { %504 = vmatmul.bf16.vlgmr.msra.gmra.mxu2 %v3137_v32 }
  0x26   :  { %834 = vmatpush.bf16.msrb.mxu1 %v4181_v28 }
  0x27   :  { %990 = vmatpush.bf16.msrb.mxu0 %v4196_v11 }
  0x29   :  { %3268 = vmatmul.msk.bf16.gmra.mxu1 %vm242_vm1, %v3157_v35  ;;  %3334 = vmatmul.msk.bf16.gmra.mxu3 %vm242_vm1, %v3157_v35 }
  0x2b   :  { %991 = vmatpush.bf16.msrb.mxu0 %v4195_v16 }
  0x2f   :  { %992 = vmatpush.bf16.msrb.mxu0 %v4194_v18 }
  0x32   :  { %296 = vmatmul.bf16.gmra.mxu0 %v3145_v38 }
  0x33   :  { %993 = vmatpush.bf16.msrb.mxu0 %v4193_v20  ;;  %v4174_v20 = vld [vmem:[%s5999_s0 + $0x84] sm:$0xf0] }
  0x34   :  { %509 = vmatmul.bf16.gmra.mxu2 %v3145_v38  ;;  %v3201_v23 = vor.u32 %v4174_v20, %v3200_v19  ;;  %v4176_v38 = vld [vmem:[%s5999_s0 + $0x94] sm:$0xf0] }
  0x35   :  { %v3209_v43 = vor.u32 %v4176_v38, %v3208_v37  ;;  %v4180_v19 = vld [vmem:[%s5999_s0 + $0xb4] sm:$0xf0] }
  0x37   :  { %994 = vmatpush.bf16.msrb.mxu0 %v4192_v24 }
  0x39   :  { %3269 = vmatmul.msk.bf16.gmra.mxu1 %vm242_vm1, %v3165_v41  ;;  %3335 = vmatmul.msk.bf16.gmra.mxu3 %vm242_vm1, %v3165_v41 }
  0x3b   :  { %995 = vmatpush.bf16.msrb.mxu0 %v4191_v27  ;;  %v3218_v27 = vld [vmem:[%s5999_s0 + $0xa8] sm:$0xf0] }
  0x3c   :  { %v3221_v30 = vor.u32 %v4177_v26, %v3218_v27 }
  0x3f   :  { %996 = vmatpush.bf16.msrb.mxu0 %v4190_v29 }
  0x42   :  { %301 = vmatmul.bf16.gmra.mxu0 %v3153_v44 }
  0x44   :  { %514 = vmatmul.bf16.gmra.mxu2 %v3153_v44 }
  0x49   :  { %3270 = vmatmul.msk.bf16.gmra.mxu1 %vm242_vm1, %v3173_v47  ;;  %3336 = vmatmul.msk.bf16.gmra.mxu3 %vm242_vm1, %v3173_v47  ;;  %v4240_v47 = vld [vmem:[%s6000_s3 + $0x88] sm:$0xff] }
  0x4a   :  { %1368 = vmatpush.bf16.msra.mxu1 %v4240_v47 }
  0x52   :  { %306 = vmatmul.bf16.gmra.mxu0 %v3161_v50 }
  0x54   :  { %519 = vmatmul.bf16.gmra.mxu2 %v3161_v50 }
  0x59   :  { %3271 = vmatmul.msk.bf16.gmra.mxu1 %vm242_vm1, %v3181_v53  ;;  %3337 = vmatmul.msk.bf16.gmra.mxu3 %vm242_vm1, %v3181_v53 }
  0x62   :  { %311 = vmatmul.bf16.gmra.mxu0 %v3169_v56 }
  0x64   :  { %524 = vmatmul.bf16.gmra.mxu2 %v3169_v56 }
  0x69   :  { %3272 = vmatmul.msk.bf16.gmra.mxu1 %vm242_vm1, %v3189_v59  ;;  %3338 = vmatmul.msk.bf16.gmra.mxu3 %vm242_vm1, %v3189_v59  ;;  %v4178_v59 = vld [vmem:[%s5999_s0 + $0xa4] sm:$0xf0] }
  0x6a   :  { %v3217_v0 = vor.u32 %v4178_v59, %v3216_v58  ;;  %v3386_v59 = vld [vmem:[%s5999_s0 + $0xe0] sm:$0xf] }
  0x72   :  { %316 = vmatmul.bf16.gmra.mxu0 %v3177_v62 }
  0x74   :  { %529 = vmatmul.bf16.gmra.mxu2 %v3177_v62 }
  0x79   :  { %3273 = vmatmul.msk.bf16.gmra.mxu1 %vm242_vm1, %v3197_v1  ;;  %3339 = vmatmul.msk.bf16.gmra.mxu3 %vm242_vm1, %v3197_v1 }
  0x82   :  { %321 = vmatmul.bf16.gmra.mxu0 %v3185_v4 }
  0x84   :  { %534 = vmatmul.bf16.gmra.mxu2 %v3185_v4  ;;  %v3370_v4 = vld [vmem:[%s5999_s0 + $0xc0] sm:$0xf] }
  0x85   :  { %v3371_v10 = vor.u32 %v4200_v5, %v3370_v4 }
  0x86   :  { %v361_v8 = vpop.f32.mrf.mxu1 }
  0x89   :  { %3274 = vmatmul.msk.bf16.gmra.mxu1 %vm242_vm1, %v3205_v7  ;;  %3340 = vmatmul.msk.bf16.gmra.mxu3 %vm242_vm1, %v3205_v7  ;;  %v3372_v7 = vld [vmem:[%s5999_s0 + $0xc8] sm:$0xf0] }
  0x8c   :  { %v574_v11 = vpop.f32.mrf.mxu3 }
  0x8e   :  { %v363_v12 = vpop.f32.mrf.mxu1 }
  0x92   :  { %326 = vmatmul.bf16.gmra.mxu0 %v3193_v13 }
  0x94   :  { %539 = vmatmul.bf16.gmra.mxu2 %v3193_v13  ;;  %v576_v16 = vpop.f32.mrf.mxu3 }
  0x96   :  { %v366_v18 = vpop.f32.mrf.mxu1 }
  0x99   :  { %3275 = vmatmul.msk.bf16.gmra.mxu1 %vm242_vm1, %v3213_v17  ;;  %3341 = vmatmul.msk.bf16.gmra.mxu3 %vm242_vm1, %v3213_v17  ;;  %v4227_v17 = vld [vmem:[%s6000_s3 + $0x20] sm:$0xff] }
  0x9a   :  { %1462 = vmatpush.bf16.msra.mxu3 %v4227_v17 }
  0x9c   :  { %v579_v21 = vpop.f32.mrf.mxu3 }
  0x9e   :  { %v368_v22 = vpop.f32.mrf.mxu1 }
  0x9f   :  { %v292_v24 = vpop.f32.mrf.mxu0 }
  0xa0   :  { %v4605_v25 = vadd.f32 %v361_v8, %v292_v24 }
  0xa2   :  { %331 = vmatmul.bf16.gmra.mxu0 %v3201_v23 }
  0xa4   :  { %544 = vmatmul.bf16.gmra.mxu2 %v3201_v23  ;;  %v581_v28 = vpop.f32.mrf.mxu3 }
  0xa6   :  { %v371_v31 = vpop.f32.mrf.mxu1 }
  0xa7   :  { %v505_v29 = vpop.f32.mrf.mxu2  ;;  %v294_v33 = vpop.f32.mrf.mxu0 }
  0xa8   :  { %v4613_v32 = vadd.f32 %v574_v11, %v505_v29  ;;  %v4617_v35 = vadd.f32 %v363_v12, %v294_v33  ;;  %v3375_v11 = vor.u32 %v4199_v6, %v3372_v7  ;;  %v4239_v29 = vld [vmem:[%s6000_s3 + $0x80] sm:$0xff]  ;;  %v4201_v33 = vld [vmem:[%s5999_s0 + $0xd4] sm:$0xf] }
  0xa9   :  { %3276 = vmatmul.msk.bf16.gmra.mxu1 %vm242_vm1, %v3221_v30  ;;  %3342 = vmatmul.msk.bf16.gmra.mxu3 %vm242_vm1, %v3221_v30  ;;  %v3378_v30 = vld [vmem:[%s5999_s0 + $0xd0] sm:$0xf] }
  0xaa   :  { %1369 = vmatpush.bf16.msra.mxu1 %v4239_v29  ;;  %v4205_v29 = vld [vmem:[%s5999_s0 + $0xf4] sm:$0xf] }
  0xac   :  { %v584_v39 = vpop.f32.mrf.mxu3 }
  0xae   :  { %v373_v41 = vpop.f32.mrf.mxu1 }
  0xaf   :  { %v507_v40 = vpop.f32.mrf.mxu2  ;;  %v297_v44 = vpop.f32.mrf.mxu0 }
  0xb0   :  { %v4630_v42 = vadd.f32 %v576_v16, %v507_v40  ;;  %v4634_v46 = vadd.f32 %v366_v18, %v297_v44  ;;  %v3224_v18 = vld [vmem:[%s5999_s0 + $0xb0] sm:$0xf]  ;;  %v3383_v40 = vor.u32 %v4201_v33, %v3380_v36 }
  0xb1   :  { %v3225_v24 = vor.u32 %v4180_v19, %v3224_v18 }
  0xb2   :  { %336 = vmatmul.bf16.gmra.mxu0 %v3209_v43 }
  0xb4   :  { %549 = vmatmul.bf16.gmra.mxu2 %v3209_v43  ;;  %v586_v50 = vpop.f32.mrf.mxu3 }
  0xb6   :  { %v376_v53 = vpop.f32.mrf.mxu1 }
  0xb7   :  { %v510_v51 = vpop.f32.mrf.mxu2  ;;  %v299_v55 = vpop.f32.mrf.mxu0 }
  0xb8   :  { %v4645_v54 = vadd.f32 %v579_v21, %v510_v51  ;;  %v4649_v57 = vadd.f32 %v368_v22, %v299_v55 }
  0xb9   :  { %3277 = vmatmul.msk.bf16.gmra.mxu1 %vm242_vm1, %v3229_v52  ;;  %3343 = vmatmul.msk.bf16.gmra.mxu3 %vm242_vm1, %v3229_v52 }
  0xbc   :  { %v589_v60 = vpop.f32.mrf.mxu3 }
  0xbe   :  { %v378_v62 = vpop.f32.mrf.mxu1 }
  0xbf   :  { %v512_v61 = vpop.f32.mrf.mxu2  ;;  %v302_v1 = vpop.f32.mrf.mxu0 }
  0xc0   :  { %v4659_v63 = vadd.f32 %v581_v28, %v512_v61  ;;  %v4663_v3 = vadd.f32 %v371_v31, %v302_v1  ;;  %v4202_v31 = vld [vmem:[%s5999_s0 + $0xd4] sm:$0xf0]  ;;  %v4203_v61 = vld [vmem:[%s5999_s0 + $0xe4] sm:$0xf] }
  0xc2   :  { %341 = vmatmul.bf16.gmra.mxu0 %v3217_v0 }
  0xc4   :  { %554 = vmatmul.bf16.gmra.mxu2 %v3217_v0  ;;  %v591_v8 = vpop.f32.mrf.mxu3 }
  0xc6   :  { %v381_v12 = vpop.f32.mrf.mxu1 }
  0xc7   :  { %v515_v9 = vpop.f32.mrf.mxu2  ;;  %v304_v14 = vpop.f32.mrf.mxu0 }
  0xc8   :  { %v4677_v13 = vadd.f32 %v584_v39, %v515_v9  ;;  %v4681_v16 = vadd.f32 %v373_v41, %v304_v14  ;;  %v3379_v39 = vor.u32 %v4202_v31, %v3378_v30  ;;  %v3396_v30 = vld [vmem:[%s5999_s0 + $0xf8] sm:$0xf0] }
  0xc9   :  { %835 = vmatmul.bf16.vlgmr.msrb.gmra.mxu1 %v3371_v10  ;;  %3464 = vmatmul.msk.bf16.vlgmr.msrb.gmra.mxu3 %vm242_vm1, %v3375_v11 }
  0xcc   :  { %v594_v20 = vpop.f32.mrf.mxu3 }
  0xce   :  { %v383_v22 = vpop.f32.mrf.mxu1 }
  0xcf   :  { %v517_v21 = vpop.f32.mrf.mxu2  ;;  %v307_v26 = vpop.f32.mrf.mxu0 }
  0xd0   :  { %v4693_v23 = vadd.f32 %v586_v50, %v517_v21  ;;  %v4697_v28 = vadd.f32 %v376_v53, %v307_v26  ;;  %v4206_v26 = vld [vmem:[%s5999_s0 + $0xf4] sm:$0xf0] }
  0xd2   :  { %346 = vmatmul.bf16.gmra.mxu0 %v3225_v24 }
  0xd4   :  { %559 = vmatmul.bf16.gmra.mxu2 %v3225_v24  ;;  %v596_v37 = vpop.f32.mrf.mxu3  ;;  %v3394_v24 = vld [vmem:[%s5999_s0 + $0xf0] sm:$0xf] }
  0xd5   :  { %v3395_v36 = vor.u32 %v4206_v26, %v3394_v24 }
  0xd6   :  { %v386_v41 = vpop.f32.mrf.mxu1 }
  0xd7   :  { %v520_v38 = vpop.f32.mrf.mxu2  ;;  %v309_v44 = vpop.f32.mrf.mxu0 }
  0xd8   :  { %v4714_v43 = vadd.f32 %v589_v60, %v520_v38  ;;  %v4718_v48 = vadd.f32 %v378_v62, %v309_v44  ;;  %v4204_v60 = vld [vmem:[%s5999_s0 + $0xe4] sm:$0xf0]  ;;  %v3388_v62 = vld [vmem:[%s5999_s0 + $0xe8] sm:$0xf0] }
  0xd9   :  { %840 = vmatmul.bf16.gmra.mxu1 %v3379_v39  ;;  %3465 = vmatmul.msk.bf16.gmra.mxu3 %vm242_vm1, %v3383_v40  ;;  %v3387_v4 = vor.u32 %v4204_v60, %v3386_v59  ;;  %v3391_v5 = vor.u32 %v4203_v61, %v3388_v62 }
  0xdc   :  { %v599_v49 = vpop.f32.mrf.mxu3 }
  0xde   :  { %v388_v51 = vpop.f32.mrf.mxu1 }
  0xdf   :  { %v522_v50 = vpop.f32.mrf.mxu2  ;;  %v312_v53 = vpop.f32.mrf.mxu0 }
  0xe0   :  { %v4721_v52 = vadd.f32 %v591_v8, %v522_v50  ;;  %v4725_v58 = vadd.f32 %v381_v12, %v312_v53 }
  0xe2   :  { %997 = vmatmul.bf16.vlgmr.msrb.gmra.mxu0 %v3371_v10 }
  0xe4   :  { %3476 = vmatmul.msk.bf16.vlgmr.msrb.gmra.mxu2 %vm242_vm1, %v3375_v11  ;;  %v601_v0 = vpop.f32.mrf.mxu3  ;;  %v4226_v11 = vld [vmem:[%s6000_s3 + $0x18] sm:$0xff] }
  0xe5   :  { %1463 = vmatpush.bf16.msra.mxu3 %v4226_v11 }
  0xe6   :  { %v391_v6 = vpop.f32.mrf.mxu1 }
  0xe7   :  { %v525_v1 = vpop.f32.mrf.mxu2  ;;  %v314_v8 = vpop.f32.mrf.mxu0 }
  0xe8   :  { %v4740_v7 = vadd.f32 %v594_v20, %v525_v1  ;;  %v4744_v10 = vadd.f32 %v383_v22, %v314_v8  ;;  %v4238_v22 = vld [vmem:[%s6000_s3 + $0x78] sm:$0xff]  ;;  %v3402_v1 = vld [vmem:[%s5999_s0 + $0x100] sm:$0xf] }
  0xe9   :  { %845 = vmatmul.bf16.gmra.mxu1 %v3387_v4  ;;  %3466 = vmatmul.msk.bf16.gmra.mxu3 %vm242_vm1, %v3391_v5 }
  0xea   :  { %1370 = vmatpush.bf16.msra.mxu1 %v4238_v22 }
  0xec   :  { %v604_v12 = vpop.f32.mrf.mxu3 }
  0xee   :  { %v393_v17 = vpop.f32.mrf.mxu1 }
  0xef   :  { %v527_v14 = vpop.f32.mrf.mxu2  ;;  %v317_v19 = vpop.f32.mrf.mxu0 }
  0xf0   :  { %v4750_v18 = vadd.f32 %v596_v37, %v527_v14  ;;  %v4754_v21 = vadd.f32 %v386_v41, %v317_v19  ;;  %v3399_v37 = vor.u32 %v4205_v29, %v3396_v30  ;;  %v4225_v29 = vld [vmem:[%s6000_s3 + $0x10] sm:$0xff] }
  0xf1   :  { %1464 = vmatpush.bf16.msra.mxu3 %v4225_v29 }
  0xf2   :  { %1002 = vmatmul.bf16.gmra.mxu0 %v3379_v39 }
  0xf4   :  { %3477 = vmatmul.msk.bf16.gmra.mxu2 %vm242_vm1, %v3383_v40  ;;  %v606_v31 = vpop.f32.mrf.mxu3 }
  0xf6   :  { %v396_v38 = vpop.f32.mrf.mxu1 }
  0xf7   :  { %v530_v33 = vpop.f32.mrf.mxu2  ;;  %v319_v40 = vpop.f32.mrf.mxu0 }
  0xf8   :  { %v4772_v39 = vadd.f32 %v599_v49, %v530_v33  ;;  %v4776_v44 = vadd.f32 %v388_v51, %v319_v40  ;;  %v4208_v51 = vld [vmem:[%s5999_s0 + $0x104] sm:$0xf0] }
  0xf9   :  { %850 = vmatmul.bf16.gmra.mxu1 %v3395_v36  ;;  %3467 = vmatmul.msk.bf16.gmra.mxu3 %vm242_vm1, %v3399_v37  ;;  %v3403_v14 = vor.u32 %v4208_v51, %v3402_v1  ;;  %v3410_v51 = vld [vmem:[%s5999_s0 + $0x110] sm:$0xf] }
  0xfc   :  { %v609_v50 = vpop.f32.mrf.mxu3 }
  0xfe   :  { %v398_v59 = vpop.f32.mrf.mxu1 }
  0xff   :  { %v532_v53 = vpop.f32.mrf.mxu2  ;;  %v322_v61 = vpop.f32.mrf.mxu0 }
 0x100   :  { %v4779_v60 = vadd.f32 %v601_v0, %v532_v53  ;;  %v4783_v49 = vadd.f32 %v391_v6, %v322_v61  ;;  %v4207_v0 = vld [vmem:[%s5999_s0 + $0x104] sm:$0xf]  ;;  %v3404_v6 = vld [vmem:[%s5999_s0 + $0x108] sm:$0xf0] }
 0x101   :  { %v3407_v19 = vor.u32 %v4207_v0, %v3404_v6  ;;  %v3412_v0 = vld [vmem:[%s5999_s0 + $0x118] sm:$0xf0] }
 0x102   :  { %1007 = vmatmul.bf16.gmra.mxu0 %v3387_v4 }
 0x104   :  { %3478 = vmatmul.msk.bf16.gmra.mxu2 %vm242_vm1, %v3391_v5  ;;  %v611_v8 = vpop.f32.mrf.mxu3 }
 0x106   :  { %v401_v22 = vpop.f32.mrf.mxu1 }
 0x107   :  { %v535_v11 = vpop.f32.mrf.mxu2  ;;  %v324_v5 = vpop.f32.mrf.mxu0 }
 0x108   :  { %v4798_v4 = vadd.f32 %v604_v12, %v535_v11  ;;  %v4802_v26 = vadd.f32 %v393_v17, %v324_v5  ;;  %v4237_v17 = vld [vmem:[%s6000_s3 + $0x70] sm:$0xff] }
 0x109   :  { %855 = vmatmul.bf16.gmra.mxu1 %v3403_v14  ;;  %3468 = vmatmul.msk.bf16.gmra.mxu3 %vm242_vm1, %v3407_v19 }
 0x10a   :  { %1371 = vmatpush.bf16.msra.mxu1 %v4237_v17 }
 0x10c   :  { %v614_v30 = vpop.f32.mrf.mxu3 }
 0x10e   :  { %v403_v40 = vpop.f32.mrf.mxu1 }
 0x10f   :  { %v537_v33 = vpop.f32.mrf.mxu2  ;;  %v327_v12 = vpop.f32.mrf.mxu0 }
 0x110   :  { %v4808_v53 = vadd.f32 %v606_v31, %v537_v33  ;;  %v4812_v1 = vadd.f32 %v396_v38, %v327_v12  ;;  %v4210_v31 = vld [vmem:[%s5999_s0 + $0x114] sm:$0xf0]  ;;  %v4209_v38 = vld [vmem:[%s5999_s0 + $0x114] sm:$0xf] }
 0x111   :  { %v3411_v5 = vor.u32 %v4210_v31, %v3410_v51  ;;  %v3415_v29 = vor.u32 %v4209_v38, %v3412_v0  ;;  %v3418_v31 = vld [vmem:[%s5999_s0 + $0x120] sm:$0xf]  ;;  %v4234_v12 = vld [vmem:[%s6000_s3 + $0x58] sm:$0xff] }
 0x112   :  { %1012 = vmatmul.bf16.gmra.mxu0 %v3395_v36  ;;  %1644 = vmatpush.bf16.msra.mxu2 %v4234_v12  ;;  %v4236_v12 = vld [vmem:[%s6000_s3 + $0x68] sm:$0xff] }
 0x113   :  { %1372 = vmatpush.bf16.msra.mxu1 %v4236_v12 }
 0x114   :  { %3479 = vmatmul.msk.bf16.gmra.mxu2 %vm242_vm1, %v3399_v37  ;;  %v616_v6 = vpop.f32.mrf.mxu3 }
 0x116   :  { %v406_v36 = vpop.f32.mrf.mxu1 }
 0x117   :  { %v540_v11 = vpop.f32.mrf.mxu2  ;;  %v329_v37 = vpop.f32.mrf.mxu0 }
 0x118   :  { %v4830_v33 = vadd.f32 %v609_v50, %v540_v11  ;;  %v4834_v61 = vadd.f32 %v398_v59, %v329_v37  ;;  %v4212_v59 = vld [vmem:[%s5999_s0 + $0x124] sm:$0xf0] }
 0x119   :  { %860 = vmatmul.bf16.gmra.mxu1 %v3411_v5  ;;  %3469 = vmatmul.msk.bf16.gmra.mxu3 %vm242_vm1, %v3415_v29  ;;  %v3419_v38 = vor.u32 %v4212_v59, %v3418_v31  ;;  %v4224_v31 = vld [vmem:[%s6000_s3 + $0x8] sm:$0xff] }
 0x11a   :  { %1465 = vmatpush.bf16.msra.mxu3 %v4224_v31  ;;  %v3426_v31 = vld [vmem:[%s5999_s0 + $0x130] sm:$0xf] }
 0x11c   :  { %v619_v24 = vpop.f32.mrf.mxu3 }
 0x11e   :  { %v408_v41 = vpop.f32.mrf.mxu1 }
 0x11f   :  { %v542_v62 = vpop.f32.mrf.mxu2  ;;  %v332_v20 = vpop.f32.mrf.mxu0 }
 0x120   :  { %v4837_v17 = vadd.f32 %v611_v8, %v542_v62  ;;  %v4841_v50 = vadd.f32 %v401_v22, %v332_v20  ;;  %v4211_v62 = vld [vmem:[%s5999_s0 + $0x124] sm:$0xf]  ;;  %v3420_v20 = vld [vmem:[%s5999_s0 + $0x128] sm:$0xf0] }
 0x121   :  { %v3423_v0 = vor.u32 %v4211_v62, %v3420_v20 }
 0x122   :  { %1017 = vmatmul.bf16.gmra.mxu0 %v3403_v14 }
 0x124   :  { %3480 = vmatmul.msk.bf16.gmra.mxu2 %vm242_vm1, %v3407_v19  ;;  %v621_v8 = vpop.f32.mrf.mxu3 }
 0x126   :  { %v411_v11 = vpop.f32.mrf.mxu1 }
 0x127   :  { %v545_v22 = vpop.f32.mrf.mxu2  ;;  %v334_v19 = vpop.f32.mrf.mxu0 }
 0x128   :  { %v4856_v14 = vadd.f32 %v614_v30, %v545_v22  ;;  %v4860_v51 = vadd.f32 %v403_v40, %v334_v19  ;;  %v4246_v22 = vld [vmem:[%s6000_s3 + $0xb8] sm:$0xff] }
 0x129   :  { %865 = vmatmul.bf16.gmra.mxu1 %v3419_v38  ;;  %3470 = vmatmul.msk.bf16.gmra.mxu3 %vm242_vm1, %v3423_v0 }
 0x12a   :  { %6020 = vst [vmem:[#allocation2_spill] sm:$0xff] %v4860_v51  ;;  %1559 = vmatpush.bf16.msra.mxu0 %v4246_v22 }
 0x12c   :  { %v624_v30 = vpop.f32.mrf.mxu3 }
 0x12e   :  { %v413_v62 = vpop.f32.mrf.mxu1 }
 0x12f   :  { %v547_v59 = vpop.f32.mrf.mxu2  ;;  %v337_v40 = vpop.f32.mrf.mxu0 }
 0x130   :  { %v4869_v20 = vadd.f32 %v616_v6, %v547_v59  ;;  %v4876_v37 = vadd.f32 %v406_v36, %v337_v40  ;;  %v4214_v6 = vld [vmem:[%s5999_s0 + $0x134] sm:$0xf0]  ;;  %v4213_v36 = vld [vmem:[%s5999_s0 + $0x134] sm:$0xf]  ;;  %v3428_v59 = vld [vmem:[%s5999_s0 + $0x138] sm:$0xf0] }
 0x131   :  { %v3427_v9 = vor.u32 %v4214_v6, %v3426_v31  ;;  %v3431_v22 = vor.u32 %v4213_v36, %v3428_v59 }
 0x132   :  { %6021 = vst [vmem:[#allocation3_spill] sm:$0xff] %v4869_v20  ;;  %1022 = vmatmul.bf16.gmra.mxu0 %v3411_v5 }
 0x134   :  { %3481 = vmatmul.msk.bf16.gmra.mxu2 %vm242_vm1, %v3415_v29  ;;  %v626_v40 = vpop.f32.mrf.mxu3 }
 0x136   :  { %v416_v5 = vpop.f32.mrf.mxu1 }
 0x137   :  { %v550_v19 = vpop.f32.mrf.mxu2  ;;  %v339_v29 = vpop.f32.mrf.mxu0 }
 0x138   :  { %v4894_v55 = vadd.f32 %v619_v24, %v550_v19  ;;  %v4898_v27 = vadd.f32 %v408_v41, %v339_v29  ;;  %v3434_v19 = vld [vmem:[%s5999_s0 + $0x140] sm:$0xf]  ;;  %v4216_v41 = vld [vmem:[%s5999_s0 + $0x144] sm:$0xf0] }
 0x139   :  { %870 = vmatmul.bf16.gmra.mxu1 %v3427_v9  ;;  %3471 = vmatmul.msk.bf16.gmra.mxu3 %vm242_vm1, %v3431_v22  ;;  %v3435_v6 = vor.u32 %v4216_v41, %v3434_v19  ;;  %v4233_v41 = vld [vmem:[%s6000_s3 + $0x50] sm:$0xff] }
 0x13a   :  { %1645 = vmatpush.bf16.msra.mxu2 %v4233_v41  ;;  %v4235_v41 = vld [vmem:[%s6000_s3 + $0x60] sm:$0xff] }
 0x13b   :  { %1373 = vmatpush.bf16.msra.mxu1 %v4235_v41 }
 0x13c   :  { %v629_v15 = vpop.f32.mrf.mxu3 }
 0x13e   :  { %v418_v56 = vpop.f32.mrf.mxu1 }
 0x13f   :  { %v552_v2 = vpop.f32.mrf.mxu2  ;;  %v342_v45 = vpop.f32.mrf.mxu0 }
 0x140   :  { %v4901_v12 = vadd.f32 %v621_v8, %v552_v2  ;;  %v4905_v24 = vadd.f32 %v411_v11, %v342_v45  ;;  %v4215_v2 = vld [vmem:[%s5999_s0 + $0x144] sm:$0xf]  ;;  %v3436_v45 = vld [vmem:[%s5999_s0 + $0x148] sm:$0xf0] }
 0x141   :  { %v3439_v36 = vor.u32 %v4215_v2, %v3436_v45  ;;  %v4245_v2 = vld [vmem:[%s6000_s3 + $0xb0] sm:$0xff] }
 0x142   :  { %6022 = vst [vmem:[#allocation4_spill] sm:$0xff] %v4901_v12  ;;  %1027 = vmatmul.bf16.gmra.mxu0 %v3419_v38 }
 0x143   :  { %1560 = vmatpush.bf16.msra.mxu0 %v4245_v2 }
 0x144   :  { %3482 = vmatmul.msk.bf16.gmra.mxu2 %vm242_vm1, %v3423_v0  ;;  %v631_v8 = vpop.f32.mrf.mxu3 }
 0x146   :  { %v836_v59 = vpop.f32.mrf.mxu1 }
 0x147   :  { %v555_v11 = vpop.f32.mrf.mxu2  ;;  %v344_v0 = vpop.f32.mrf.mxu0 }
 0x148   :  { %v4920_v38 = vadd.f32 %v624_v30, %v555_v11  ;;  %v4924_v31 = vadd.f32 %v413_v62, %v344_v0  ;;  %v4223_v62 = vld [vmem:[%s6000_s3] sm:$0xff] }
 0x149   :  { %875 = vmatmul.bf16.gmra.mxu1 %v3435_v6  ;;  %3472 = vmatmul.msk.bf16.gmra.mxu3 %vm242_vm1, %v3439_v36 }
 0x14a   :  { %6023 = vst [vmem:[#allocation5_spill] sm:$0xff] %v4920_v38  ;;  %1466 = vmatpush.bf16.msra.mxu3 %v4223_v62 }
 0x14b   :  { %6024 = vst [vmem:[#allocation6_spill] sm:$0xff] %v4924_v31 }
 0x14c   :  { %v905_v47 = vpop.f32.mrf.mxu3 }
 0x14e   :  { %v838_v20 = vpop.f32.mrf.mxu1 }
 0x14f   :  { %v557_v34 = vpop.f32.mrf.mxu2  ;;  %v347_v12 = vpop.f32.mrf.mxu0 }
 0x150   :  { %v4927_v51 = vadd.f32 %v626_v40, %v557_v34  ;;  %v4931_v30 = vadd.f32 %v416_v5, %v347_v12  ;;  %v3442_v34 = vld [vmem:[%s5999_s0 + $0x150] sm:$0xf]  ;;  %v4218_v40 = vld [vmem:[%s5999_s0 + $0x154] sm:$0xf0]  ;;  %v4217_v5 = vld [vmem:[%s5999_s0 + $0x154] sm:$0xf] }
 0x151   :  { %v3444_v12 = vld [vmem:[%s5999_s0 + $0x158] sm:$0xf0] }
 0x152   :  { %6025 = vst [vmem:[#allocation7_spill] sm:$0xff] %v4927_v51  ;;  %1032 = vmatmul.bf16.gmra.mxu0 %v3427_v9  ;;  %v3443_v9 = vor.u32 %v4218_v40, %v3442_v34  ;;  %v3447_v0 = vor.u32 %v4217_v5, %v3444_v12  ;;  %v4220_v12 = vld [vmem:[%s5999_s0 + $0x164] sm:$0xf0] }
 0x153   :  { %6026 = vst [vmem:[#allocation8_spill] sm:$0xff] %v4931_v30 }
 0x154   :  { %3483 = vmatmul.msk.bf16.gmra.mxu2 %vm242_vm1, %v3431_v22  ;;  %v907_v45 = vpop.f32.mrf.mxu3 }
 0x156   :  { %v841_v22 = vpop.f32.mrf.mxu1 }
 0x157   :  { %v560_v11 = vpop.f32.mrf.mxu2  ;;  %v349_v29 = vpop.f32.mrf.mxu0 }
 0x158   :  { %v4955_v19 = vadd.f32 %v629_v15, %v560_v11  ;;  %v4959_v31 = vadd.f32 %v418_v56, %v349_v29  ;;  %v3450_v56 = vld [vmem:[%s5999_s0 + $0x160] sm:$0xf]  ;;  %v906_v29 = vadd.f32 %v905_v47, %v836_v59  ;;  %v3452_v11 = vld [vmem:[%s5999_s0 + $0x168] sm:$0xf0] }
 0x159   :  { %880 = vmatmul.bf16.gmra.mxu1 %v3443_v9  ;;  %3473 = vmatmul.msk.bf16.gmra.mxu3 %vm242_vm1, %v3447_v0  ;;  %v4984_v5 = vor.u32 %v4220_v12, %v3450_v56  ;;  %v908_v56 = vadd.f32 %v907_v45, %v838_v20  ;;  %v4258_v20 = vld [vmem:[%s6000_s3 + $0x118] sm:$0xff] }
 0x15a   :  { %6027 = vst [vmem:[#allocation9_spill] sm:$0xff] %v4955_v19  ;;  %v4996_v19 = vld [vmem:[%s6001_s2] ss:$0 sm:$0xff]  ;;  %1864 = vmatpush.bf16.msrb.mxu3 %v4258_v20 }
 0x15b   :  { %6028 = vst [vmem:[#allocation10_spill] sm:$0xff] %v4959_v31 }
 0x15c   :  { %v910_v62 = vpop.f32.mrf.mxu3 }
 0x15e   :  { %v4965_v34 = vpop.f32.mrf.mxu1 }
 0x15f   :  { %v562_v2 = vpop.f32.mrf.mxu2  ;;  %v998_v40 = vpop.f32.mrf.mxu0 }
 0x160   :  { %v4967_v15 = vadd.f32 %v631_v8, %v562_v2  ;;  %v4219_v8 = vld [vmem:[%s5999_s0 + $0x164] sm:$0xf] }
 0x161   :  { %v4986_v47 = vor.u32 %v4219_v8, %v3452_v11 }
 0x162   :  { %6029 = vst [vmem:[#allocation11_spill] sm:$0xff] %v4967_v15  ;;  %1037 = vmatmul.bf16.gmra.mxu0 %v3435_v6  ;;  %v6030_v6 = vmax.f32 %v4605_v25, %v4613_v32 }
 0x164   :  { %3484 = vmatmul.msk.bf16.gmra.mxu2 %vm242_vm1, %v3439_v36  ;;  %v912_v41 = vpop.f32.mrf.mxu3  ;;  %v965_v36 = vmax.f32 %v6030_v6, %v906_v29 }
 0x166   :  { %v4991_v59 = vpop.f32.mrf.mxu1 }
 0x167   :  { %v1067_v2 = vpop.f32.mrf.mxu2  ;;  %v1000_v15 = vpop.f32.mrf.mxu0 }
 0x168   :  { %v1068_v51 = vadd.f32 %v1067_v2, %v998_v40  ;;  %v6031_v40 = vmax.f32 %v4617_v35, %v4630_v42  ;;  %v3458_v35 = vld [vmem:[%s5999_s0 + $0x170] sm:$0xf]  ;;  %v911_v42 = vadd.f32 %v910_v62, %v841_v22 }
 0x169   :  { %885 = vmatmul.bf16.gmra.mxu1 %v4984_v5  ;;  %3474 = vmatmul.msk.bf16.gmra.mxu3 %vm242_vm1, %v4986_v47 }
 0x16a   :  { %v1127_v31 = vmax.f32 %v965_v36, %v1068_v51  ;;  %v966_v51 = vmax.f32 %v6031_v40, %v908_v56  ;;  %v4232_v36 = vld [vmem:[%s6000_s3 + $0x48] sm:$0xff]  ;;  %v4221_v56 = vld [vmem:[%s5999_s0 + $0x174] sm:$0xf] }
 0x16b   :  { %1646 = vmatpush.bf16.msra.mxu2 %v4232_v36  ;;  %v4231_v36 = vld [vmem:[%s6000_s3 + $0x40] sm:$0xff] }
 0x16c   :  { %v1155_v12 = vadd.f32 %v4996_v19, %v1127_v31  ;;  %v5002_v25 = vpop.f32.mrf.mxu3  ;;  %v4244_v31 = vld [vmem:[%s6000_s3 + $0xa8] sm:$0xff] }
 0x16d   :  { %1561 = vmatpush.bf16.msra.mxu0 %v4244_v31 }
 0x16e   :  { %v5007_v29 = vpop.f32.mrf.mxu1  ;;  %v1179_v2 = vmax.f32 %v1155_v12, 0.0  ;;  %v3460_v12 = vld [vmem:[%s5999_s0 + $0x178] sm:$0xf0] }
 0x16f   :  { %v1069_v32 = vpop.f32.mrf.mxu2  ;;  %v1003_v11 = vpop.f32.mrf.mxu0  ;;  %v5034_v40 = vor.u32 %v4221_v56, %v3460_v12  ;;  %1647 = vmatpush.bf16.msra.mxu2 %v4231_v36  ;;  %v916_v36 = vadd.f32 %v5002_v25, %v4991_v59 }
 0x170   :  { %v1070_v8 = vadd.f32 %v1069_v32, %v1000_v15  ;;  %v4222_v15 = vld [vmem:[%s5999_s0 + $0x174] sm:$0xf0]  ;;  %v1203_v22 = vpack.c.bf16 %v1179_v2, %v1179_v2  ;;  %v4243_v2 = vld [vmem:[%s6000_s3 + $0xa0] sm:$0xff] }
 0x171   :  { %1562 = vmatpush.bf16.msra.mxu0 %v4243_v2 }
 0x172   :  { %v1128_v6 = vmax.f32 %v966_v51, %v1070_v8  ;;  %1042 = vmatmul.bf16.gmra.mxu0 %v3443_v9  ;;  %v6032_v51 = vmax.f32 %v4634_v46, %v4645_v54  ;;  %v1417_v31 = vunpack.c.l.b16 %v1203_v22  ;;  %v913_v46 = vadd.f32 %v912_v41, %v4965_v34 }
 0x173   :  { %v6033_v41 = vmax.f32 %v4649_v57, %v4659_v63 }
 0x174   :  { %v1156_v45 = vadd.f32 %v4996_v19, %v1128_v6  ;;  %3485 = vmatmul.msk.bf16.gmra.mxu2 %vm242_vm1, %v3447_v0  ;;  %v917_v32 = vpop.f32.mrf.mxu3  ;;  %v5032_v0 = vor.u32 %v4222_v15, %v3458_v35  ;;  %v967_v8 = vmax.f32 %v6032_v51, %v911_v42  ;;  %v4242_v42 = vld [vmem:[%s6000_s3 + $0x98] sm:$0xff]  ;;  %v4229_v51 = vld [vmem:[%s6000_s3 + $0x30] sm:$0xff] }
 0x175   :  { %1563 = vmatpush.bf16.msra.mxu0 %v4242_v42  ;;  %v968_v12 = vmax.f32 %v6033_v41, %v913_v46 }
 0x176   :  { %v1180_v62 = vmax.f32 %v1156_v45, 0.0  ;;  %v5039_v30 = vpop.f32.mrf.mxu1 }
 0x177   :  { %v1072_v9 = vpop.f32.mrf.mxu2  ;;  %v1005_v20 = vpop.f32.mrf.mxu0 }
 0x178   :  { %v1204_v6 = vpack.c.bf16 %v1180_v62, %v1180_v62  ;;  %v1073_v38 = vadd.f32 %v1072_v9, %v1003_v11  ;;  %v4252_v11 = vld [vmem:[%s6000_s3 + $0xe8] sm:$0xff]  ;;  %v4241_v9 = vld [vmem:[%s6000_s3 + $0x90] sm:$0xff] }
 0x179   :  { %890 = vmatmul.bf16.gmra.mxu1 %v5032_v0  ;;  %3475 = vmatmul.msk.bf16.gmra.mxu3 %vm242_vm1, %v5034_v40 }
 0x17a   :  { %v1418_v35 = vunpack.c.l.b16 %v1204_v6  ;;  %v1129_v45 = vmax.f32 %v967_v8, %v1073_v38  ;;  %v4230_v38 = vld [vmem:[%s6000_s3 + $0x38] sm:$0xff]  ;;  %1750 = vmatpush.bf16.msrb.mxu1 %v4252_v11  ;;  %1564 = vmatpush.bf16.msra.mxu0 %v4241_v9 }
 0x17b   :  { %1648 = vmatpush.bf16.msra.mxu2 %v4230_v38 }
 0x17c   :  { %v5051_v54 = vpack.c.b16 %v1418_v35, %v1417_v31  ;;  %v1157_v15 = vadd.f32 %v4996_v19, %v1129_v45  ;;  %v920_v56 = vpop.f32.mrf.mxu3  ;;  %v6034_v45 = vmax.f32 %v4663_v3, %v4677_v13  ;;  %v4257_v3 = vld [vmem:[%s6000_s3 + $0x110] sm:$0xff]  ;;  %v4251_v13 = vld [vmem:[%s6000_s3 + $0xe0] sm:$0xff] }
 0x17d   :  { %1865 = vmatpush.bf16.msrb.mxu3 %v4257_v3 }
 0x17e   :  { %v853_v22 = vpop.f32.mrf.mxu1  ;;  %v1181_v6 = vmax.f32 %v1157_v15, 0.0  ;;  %v969_v46 = vmax.f32 %v6034_v45, %v916_v36  ;;  %1751 = vmatpush.bf16.msrb.mxu1 %v4251_v13  ;;  %v921_v36 = vadd.f32 %v920_v56, %v5039_v30 }
 0x17f   :  { %v1074_v34 = vpop.f32.mrf.mxu2  ;;  %v1008_v8 = vpop.f32.mrf.mxu0  ;;  %1649 = vmatpush.bf16.msra.mxu2 %v4229_v51 }
 0x180   :  { %v1075_v62 = vadd.f32 %v1074_v34, %v1005_v20  ;;  %v1205_v63 = vpack.c.bf16 %v1181_v6, %v1181_v6 }
 0x182   :  { %v1130_v2 = vmax.f32 %v968_v12, %v1075_v62  ;;  %1047 = vmatmul.bf16.gmra.mxu0 %v4984_v5  ;;  %v1281_v25 = vunpack.c.l.b16 %v1205_v63  ;;  %v918_v5 = vadd.f32 %v917_v32, %v5007_v29  ;;  %v6035_v29 = vmax.f32 %v4681_v16, %v4693_v23 }
 0x183   :  { %v6036_v16 = vmax.f32 %v4697_v28, %v4714_v43 }
 0x184   :  { %v1158_v57 = vadd.f32 %v4996_v19, %v1130_v2  ;;  %3486 = vmatmul.msk.bf16.gmra.mxu2 %vm242_vm1, %v4986_v47  ;;  %v922_v31 = vpop.f32.mrf.mxu3  ;;  %v970_v32 = vmax.f32 %v6035_v29, %v918_v5  ;;  %v6037_v5 = vmax.f32 %v4718_v48, %v4721_v52  ;;  %v4250_v29 = vld [vmem:[%s6000_s3 + $0xd8] sm:$0xff] }
 0x185   :  { %v971_v23 = vmax.f32 %v6036_v16, %v921_v36  ;;  %1752 = vmatpush.bf16.msrb.mxu1 %v4250_v29 }
 0x186   :  { %v1182_v20 = vmax.f32 %v1158_v57, 0.0  ;;  %v856_v42 = vpop.f32.mrf.mxu1 }
 0x187   :  { %v1077_v35 = vpop.f32.mrf.mxu2  ;;  %v1010_v59 = vpop.f32.mrf.mxu0 }
 0x188   :  { %v1206_v11 = vpack.c.bf16 %v1182_v20, %v1182_v20  ;;  %v1078_v38 = vadd.f32 %v1077_v35, %v1008_v8 }
 0x189   :  { %3568 = vmatmul.msk.bf16.vlgmr.msra.gmra.mxu3 %vm1341_vm2, %v5051_v54 }
 0x18a   :  { %v1282_v15 = vunpack.c.l.b16 %v1206_v11  ;;  %v1131_v34 = vmax.f32 %v969_v46, %v1078_v38 }
 0x18c   :  { %v5084_v47 = vpack.c.b16 %v1282_v15, %v1281_v25  ;;  %v1159_v41 = vadd.f32 %v4996_v19, %v1131_v34  ;;  %v925_v12 = vpop.f32.mrf.mxu3  ;;  %v4256_v15 = vld [vmem:[%s6000_s3 + $0x108] sm:$0xff] }
 0x18d   :  { %1866 = vmatpush.bf16.msrb.mxu3 %v4256_v15 }
 0x18e   :  { %3536 = vmatmul.msk.bf16.vlgmr.msra.gmra.mxu1 %vm1341_vm2, %v5084_v47  ;;  %v858_v9 = vpop.f32.mrf.mxu1  ;;  %v1183_v6 = vmax.f32 %v1159_v41, 0.0 }
 0x18f   :  { %v1079_v62 = vpop.f32.mrf.mxu2  ;;  %v1013_v8 = vpop.f32.mrf.mxu0 }
 0x190   :  { %v1080_v51 = vadd.f32 %v1079_v62, %v1010_v59  ;;  %v1207_v63 = vpack.c.bf16 %v1183_v6, %v1183_v6 }
 0x192   :  { %v1132_v2 = vmax.f32 %v970_v32, %v1080_v51  ;;  %1052 = vmatmul.bf16.gmra.mxu0 %v5032_v0  ;;  %v1283_v30 = vunpack.c.l.b16 %v1207_v63  ;;  %v923_v0 = vadd.f32 %v922_v31, %v853_v22  ;;  %v926_v32 = vadd.f32 %v925_v12, %v856_v42 }
 0x194   :  { %v1160_v57 = vadd.f32 %v4996_v19, %v1132_v2  ;;  %3487 = vmatmul.msk.bf16.gmra.mxu2 %vm242_vm1, %v5034_v40  ;;  %v927_v35 = vpop.f32.mrf.mxu3  ;;  %v972_v3 = vmax.f32 %v6037_v5, %v923_v0  ;;  %v6038_v2 = vmax.f32 %v4725_v58, %v4740_v7  ;;  %v6039_v7 = vmax.f32 %v4744_v10, %v4750_v18 }
 0x196   :  { %v1184_v20 = vmax.f32 %v1160_v57, 0.0  ;;  %v861_v11 = vpop.f32.mrf.mxu1  ;;  %v973_v36 = vmax.f32 %v6038_v2, %v926_v32 }
 0x197   :  { %v1082_v45 = vpop.f32.mrf.mxu2  ;;  %v1015_v59 = vpop.f32.mrf.mxu0 }
 0x198   :  { %v1208_v46 = vpack.c.bf16 %v1184_v20, %v1184_v20  ;;  %v1083_v38 = vadd.f32 %v1082_v45, %v1013_v8 }
 0x199   :  { %3569 = vmatmul.msk.bf16.gmra.mxu3 %vm1341_vm2, %v5084_v47 }
 0x19a   :  { %v1284_v56 = vunpack.c.l.b16 %v1208_v46  ;;  %v1133_v25 = vmax.f32 %v971_v23, %v1083_v38 }
 0x19c   :  { %v5108_v40 = vpack.c.b16 %v1284_v56, %v1283_v30  ;;  %v1161_v28 = vadd.f32 %v4996_v19, %v1133_v25  ;;  %v930_v43 = vpop.f32.mrf.mxu3 }
 0x19e   :  { %3537 = vmatmul.msk.bf16.gmra.mxu1 %vm1341_vm2, %v5108_v40  ;;  %v863_v13 = vpop.f32.mrf.mxu1  ;;  %v1185_v41 = vmax.f32 %v1161_v28, 0.0 }
 0x19f   :  { %v1084_v34 = vpop.f32.mrf.mxu2  ;;  %v1018_v31 = vpop.f32.mrf.mxu0 }
 0x1a0   :  { %v1085_v22 = vadd.f32 %v1084_v34, %v1015_v59  ;;  %v1209_v48 = vpack.c.bf16 %v1185_v41, %v1185_v41 }
 0x1a2   :  { %v1134_v62 = vmax.f32 %v972_v3, %v1085_v22  ;;  %3612 = vmatmul.msk.bf16.vlgmr.msra.gmra.mxu0 %vm1341_vm2, %v5084_v47  ;;  %v1285_v20 = vunpack.c.l.b16 %v1209_v48  ;;  %v6040_v3 = vmax.f32 %v4754_v21, %v4772_v39  ;;  %v4249_v48 = vld [vmem:[%s6000_s3 + $0xd0] sm:$0xff] }
 0x1a3   :  { %1753 = vmatpush.bf16.msrb.mxu1 %v4249_v48 }
 0x1a4   :  { %v1162_v51 = vadd.f32 %v4996_v19, %v1134_v62  ;;  %3644 = vmatmul.msk.bf16.vlgmr.msra.gmra.mxu2 %vm1341_vm2, %v5051_v54  ;;  %v932_v8 = vpop.f32.mrf.mxu3  ;;  %v928_v54 = vadd.f32 %v927_v35, %v858_v9  ;;  %v4255_v9 = vld [vmem:[%s6000_s3 + $0x100] sm:$0xff]  ;;  %v931_v35 = vadd.f32 %v930_v43, %v861_v11 }
 0x1a5   :  { %1867 = vmatpush.bf16.msrb.mxu3 %v4255_v9  ;;  %v4254_v9 = vld [vmem:[%s6000_s3 + $0xf8] sm:$0xff] }
 0x1a6   :  { %v1186_v52 = vmax.f32 %v1162_v51, 0.0  ;;  %v866_v63 = vpop.f32.mrf.mxu1  ;;  %v974_v59 = vmax.f32 %v6039_v7, %v928_v54  ;;  %v975_v22 = vmax.f32 %v6040_v3, %v931_v35 }
 0x1a7   :  { %v1087_v6 = vpop.f32.mrf.mxu2  ;;  %v1020_v12 = vpop.f32.mrf.mxu0 }
 0x1a8   :  { %v1210_v57 = vpack.c.bf16 %v1186_v52, %v1186_v52  ;;  %v1088_v42 = vadd.f32 %v1087_v6, %v1018_v31  ;;  %v6041_v6 = vmax.f32 %v4776_v44, %v4779_v60  ;;  %v6042_v44 = vmax.f32 %v4783_v49, %v4798_v4  ;;  %v4248_v49 = vld [vmem:[%s6000_s3 + $0xc8] sm:$0xff] }
 0x1a9   :  { %3570 = vmatmul.msk.bf16.gmra.mxu3 %vm1341_vm2, %v5108_v40  ;;  %1754 = vmatpush.bf16.msrb.mxu1 %v4248_v49  ;;  %v6048_v49 = vld [vmem:[#allocation4_spill] sm:$0xff] }
 0x1aa   :  { %v1286_v45 = vunpack.c.l.b16 %v1210_v57  ;;  %v1135_v16 = vmax.f32 %v973_v36, %v1088_v42  ;;  %1868 = vmatpush.bf16.msrb.mxu3 %v4254_v9 }
 0x1ac   :  { %v5132_v23 = vpack.c.b16 %v1286_v45, %v1285_v20  ;;  %v1163_v46 = vadd.f32 %v4996_v19, %v1135_v16  ;;  %v935_v38 = vpop.f32.mrf.mxu3 }
 0x1ae   :  { %3538 = vmatmul.msk.bf16.gmra.mxu1 %vm1341_vm2, %v5132_v23  ;;  %v868_v30 = vpop.f32.mrf.mxu1  ;;  %v1187_v0 = vmax.f32 %v1163_v46, 0.0 }
 0x1af   :  { %v1089_v58 = vpop.f32.mrf.mxu2  ;;  %v1023_v25 = vpop.f32.mrf.mxu0 }
 0x1b0   :  { %v1090_v56 = vadd.f32 %v1089_v58, %v1020_v12  ;;  %v1211_v10 = vpack.c.bf16 %v1187_v0, %v1187_v0  ;;  %v936_v12 = vadd.f32 %v935_v38, %v866_v63 }
 0x1b2   :  { %v1136_v15 = vmax.f32 %v974_v59, %v1090_v56  ;;  %3613 = vmatmul.msk.bf16.gmra.mxu0 %vm1341_vm2, %v5108_v40  ;;  %v1287_v62 = vunpack.c.l.b16 %v1211_v10  ;;  %v977_v60 = vmax.f32 %v6042_v44, %v936_v12  ;;  %v6045_v12 = vmax.f32 %v4834_v61, %v4837_v17 }
 0x1b4   :  { %v1164_v28 = vadd.f32 %v4996_v19, %v1136_v15  ;;  %3645 = vmatmul.msk.bf16.gmra.mxu2 %vm1341_vm2, %v5084_v47  ;;  %v937_v34 = vpop.f32.mrf.mxu3  ;;  %v933_v47 = vadd.f32 %v932_v8, %v863_v13 }
 0x1b5   :  { %v938_v0 = vadd.f32 %v937_v34, %v868_v30  ;;  %v6043_v30 = vmax.f32 %v4802_v26, %v4808_v53  ;;  %v6044_v26 = vmax.f32 %v4812_v1, %v4830_v33 }
 0x1b6   :  { %v1188_v18 = vmax.f32 %v1164_v28, 0.0  ;;  %v871_v41 = vpop.f32.mrf.mxu1  ;;  %v976_v2 = vmax.f32 %v6041_v6, %v933_v47 }
 0x1b7   :  { %v1092_v5 = vpop.f32.mrf.mxu2  ;;  %v1025_v43 = vpop.f32.mrf.mxu0  ;;  %v978_v10 = vmax.f32 %v6043_v30, %v938_v0 }
 0x1b8   :  { %v1212_v31 = vpack.c.bf16 %v1188_v18, %v1188_v18  ;;  %v1093_v11 = vadd.f32 %v1092_v5, %v1023_v25 }
 0x1b9   :  { %3571 = vmatmul.msk.bf16.gmra.mxu3 %vm1341_vm2, %v5132_v23 }
 0x1ba   :  { %v1288_v29 = vunpack.c.l.b16 %v1212_v31  ;;  %v1137_v32 = vmax.f32 %v975_v22, %v1093_v11 }
 0x1bc   :  { %v5153_v51 = vpack.c.b16 %v1288_v29, %v1287_v62  ;;  %v1165_v21 = vadd.f32 %v4996_v19, %v1137_v32  ;;  %v940_v39 = vpop.f32.mrf.mxu3 }
 0x1bd   :  { %v941_v31 = vadd.f32 %v940_v39, %v871_v41 }
 0x1be   :  { %3539 = vmatmul.msk.bf16.gmra.mxu1 %vm1341_vm2, %v5153_v51  ;;  %v873_v36 = vpop.f32.mrf.mxu1  ;;  %v1189_v57 = vmax.f32 %v1165_v21, 0.0 }
 0x1bf   :  { %v1094_v52 = vpop.f32.mrf.mxu2  ;;  %v1028_v8 = vpop.f32.mrf.mxu0  ;;  %v979_v53 = vmax.f32 %v6044_v26, %v941_v31 }
 0x1c0   :  { %v1095_v13 = vadd.f32 %v1094_v52, %v1025_v43  ;;  %v1213_v45 = vpack.c.bf16 %v1189_v57, %v1189_v57 }
 0x1c2   :  { %v1138_v42 = vmax.f32 %v976_v2, %v1095_v13  ;;  %3614 = vmatmul.msk.bf16.gmra.mxu0 %vm1341_vm2, %v5132_v23  ;;  %v1289_v38 = vunpack.c.l.b16 %v1213_v45 }
 0x1c4   :  { %v1166_v20 = vadd.f32 %v4996_v19, %v1138_v42  ;;  %3646 = vmatmul.msk.bf16.gmra.mxu2 %vm1341_vm2, %v5108_v40  ;;  %v942_v54 = vpop.f32.mrf.mxu3 }
 0x1c5   :  { %v943_v2 = vadd.f32 %v942_v54, %v873_v36 }
 0x1c6   :  { %v1190_v16 = vmax.f32 %v1166_v20, 0.0  ;;  %v876_v7 = vpop.f32.mrf.mxu1 }
 0x1c7   :  { %v1097_v46 = vpop.f32.mrf.mxu2  ;;  %v1030_v63 = vpop.f32.mrf.mxu0  ;;  %v980_v20 = vmax.f32 %v6045_v12, %v943_v2  ;;  %v4282_v2 = vld [vmem:[%s6000_s3 + $0x1d8] sm:$0xff] }
 0x1c8   :  { %v1214_v58 = vpack.c.bf16 %v1190_v16, %v1190_v16  ;;  %v1098_v59 = vadd.f32 %v1097_v46, %v1028_v8  ;;  %v4253_v8 = vld [vmem:[%s6000_s3 + $0xf0] sm:$0xff]  ;;  %v6046_v16 = vmax.f32 %v4876_v37, %v4894_v55 }
 0x1c9   :  { %3572 = vmatmul.msk.bf16.gmra.mxu3 %vm1341_vm2, %v5153_v51 }
 0x1ca   :  { %v1290_v56 = vunpack.c.l.b16 %v1214_v58  ;;  %v1139_v25 = vmax.f32 %v977_v60, %v1098_v59  ;;  %1869 = vmatpush.bf16.msrb.mxu3 %v4253_v8  ;;  %v4247_v58 = vld [vmem:[%s6000_s3 + $0xc0] sm:$0xff] }
 0x1cb   :  { %1755 = vmatpush.bf16.msrb.mxu1 %v4247_v58 }
 0x1cc   :  { %v5174_v15 = vpack.c.b16 %v1290_v56, %v1289_v38  ;;  %v1167_v4 = vadd.f32 %v4996_v19, %v1139_v25  ;;  %v945_v35 = vpop.f32.mrf.mxu3  ;;  %v6047_v56 = vmax.f32 %v4841_v50, %v4856_v14  ;;  %v4270_v50 = vld [vmem:[%s6000_s3 + $0x178] sm:$0xff] }
 0x1cd   :  { %v946_v59 = vadd.f32 %v945_v35, %v876_v7  ;;  %2100 = vmatpush.bf16.msrb.mxu2 %v4270_v50 }
 0x1ce   :  { %3540 = vmatmul.msk.bf16.gmra.mxu1 %vm1341_vm2, %v5174_v15  ;;  %v878_v18 = vpop.f32.mrf.mxu1  ;;  %v1191_v3 = vmax.f32 %v1167_v4, 0.0  ;;  %v6049_v4 = vmax.f32 %v4898_v27, %v6048_v49  ;;  %v4264_v27 = vld [vmem:[%s6000_s3 + $0x148] sm:$0xff]  ;;  %2336 = vmatpush.bf16.msra.mxu3 %v4282_v2 }
 0x1cf   :  { %v1099_v28 = vpop.f32.mrf.mxu2  ;;  %v1033_v5 = vpop.f32.mrf.mxu0  ;;  %v981_v25 = vmax.f32 %v6047_v56, %v946_v59  ;;  %1986 = vmatpush.bf16.msrb.mxu0 %v4264_v27 }
 0x1d0   :  { %v1100_v34 = vadd.f32 %v1099_v28, %v1030_v63  ;;  %v1215_v43 = vpack.c.bf16 %v1191_v3, %v1191_v3 }
 0x1d2   :  { %v1140_v22 = vmax.f32 %v978_v10, %v1100_v34  ;;  %3615 = vmatmul.msk.bf16.gmra.mxu0 %vm1341_vm2, %v5153_v51  ;;  %v1291_v39 = vunpack.c.l.b16 %v1215_v43  ;;  %v6051_v43 = vld [vmem:[#allocation3_spill] sm:$0xff] }
 0x1d4   :  { %v1168_v11 = vadd.f32 %v4996_v19, %v1140_v22  ;;  %3647 = vmatmul.msk.bf16.gmra.mxu2 %vm1341_vm2, %v5132_v23  ;;  %v947_v29 = vpop.f32.mrf.mxu3 }
 0x1d6   :  { %v1192_v62 = vmax.f32 %v1168_v11, 0.0  ;;  %v881_v48 = vpop.f32.mrf.mxu1 }
 0x1d7   :  { %v1102_v32 = vpop.f32.mrf.mxu2  ;;  %v1035_v41 = vpop.f32.mrf.mxu0 }
 0x1d8   :  { %v1216_v47 = vpack.c.bf16 %v1192_v62, %v1192_v62  ;;  %v1103_v21 = vadd.f32 %v1102_v32, %v1033_v5  ;;  %v948_v5 = vadd.f32 %v947_v29, %v878_v18  ;;  %v6050_v18 = vld [vmem:[#allocation2_spill] sm:$0xff] }
 0x1d9   :  { %3573 = vmatmul.msk.bf16.gmra.mxu3 %vm1341_vm2, %v5174_v15  ;;  %v6052_v62 = vmax.f32 %v6050_v18, %v6051_v43 }
 0x1da   :  { %v1292_v52 = vunpack.c.l.b16 %v1216_v47  ;;  %v1141_v6 = vmax.f32 %v979_v53, %v1103_v21  ;;  %v4263_v53 = vld [vmem:[%s6000_s3 + $0x140] sm:$0xff]  ;;  %v4269_v47 = vld [vmem:[%s6000_s3 + $0x170] sm:$0xff] }
 0x1db   :  { %v982_v29 = vmax.f32 %v6052_v62, %v948_v5  ;;  %2101 = vmatpush.bf16.msrb.mxu2 %v4269_v47  ;;  %1987 = vmatpush.bf16.msrb.mxu0 %v4263_v53  ;;  %v6061_v47 = vld [vmem:[#allocation10_spill] sm:$0xff] }
 0x1dc   :  { %v5198_v13 = vpack.c.b16 %v1292_v52, %v1291_v39  ;;  %v1169_v1 = vadd.f32 %v4996_v19, %v1141_v6  ;;  %v950_v33 = vpop.f32.mrf.mxu3 }
 0x1dd   :  { %v951_v57 = vadd.f32 %v950_v33, %v881_v48  ;;  %v6053_v48 = vld [vmem:[#allocation5_spill] sm:$0xff] }
 0x1de   :  { %3541 = vmatmul.msk.bf16.gmra.mxu1 %vm1341_vm2, %v5198_v13  ;;  %v883_v36 = vpop.f32.mrf.mxu1  ;;  %v1193_v44 = vmax.f32 %v1169_v1, 0.0  ;;  %v6054_v21 = vmax.f32 %v4905_v24, %v6053_v48  ;;  %v4262_v24 = vld [vmem:[%s6000_s3 + $0x138] sm:$0xff]  ;;  %v4268_v1 = vld [vmem:[%s6000_s3 + $0x168] sm:$0xff] }
 0x1df   :  { %v1104_v42 = vpop.f32.mrf.mxu2  ;;  %v5212_v54 = vmax.f32 %v6046_v16, %v951_v57  ;;  %v1038_v46 = vpop.f32.mrf.mxu0  ;;  %2102 = vmatpush.bf16.msrb.mxu2 %v4268_v1  ;;  %1988 = vmatpush.bf16.msrb.mxu0 %v4262_v24  ;;  %v4261_v16 = vld [vmem:[%s6000_s3 + $0x130] sm:$0xff]  ;;  %v4275_v24 = vld [vmem:[%s6000_s3 + $0x1a0] sm:$0xff] }
 0x1e0   :  { %v1105_v45 = vadd.f32 %v1104_v42, %v1035_v41  ;;  %v1217_v55 = vpack.c.bf16 %v1193_v44, %v1193_v44  ;;  %v6055_v44 = vld [vmem:[#allocation6_spill] sm:$0xff] }
 0x1e2   :  { %v1142_v60 = vmax.f32 %v980_v20, %v1105_v45  ;;  %3616 = vmatmul.msk.bf16.gmra.mxu0 %vm1341_vm2, %v5174_v15  ;;  %v1293_v30 = vunpack.c.l.b16 %v1217_v55 }
 0x1e3   :  { %1989 = vmatpush.bf16.msrb.mxu0 %v4261_v16 }
 0x1e4   :  { %v1170_v63 = vadd.f32 %v4996_v19, %v1142_v60  ;;  %3648 = vmatmul.msk.bf16.gmra.mxu2 %vm1341_vm2, %v5153_v51  ;;  %v952_v17 = vpop.f32.mrf.mxu3  ;;  %v6056_v60 = vld [vmem:[#allocation7_spill] sm:$0xff] }
 0x1e5   :  { %v953_v37 = vadd.f32 %v952_v17, %v883_v36  ;;  %v6057_v58 = vmax.f32 %v6055_v44, %v6056_v60 }
 0x1e6   :  { %v1194_v61 = vmax.f32 %v1170_v63, 0.0  ;;  %v886_v7 = vpop.f32.mrf.mxu1 }
 0x1e7   :  { %v1107_v38 = vpop.f32.mrf.mxu2  ;;  %v5228_v35 = vmax.f32 %v6049_v4, %v953_v37  ;;  %v1040_v28 = vpop.f32.mrf.mxu0 }
 0x1e8   :  { %v1218_v0 = vpack.c.bf16 %v1194_v61, %v1194_v61  ;;  %v1108_v9 = vadd.f32 %v1107_v38, %v1038_v46  ;;  %v4267_v46 = vld [vmem:[%s6000_s3 + $0x160] sm:$0xff]  ;;  %v4276_v38 = vld [vmem:[%s6000_s3 + $0x1a8] sm:$0xff] }
 0x1e9   :  { %3574 = vmatmul.msk.bf16.gmra.mxu3 %vm1341_vm2, %v5198_v13  ;;  %2103 = vmatpush.bf16.msrb.mxu2 %v4267_v46 }
 0x1ea   :  { %v1294_v10 = vunpack.c.l.b16 %v1218_v0  ;;  %v1143_v34 = vmax.f32 %v981_v25, %v1108_v9  ;;  %2222 = vmatpush.bf16.msra.mxu1 %v4276_v38  ;;  %v4260_v25 = vld [vmem:[%s6000_s3 + $0x128] sm:$0xff] }
 0x1eb   :  { %1990 = vmatpush.bf16.msrb.mxu0 %v4260_v25 }
 0x1ec   :  { %v5232_v3 = vpack.c.b16 %v1294_v10, %v1293_v30  ;;  %v1171_v14 = vadd.f32 %v4996_v19, %v1143_v34  ;;  %v955_v22 = vpop.f32.mrf.mxu3  ;;  %v4265_v30 = vld [vmem:[%s6000_s3 + $0x150] sm:$0xff]  ;;  %v6059_v34 = vld [vmem:[#allocation9_spill] sm:$0xff] }
 0x1ed   :  { %v956_v31 = vadd.f32 %v955_v22, %v886_v7  ;;  %v6058_v10 = vld [vmem:[#allocation8_spill] sm:$0xff] }
 0x1ee   :  { %3542 = vmatmul.msk.bf16.gmra.mxu1 %vm1341_vm2, %v5232_v3  ;;  %v888_v32 = vpop.f32.mrf.mxu1  ;;  %v1195_v52 = vmax.f32 %v1171_v14, 0.0  ;;  %v6060_v5 = vmax.f32 %v6058_v10, %v6059_v34 }
 0x1ef   :  { %v1109_v11 = vpop.f32.mrf.mxu2  ;;  %v5255_v41 = vmax.f32 %v6054_v21, %v956_v31  ;;  %v1043_v39 = vpop.f32.mrf.mxu0  ;;  %2223 = vmatpush.bf16.msra.mxu1 %v4275_v24 }
 0x1f0   :  { %v1110_v26 = vadd.f32 %v1109_v11, %v1040_v28  ;;  %v1219_v33 = vpack.c.bf16 %v1195_v52, %v1195_v52  ;;  %v4259_v28 = vld [vmem:[%s6000_s3 + $0x120] sm:$0xff] }
 0x1f1   :  { %1991 = vmatpush.bf16.msrb.mxu0 %v4259_v28 }
 0x1f2   :  { %v1144_v6 = vmax.f32 %v982_v29, %v1110_v26  ;;  %3617 = vmatmul.msk.bf16.gmra.mxu0 %vm1341_vm2, %v5198_v13  ;;  %v1295_v61 = vunpack.c.l.b16 %v1219_v33 }
 0x1f4   :  { %v1172_v8 = vadd.f32 %v4996_v19, %v1144_v6  ;;  %3649 = vmatmul.msk.bf16.gmra.mxu2 %vm1341_vm2, %v5174_v15  ;;  %v957_v42 = vpop.f32.mrf.mxu3 }
 0x1f5   :  { %v958_v12 = vadd.f32 %v957_v42, %v888_v32 }
 0x1f6   :  { %v1196_v57 = vmax.f32 %v1172_v8, 0.0  ;;  %v891_v63 = vpop.f32.mrf.mxu1  ;;  %v4281_v8 = vld [vmem:[%s6000_s3 + $0x1d0] sm:$0xff] }
 0x1f7   :  { %v1112_v20 = vpop.f32.mrf.mxu2  ;;  %v5280_v59 = vmax.f32 %v6057_v58, %v958_v12  ;;  %v1045_v55 = vpop.f32.mrf.mxu0  ;;  %2337 = vmatpush.bf16.msra.mxu3 %v4281_v8 }
 0x1f8   :  { %v1220_v36 = vpack.c.bf16 %v1196_v57, %v1196_v57  ;;  %v1113_v45 = vadd.f32 %v1112_v20, %v1043_v39 }
 0x1f9   :  { %3575 = vmatmul.msk.bf16.gmra.mxu3 %vm1341_vm2, %v5232_v3 }
 0x1fa   :  { %v1296_v17 = vunpack.c.l.b16 %v1220_v36  ;;  %v1145_v37 = vmax.f32 %v5212_v54, %v1113_v45  ;;  %v4266_v54 = vld [vmem:[%s6000_s3 + $0x158] sm:$0xff] }
 0x1fb   :  { %2104 = vmatpush.bf16.msrb.mxu2 %v4266_v54 }
 0x1fc   :  { %v5288_v56 = vpack.c.b16 %v1296_v17, %v1295_v61  ;;  %v1173_v0 = vadd.f32 %v4996_v19, %v1145_v37  ;;  %v960_v7 = vpop.f32.mrf.mxu3  ;;  %v4280_v61 = vld [vmem:[%s6000_s3 + $0x1c8] sm:$0xff] }
 0x1fd   :  { %v961_v9 = vadd.f32 %v960_v7, %v891_v63  ;;  %2338 = vmatpush.bf16.msra.mxu3 %v4280_v61  ;;  %v4274_v7 = vld [vmem:[%s6000_s3 + $0x198] sm:$0xff]  ;;  %v4272_v61 = vld [vmem:[%s6000_s3 + $0x188] sm:$0xff] }
 0x1fe   :  { %3543 = vmatmul.msk.bf16.gmra.mxu1 %vm1341_vm2, %v5288_v56  ;;  %v1197_v14 = vmax.f32 %v1173_v0, 0.0  ;;  %v893_v31 = vpop.f32.mrf.mxu1 }
 0x1ff   :  { %v1114_v49 = vpop.f32.mrf.mxu2  ;;  %v987_v50 = vmax.f32 %v6060_v5, %v961_v9  ;;  %v1048_v27 = vpop.f32.mrf.mxu0  ;;  %2105 = vmatpush.bf16.msrb.mxu2 %v4265_v30  ;;  %2224 = vmatpush.bf16.msra.mxu1 %v4274_v7 }
 0x200   :  { %v1115_v4 = vadd.f32 %v1114_v49, %v1045_v55  ;;  %v1221_v18 = vpack.c.bf16 %v1197_v14, %v1197_v14 }
 0x202   :  { %v1146_v22 = vmax.f32 %v5228_v35, %v1115_v4  ;;  %3618 = vmatmul.msk.bf16.gmra.mxu0 %vm1341_vm2, %v5232_v3  ;;  %v6062_v35 = vld [vmem:[#allocation11_spill] sm:$0xff]  ;;  %v1706_v52 = vunpack.c.l.b16 %v1221_v18 }
 0x203   :  { %v6063_v48 = vmax.f32 %v6061_v47, %v6062_v35 }
 0x204   :  { %v1174_v11 = vadd.f32 %v4996_v19, %v1146_v22  ;;  %3650 = vmatmul.msk.bf16.gmra.mxu2 %vm1341_vm2, %v5198_v13  ;;  %v962_v62 = vpop.f32.mrf.mxu3 }
 0x205   :  { %v963_v29 = vadd.f32 %v962_v62, %v893_v31 }
 0x206   :  { %v1198_v43 = vmax.f32 %v1174_v11, 0.0 }
 0x207   :  { %v1117_v32 = vpop.f32.mrf.mxu2  ;;  %v988_v21 = vmax.f32 %v6063_v48, %v963_v29  ;;  %v1050_v39 = vpop.f32.mrf.mxu0 }
 0x208   :  { %v1222_v26 = vpack.c.bf16 %v1198_v43, %v1198_v43  ;;  %v1118_v53 = vadd.f32 %v1117_v32, %v1048_v27 }
 0x209   :  { %3732 = vmatmul.msk.bf16.vlgmr.msrb.gmra.mxu3 %vm1341_vm2, %v5108_v40 }
 0x20a   :  { %v1707_v6 = vunpack.c.l.b16 %v1222_v26  ;;  %v1147_v2 = vmax.f32 %v5255_v41, %v1118_v53 }
 0x20b   :  { %v1375_v1 = vpop.f32.mrf.mxu1 }
 0x20c   :  { %v5326_v33 = vpack.c.b16 %v1707_v6, %v1706_v52  ;;  %v1175_v57 = vadd.f32 %v4996_v19, %v1147_v2  ;;  %v1468_v42 = vpop.f32.mrf.mxu3  ;;  %v4273_v52 = vld [vmem:[%s6000_s3 + $0x190] sm:$0xff] }
 0x20d   :  { %v5331_v41 = vadd.f32 %v1468_v42, %v1375_v1  ;;  %2225 = vmatpush.bf16.msra.mxu1 %v4273_v52 }
 0x20e   :  { %3688 = vmatmul.msk.bf16.vlgmr.msrb.gmra.mxu1 %vm1341_vm2, %v5108_v40  ;;  %v1199_v45 = vmax.f32 %v1175_v57, 0.0 }
 0x20f   :  { %v1119_v12 = vpop.f32.mrf.mxu2  ;;  %v1053_v36 = vpop.f32.mrf.mxu0 }
 0x210   :  { %v1120_v20 = vadd.f32 %v1119_v12, %v1050_v39  ;;  %v1223_v60 = vpack.c.bf16 %v1199_v45, %v1199_v45 }
 0x211   :  { %2226 = vmatpush.bf16.msra.mxu1 %v4272_v61 }
 0x212   :  { %v1148_v16 = vmax.f32 %v5280_v59, %v1120_v20  ;;  %3619 = vmatmul.msk.bf16.gmra.mxu0 %vm1341_vm2, %v5288_v56  ;;  %v1942_v38 = vunpack.c.l.b16 %v1223_v60 }
 0x213   :  { %v1377_v46 = vpop.f32.mrf.mxu1 }
 0x214   :  { %v1176_v44 = vadd.f32 %v4996_v19, %v1148_v16  ;;  %3651 = vmatmul.msk.bf16.gmra.mxu2 %vm1341_vm2, %v5232_v3  ;;  %v1470_v40 = vpop.f32.mrf.mxu3 }
 0x215   :  { %v5339_v63 = vadd.f32 %v1470_v40, %v1377_v46  ;;  %v4278_v46 = vld [vmem:[%s6000_s3 + $0x1b8] sm:$0xff] }
 0x216   :  { %v1200_v58 = vmax.f32 %v1176_v44, 0.0 }
 0x217   :  { %v1122_v55 = vpop.f32.mrf.mxu2  ;;  %v1055_v37 = vpop.f32.mrf.mxu0 }
 0x218   :  { %v1224_v59 = vpack.c.bf16 %v1200_v58, %v1200_v58  ;;  %v1123_v17 = vadd.f32 %v1122_v55, %v1053_v36 }
 0x219   :  { %3733 = vmatmul.msk.bf16.gmra.mxu3 %vm1341_vm2, %v5132_v23 }
 0x21a   :  { %v1943_v25 = vunpack.c.l.b16 %v1224_v59  ;;  %v1149_v54 = vmax.f32 %v987_v50, %v1123_v17 }
 0x21b   :  { %v1380_v0 = vpop.f32.mrf.mxu1 }
 0x21c   :  { %v5349_v9 = vpack.c.b16 %v1943_v25, %v1942_v38  ;;  %v1177_v49 = vadd.f32 %v4996_v19, %v1149_v54  ;;  %v1473_v4 = vpop.f32.mrf.mxu3 }
 0x21d   :  { %v5354_v28 = vadd.f32 %v1473_v4, %v1380_v0 }
 0x21e   :  { %3689 = vmatmul.msk.bf16.gmra.mxu1 %vm1341_vm2, %v5132_v23  ;;  %v1201_v5 = vmax.f32 %v1177_v49, 0.0 }
 0x21f   :  { %v1124_v30 = vpop.f32.mrf.mxu2  ;;  %v1566_v34 = vpop.f32.mrf.mxu0 }
 0x220   :  { %v1125_v10 = vadd.f32 %v1124_v30, %v1055_v37  ;;  %v1225_v22 = vpack.c.bf16 %v1201_v5, %v1201_v5 }
 0x222   :  { %v1150_v50 = vmax.f32 %v988_v21, %v1125_v10  ;;  %3776 = vmatmul.msk.bf16.vlgmr.msrb.gmra.mxu0 %vm1341_vm2, %v5132_v23  ;;  %v2178_v26 = vunpack.c.l.b16 %v1225_v22 }
 0x223   :  { %v1382_v27 = vpop.f32.mrf.mxu1 }
 0x224   :  { %v1178_v14 = vadd.f32 %v4996_v19, %v1150_v50  ;;  %3820 = vmatmul.msk.bf16.vlgmr.msrb.gmra.mxu2 %vm1341_vm2, %v5132_v23  ;;  %v1475_v11 = vpop.f32.mrf.mxu3  ;;  %v4279_v23 = vld [vmem:[%s6000_s3 + $0x1c0] sm:$0xff] }
 0x225   :  { %v5361_v18 = vadd.f32 %v1475_v11, %v1382_v27  ;;  %2339 = vmatpush.bf16.msra.mxu3 %v4279_v23 }
 0x226   :  { %v1202_v31 = vmax.f32 %v1178_v14, 0.0  ;;  %v4271_v14 = vld [vmem:[%s6000_s3 + $0x180] sm:$0xff] }
 0x227   :  { %v1651_v43 = vpop.f32.mrf.mxu2  ;;  %v1568_v32 = vpop.f32.mrf.mxu0  ;;  %2227 = vmatpush.bf16.msra.mxu1 %v4271_v14 }
 0x228   :  { %v1226_v62 = vpack.c.bf16 %v1202_v31, %v1202_v31  ;;  %v5363_v29 = vadd.f32 %v1651_v43, %v1566_v34  ;;  %v4277_v34 = vld [vmem:[%s6000_s3 + $0x1b0] sm:$0xff] }
 0x229   :  { %3734 = vmatmul.msk.bf16.gmra.mxu3 %vm1341_vm2, %v5153_v51 }
 0x22a   :  { %v2179_v53 = vunpack.c.l.b16 %v1226_v62  ;;  %2340 = vmatpush.bf16.msra.mxu3 %v4278_v46 }
 0x22b   :  { %v1385_v19 = vpop.f32.mrf.mxu1 }
 0x22c   :  { %v5370_v47 = vpack.c.b16 %v2179_v53, %v2178_v26  ;;  %v1478_v35 = vpop.f32.mrf.mxu3 }
 0x22d   :  { %v5374_v48 = vadd.f32 %v1478_v35, %v1385_v19 }
 0x22e   :  { %3690 = vmatmul.msk.bf16.gmra.mxu1 %vm1341_vm2, %v5153_v51  ;;  %2341 = vmatpush.bf16.msra.mxu3 %v4277_v34 }
 0x22f   :  { %v1653_v21 = vpop.f32.mrf.mxu2  ;;  %v1571_v6 = vpop.f32.mrf.mxu0 }
 0x230   :  { %v5376_v39 = vadd.f32 %v1653_v21, %v1568_v32 }
 0x232   :  { %3777 = vmatmul.msk.bf16.gmra.mxu0 %vm1341_vm2, %v5153_v51 }
 0x233   :  { %v1387_v2 = vpop.f32.mrf.mxu1 }
 0x234   :  { %3821 = vmatmul.msk.bf16.gmra.mxu2 %vm1341_vm2, %v5153_v51  ;;  %v1480_v8 = vpop.f32.mrf.mxu3 }
 0x235   :  { %v5385_v24 = vadd.f32 %v1480_v8, %v1387_v2 }
 0x237   :  { %v1656_v1 = vpop.f32.mrf.mxu2  ;;  %v1573_v42 = vpop.f32.mrf.mxu0 }
 0x238   :  { %v5387_v57 = vadd.f32 %v1656_v1, %v1571_v6 }
 0x239   :  { %3735 = vmatmul.msk.bf16.gmra.mxu3 %vm1341_vm2, %v5174_v15 }
 0x23b   :  { %v1390_v12 = vpop.f32.mrf.mxu1 }
 0x23c   :  { %v1483_v20 = vpop.f32.mrf.mxu3 }
 0x23d   :  { %v5393_v36 = vadd.f32 %v1483_v20, %v1390_v12 }
 0x23e   :  { %3691 = vmatmul.msk.bf16.gmra.mxu1 %vm1341_vm2, %v5174_v15 }
 0x23f   :  { %v1658_v45 = vpop.f32.mrf.mxu2  ;;  %v1576_v44 = vpop.f32.mrf.mxu0 }
 0x240   :  { %v5395_v16 = vadd.f32 %v1658_v45, %v1573_v42 }
 0x242   :  { %3778 = vmatmul.msk.bf16.gmra.mxu0 %vm1341_vm2, %v5174_v15 }
 0x243   :  { %v1392_v60 = vpop.f32.mrf.mxu1 }
 0x244   :  { %3822 = vmatmul.msk.bf16.gmra.mxu2 %vm1341_vm2, %v5174_v15  ;;  %v1485_v58 = vpop.f32.mrf.mxu3 }
 0x245   :  { %v5404_v40 = vadd.f32 %v1485_v58, %v1392_v60 }
 0x247   :  { %v1661_v55 = vpop.f32.mrf.mxu2  ;;  %v1578_v17 = vpop.f32.mrf.mxu0 }
 0x248   :  { %v5409_v59 = vadd.f32 %v1661_v55, %v1576_v44 }
 0x249   :  { %3736 = vmatmul.msk.bf16.gmra.mxu3 %vm1341_vm2, %v5198_v13 }
 0x24b   :  { %v1395_v37 = vpop.f32.mrf.mxu1 }
 0x24c   :  { %v1488_v38 = vpop.f32.mrf.mxu3 }
 0x24d   :  { %v5415_v25 = vadd.f32 %v1488_v38, %v1395_v37 }
 0x24e   :  { %3692 = vmatmul.msk.bf16.gmra.mxu1 %vm1341_vm2, %v5198_v13 }
 0x24f   :  { %v1663_v54 = vpop.f32.mrf.mxu2  ;;  %v1581_v7 = vpop.f32.mrf.mxu0 }
 0x250   :  { %v5417_v0 = vadd.f32 %v1663_v54, %v1578_v17 }
 0x252   :  { %3779 = vmatmul.msk.bf16.gmra.mxu0 %vm1341_vm2, %v5198_v13 }
 0x253   :  { %v1397_v49 = vpop.f32.mrf.mxu1 }
 0x254   :  { %3823 = vmatmul.msk.bf16.gmra.mxu2 %vm1341_vm2, %v5198_v13  ;;  %v1490_v4 = vpop.f32.mrf.mxu3 }
 0x255   :  { %v5423_v30 = vadd.f32 %v1490_v4, %v1397_v49 }
 0x257   :  { %v1666_v10 = vpop.f32.mrf.mxu2  ;;  %v1583_v50 = vpop.f32.mrf.mxu0 }
 0x258   :  { %v5428_v5 = vadd.f32 %v1666_v10, %v1581_v7 }
 0x259   :  { %3737 = vmatmul.msk.bf16.gmra.mxu3 %vm1341_vm2, %v5232_v3 }
 0x25b   :  { %v1400_v27 = vpop.f32.mrf.mxu1 }
 0x25c   :  { %v1493_v22 = vpop.f32.mrf.mxu3 }
 0x25d   :  { %v5437_v31 = vadd.f32 %v1493_v22, %v1400_v27 }
 0x25e   :  { %3693 = vmatmul.msk.bf16.gmra.mxu1 %vm1341_vm2, %v5232_v3 }
 0x25f   :  { %v1668_v11 = vpop.f32.mrf.mxu2  ;;  %v1586_v62 = vpop.f32.mrf.mxu0 }
 0x260   :  { %v5439_v43 = vadd.f32 %v1668_v11, %v1583_v50 }
 0x262   :  { %3780 = vmatmul.msk.bf16.gmra.mxu0 %vm1341_vm2, %v5232_v3 }
 0x263   :  { %v1402_v32 = vpop.f32.mrf.mxu1 }
 0x264   :  { %3824 = vmatmul.msk.bf16.gmra.mxu2 %vm1341_vm2, %v5232_v3  ;;  %v1495_v26 = vpop.f32.mrf.mxu3 }
 0x265   :  { %v5445_v53 = vadd.f32 %v1495_v26, %v1402_v32 }
 0x267   :  { %v1671_v19 = vpop.f32.mrf.mxu2  ;;  %v5449_v35 = vpop.f32.mrf.mxu0 }
 0x268   :  { %v5447_v23 = vadd.f32 %v1671_v19, %v1586_v62 }
 0x269   :  { %3738 = vmatmul.msk.bf16.gmra.mxu3 %vm1341_vm2, %v5288_v56 }
 0x26b   :  { %v1405_v21 = vpop.f32.mrf.mxu1 }
 0x26c   :  { %v1498_v52 = vpop.f32.mrf.mxu3 }
 0x26d   :  { %v5455_v6 = vadd.f32 %v1498_v52, %v1405_v21 }
 0x26e   :  { %3694 = vmatmul.msk.bf16.gmra.mxu1 %vm1341_vm2, %v5288_v56 }
 0x26f   :  { %v5457_v2 = vpop.f32.mrf.mxu2  ;;  %v1591_v8 = vpop.f32.mrf.mxu0 }
 0x272   :  { %3781 = vmatmul.msk.bf16.gmra.mxu0 %vm1341_vm2, %v5288_v56 }
 0x273   :  { %v1407_v1 = vpop.f32.mrf.mxu1 }
 0x274   :  { %3825 = vmatmul.msk.bf16.gmra.mxu2 %vm1341_vm2, %v5288_v56  ;;  %v1500_v42 = vpop.f32.mrf.mxu3 }
 0x275   :  { %v5463_v12 = vadd.f32 %v1500_v42, %v1407_v1 }
 0x277   :  { %v1676_v20 = vpop.f32.mrf.mxu2  ;;  %v5467_v46 = vpop.f32.mrf.mxu0 }
 0x278   :  { %v5465_v45 = vadd.f32 %v1676_v20, %v1591_v8 }
 0x279   :  { %3739 = vmatmul.msk.bf16.gmra.mxu3 %vm1341_vm2, %v5326_v33 }
 0x27b   :  { %v1410_v44 = vpop.f32.mrf.mxu1 }
 0x27c   :  { %v1503_v60 = vpop.f32.mrf.mxu3 }
 0x27d   :  { %v5473_v58 = vadd.f32 %v1503_v60, %v1410_v44 }
 0x27e   :  { %3695 = vmatmul.msk.bf16.gmra.mxu1 %vm1341_vm2, %v5326_v33 }
 0x27f   :  { %v5475_v55 = vpop.f32.mrf.mxu2  ;;  %v1596_v61 = vpop.f32.mrf.mxu0 }
 0x282   :  { %3782 = vmatmul.msk.bf16.gmra.mxu0 %vm1341_vm2, %v5326_v33 }
 0x283   :  { %v1412_v17 = vpop.f32.mrf.mxu1 }
 0x284   :  { %3826 = vmatmul.msk.bf16.gmra.mxu2 %vm1341_vm2, %v5326_v33  ;;  %v1505_v37 = vpop.f32.mrf.mxu3 }
 0x285   :  { %v5481_v38 = vadd.f32 %v1505_v37, %v1412_v17 }
 0x287   :  { %v1681_v54 = vpop.f32.mrf.mxu2  ;;  %v5485_v49 = vpop.f32.mrf.mxu0 }
 0x288   :  { %v5483_v7 = vadd.f32 %v1681_v54, %v1596_v61 }
 0x289   :  { %3908 = vmatmul.msk.bf16.vlgmr.msra.gmra.mxu3 %vm1341_vm2, %v5153_v51 }
 0x28b   :  { %v1757_v4 = vpop.f32.mrf.mxu1 }
 0x28c   :  { %v1797_v10 = vadd.f32 %v1757_v4, %v5331_v41  ;;  %v1871_v34 = vpop.f32.mrf.mxu3 }
 0x28d   :  { %v1911_v50 = vadd.f32 %v1871_v34, %v5363_v29 }
 0x28e   :  { %3864 = vmatmul.msk.bf16.vlgmr.msra.gmra.mxu1 %vm1341_vm2, %v5153_v51 }
 0x28f   :  { %v5493_v27 = vpop.f32.mrf.mxu2  ;;  %v1601_v14 = vpop.f32.mrf.mxu0 }
 0x292   :  { %3783 = vmatmul.msk.bf16.gmra.mxu0 %vm1341_vm2, %v5349_v9 }
 0x293   :  { %v1759_v22 = vpop.f32.mrf.mxu1 }
 0x294   :  { %v5496_v11 = vadd.f32 %v1759_v22, %v5339_v63  ;;  %3827 = vmatmul.msk.bf16.gmra.mxu2 %vm1341_vm2, %v5349_v9  ;;  %v1873_v41 = vpop.f32.mrf.mxu3  ;;  %v3950_v22 = vld [vmem:[%s6003_s5 + $0x70] sm:$0xf] }
 0x295   :  { %v5503_v62 = vadd.f32 %v1873_v41, %v5376_v39  ;;  %v4298_v41 = vld [vmem:[%s6003_s5 + $0x74] sm:$0xf0] }
 0x297   :  { %v1686_v51 = vpop.f32.mrf.mxu2  ;;  %v5507_v29 = vpop.f32.mrf.mxu0 }
 0x298   :  { %v5505_v32 = vadd.f32 %v1686_v51, %v1601_v14  ;;  %v3951_v51 = vor.u32 %v4298_v41, %v3950_v22 }
 0x299   :  { %3909 = vmatmul.msk.bf16.gmra.mxu3 %vm1341_vm2, %v5174_v15 }
 0x29a   :  { %2569 = vmatpush.bf16.msra.mxu0 %v3951_v51 }
 0x29b   :  { %v1762_v63 = vpop.f32.mrf.mxu1 }
 0x29c   :  { %v5512_v26 = vadd.f32 %v1762_v63, %v5354_v28  ;;  %v1876_v19 = vpop.f32.mrf.mxu3 }
 0x29d   :  { %v5517_v21 = vadd.f32 %v1876_v19, %v5387_v57 }
 0x29e   :  { %3865 = vmatmul.msk.bf16.gmra.mxu1 %vm1341_vm2, %v5174_v15 }
 0x29f   :  { %v5519_v39 = vpop.f32.mrf.mxu2  ;;  %v1993_v52 = vpop.f32.mrf.mxu0 }
 0x2a0   :  { %v5521_v8 = vadd.f32 %v1993_v52, %v1797_v10 }
 0x2a3   :  { %v1764_v1 = vpop.f32.mrf.mxu1 }
 0x2a4   :  { %v5524_v42 = vadd.f32 %v1764_v1, %v5361_v18  ;;  %v1878_v20 = vpop.f32.mrf.mxu3 }
 0x2a5   :  { %v5527_v28 = vadd.f32 %v1878_v20, %v5395_v16 }
 0x2a7   :  { %v2107_v44 = vpop.f32.mrf.mxu2 }
 0x2a8   :  { %v5529_v60 = vadd.f32 %v2107_v44, %v1911_v50  ;;  %v3952_v50 = vld [vmem:[%s6003_s5 + $0x78] sm:$0xf0] }
 0x2a9   :  { %3910 = vmatmul.msk.bf16.gmra.mxu3 %vm1341_vm2, %v5198_v13 }
 0x2ab   :  { %v1767_v15 = vpop.f32.mrf.mxu1 }
 0x2ac   :  { %v5534_v57 = vadd.f32 %v1767_v15, %v5374_v48  ;;  %v1881_v61 = vpop.f32.mrf.mxu3  ;;  %v4295_v15 = vld [vmem:[%s6003_s5 + $0x64] sm:$0xf] }
 0x2ad   :  { %v5539_v18 = vadd.f32 %v1881_v61, %v5409_v59 }
 0x2ae   :  { %3866 = vmatmul.msk.bf16.gmra.mxu1 %vm1341_vm2, %v5198_v13 }
 0x2b3   :  { %v1769_v17 = vpop.f32.mrf.mxu1 }
 0x2b4   :  { %v5542_v16 = vadd.f32 %v1769_v17, %v5385_v24  ;;  %v1883_v37 = vpop.f32.mrf.mxu3 }
 0x2b5   :  { %v5545_v54 = vadd.f32 %v1883_v37, %v5417_v0  ;;  %v1995_v37 = vpop.f32.mrf.mxu0 }
 0x2b9   :  { %3911 = vmatmul.msk.bf16.gmra.mxu3 %vm1341_vm2, %v5232_v3 }
 0x2bb   :  { %v1772_v48 = vpop.f32.mrf.mxu1 }
 0x2bc   :  { %v5550_v4 = vadd.f32 %v1772_v48, %v5393_v36  ;;  %v1886_v10 = vpop.f32.mrf.mxu3  ;;  %v4297_v36 = vld [vmem:[%s6003_s5 + $0x74] sm:$0xf] }
 0x2bd   :  { %v5555_v13 = vadd.f32 %v1886_v10, %v5428_v5 }
 0x2be   :  { %3867 = vmatmul.msk.bf16.gmra.mxu1 %vm1341_vm2, %v5232_v3  ;;  %v3955_v3 = vor.u32 %v4297_v36, %v3952_v50  ;;  %v1998_v50 = vpop.f32.mrf.mxu0 }
 0x2c0   :  { %2583 = vmatpush.bf16.msra.mxu2 %v3955_v3 }
 0x2c3   :  { %v1774_v24 = vpop.f32.mrf.mxu1 }
 0x2c4   :  { %v5558_v59 = vadd.f32 %v1774_v24, %v5404_v40  ;;  %v1888_v0 = vpop.f32.mrf.mxu3  ;;  %v3942_v24 = vld [vmem:[%s6003_s5 + $0x60] sm:$0xf] }
 0x2c5   :  { %v5561_v34 = vadd.f32 %v1888_v0, %v5439_v43  ;;  %v2109_v0 = vpop.f32.mrf.mxu2 }
 0x2c9   :  { %3912 = vmatmul.msk.bf16.gmra.mxu3 %vm1341_vm2, %v5288_v56 }
 0x2cb   :  { %v1777_v5 = vpop.f32.mrf.mxu1 }
 0x2cc   :  { %v5572_v40 = vadd.f32 %v1777_v5, %v5415_v25  ;;  %v1891_v14 = vpop.f32.mrf.mxu3 }
 0x2cd   :  { %v5577_v43 = vadd.f32 %v1891_v14, %v5447_v23  ;;  %v2112_v14 = vpop.f32.mrf.mxu2 }
 0x2ce   :  { %3868 = vmatmul.msk.bf16.gmra.mxu1 %vm1341_vm2, %v5288_v56 }
 0x2d3   :  { %v1779_v63 = vpop.f32.mrf.mxu1 }
 0x2d4   :  { %v5586_v25 = vadd.f32 %v1779_v63, %v5423_v30  ;;  %v5588_v19 = vpop.f32.mrf.mxu3  ;;  %v2000_v63 = vpop.f32.mrf.mxu0 }
 0x2d9   :  { %3913 = vmatmul.msk.bf16.gmra.mxu3 %vm1341_vm2, %v5326_v33 }
 0x2db   :  { %v1782_v56 = vpop.f32.mrf.mxu1 }
 0x2dc   :  { %v5593_v23 = vadd.f32 %v1782_v56, %v5437_v31  ;;  %v1896_v52 = vpop.f32.mrf.mxu3  ;;  %v3944_v31 = vld [vmem:[%s6003_s5 + $0x68] sm:$0xf0]  ;;  %v2114_v56 = vpop.f32.mrf.mxu2 }
 0x2dd   :  { %v5598_v1 = vadd.f32 %v1896_v52, %v5465_v45  ;;  %v3947_v61 = vor.u32 %v4295_v15, %v3944_v31  ;;  %v2003_v31 = vpop.f32.mrf.mxu0 }
 0x2de   :  { %3869 = vmatmul.msk.bf16.gmra.mxu1 %vm1341_vm2, %v5326_v33 }
 0x2df   :  { %2584 = vmatpush.bf16.msra.mxu2 %v3947_v61  ;;  %v2034_v61 = vadd.f32 %v1995_v37, %v5496_v11  ;;  %v3934_v11 = vld [vmem:[%s6003_s5 + $0x50] sm:$0xf] }
 0x2e3   :  { %v1784_v20 = vpop.f32.mrf.mxu1 }
 0x2e4   :  { %v5601_v30 = vadd.f32 %v1784_v20, %v5445_v53  ;;  %v5603_v44 = vpop.f32.mrf.mxu3 }
 0x2e9   :  { %3914 = vmatmul.msk.bf16.gmra.mxu3 %vm1341_vm2, %v5349_v9 }
 0x2eb   :  { %v1787_v33 = vpop.f32.mrf.mxu1 }
 0x2ec   :  { %v5614_v45 = vadd.f32 %v1787_v33, %v5455_v6  ;;  %v1901_v53 = vpop.f32.mrf.mxu3  ;;  %v4296_v6 = vld [vmem:[%s6003_s5 + $0x64] sm:$0xf0] }
 0x2ed   :  { %v5619_v17 = vadd.f32 %v1901_v53, %v5483_v7 }
 0x2ee   :  { %3870 = vmatmul.msk.bf16.gmra.mxu1 %vm1341_vm2, %v5349_v9  ;;  %v3943_v9 = vor.u32 %v4296_v6, %v3942_v24  ;;  %v2117_v24 = vpop.f32.mrf.mxu2 }
 0x2f0   :  { %2570 = vmatpush.bf16.msra.mxu0 %v3943_v9  ;;  %v2148_v9 = vadd.f32 %v2109_v0, %v5503_v62 }
 0x2f3   :  { %v1789_v48 = vpop.f32.mrf.mxu1 }
 0x2f4   :  { %v5622_v10 = vadd.f32 %v1789_v48, %v5463_v12  ;;  %v5630_v36 = vpop.f32.mrf.mxu3 }
 0x2f9   :  { %3915 = vmatmul.msk.bf16.gmra.mxu3 %vm1341_vm2, %v5370_v47 }
 0x2fb   :  { %v1792_v7 = vpop.f32.mrf.mxu1 }
 0x2fc   :  { %v5635_v12 = vadd.f32 %v1792_v7, %v5473_v58  ;;  %v1906_v3 = vpop.f32.mrf.mxu3  ;;  %v5650_v58 = vld [vmem:[%s6002_s4] ss:$0 sm:$0xff] }
 0x2fd   :  { %v5640_v5 = vadd.f32 %v1906_v3, %v5505_v32 }
 0x2fe   :  { %3871 = vmatmul.msk.bf16.gmra.mxu1 %vm1341_vm2, %v5370_v47 }
 0x303   :  { %v1794_v22 = vpop.f32.mrf.mxu1 }
 0x304   :  { %v5643_v41 = vadd.f32 %v1794_v22, %v5481_v38  ;;  %v5645_v51 = vpop.f32.mrf.mxu3  ;;  %v4294_v22 = vld [vmem:[%s6003_s5 + $0x54] sm:$0xf0] }
 0x30b   :  { %v2229_v52 = vpop.f32.mrf.mxu1 }
 0x30c   :  { %v2269_v47 = vadd.f32 %v2229_v52, %v5521_v8  ;;  %v2343_v20 = vpop.f32.mrf.mxu3  ;;  %v4293_v8 = vld [vmem:[%s6003_s5 + $0x54] sm:$0xf]  ;;  %v3935_v52 = vor.u32 %v4294_v22, %v3934_v11 }
 0x30d   :  { %v2383_v15 = vadd.f32 %v2343_v20, %v5529_v60  ;;  %v3936_v60 = vld [vmem:[%s6003_s5 + $0x58] sm:$0xf0]  ;;  %v2035_v20 = vadd.f32 %v1998_v50, %v5512_v26 }
 0x30e   :  { %v2403_v32 = vadd.f32 %v5650_v58, %v2269_v47  ;;  %v3939_v3 = vor.u32 %v4293_v8, %v3936_v60  ;;  %2571 = vmatpush.bf16.msra.mxu0 %v3935_v52  ;;  %v2119_v8 = vpop.f32.mrf.mxu2 }
 0x30f   :  { %v2435_v38 = vadd.f32 %v5650_v58, %v2383_v15 }
 0x310   :  { %v2419_v33 = vmax.f32 %v2403_v32, 0.0  ;;  %2585 = vmatpush.bf16.msra.mxu2 %v3939_v3  ;;  %v2005_v32 = vpop.f32.mrf.mxu0 }
 0x311   :  { %v2451_v53 = vmax.f32 %v2435_v38, 0.0 }
 0x313   :  { %v2231_v48 = vpop.f32.mrf.mxu1  ;;  %v2467_v7 = vmax.f32 %v2419_v33, %v2451_v53  ;;  %v2149_v53 = vadd.f32 %v2112_v14, %v5517_v21 }
 0x314   :  { %v2270_v6 = vadd.f32 %v2231_v48, %v2034_v61  ;;  %v2345_v37 = vpop.f32.mrf.mxu3 }
 0x315   :  { %v2384_v0 = vadd.f32 %v2345_v37, %v2148_v9  ;;  %v2036_v37 = vadd.f32 %v2000_v63, %v5524_v42 }
 0x316   :  { %v2404_v62 = vadd.f32 %v5650_v58, %v2270_v6 }
 0x317   :  { %v2436_v47 = vadd.f32 %v5650_v58, %v2384_v0 }
 0x318   :  { %v2420_v15 = vmax.f32 %v2404_v62, 0.0  ;;  %v2150_v62 = vadd.f32 %v2114_v56, %v5527_v28  ;;  %v2008_v0 = vpop.f32.mrf.mxu0 }
 0x319   :  { %v2452_v38 = vmax.f32 %v2436_v47, 0.0 }
 0x31b   :  { %v2234_v61 = vpop.f32.mrf.mxu1  ;;  %v2468_v48 = vmax.f32 %v2420_v15, %v2452_v38  ;;  %v2122_v15 = vpop.f32.mrf.mxu2 }
 0x31c   :  { %v2271_v33 = vadd.f32 %v2234_v61, %v2035_v20  ;;  %v2348_v60 = vpop.f32.mrf.mxu3  ;;  %v2037_v61 = vadd.f32 %v2003_v31, %v5534_v57  ;;  %v4291_v57 = vld [vmem:[%s6003_s5 + $0x44] sm:$0xf]  ;;  %v3926_v31 = vld [vmem:[%s6003_s5 + $0x40] sm:$0xf] }
 0x31d   :  { %v2385_v9 = vadd.f32 %v2348_v60, %v2149_v53  ;;  %v2151_v60 = vadd.f32 %v2117_v24, %v5539_v18  ;;  %v3928_v18 = vld [vmem:[%s6003_s5 + $0x48] sm:$0xf0]  ;;  %v2038_v24 = vadd.f32 %v2005_v32, %v5542_v16  ;;  %v3984_v32 = vld [vmem:[%s6003_s5 + $0x30] sm:$0xf] }
 0x31e   :  { %v2405_v6 = vadd.f32 %v5650_v58, %v2271_v33 }
 0x31f   :  { %v2437_v11 = vadd.f32 %v5650_v58, %v2385_v9 }
 0x320   :  { %v2421_v3 = vmax.f32 %v2405_v6, 0.0  ;;  %v5682_v9 = vpop.f32.mrf.mxu0 }
 0x321   :  { %v2453_v22 = vmax.f32 %v2437_v11, 0.0 }
 0x323   :  { %v2236_v26 = vpop.f32.mrf.mxu1  ;;  %v2469_v52 = vmax.f32 %v2421_v3, %v2453_v22 }
 0x324   :  { %v2272_v50 = vadd.f32 %v2236_v26, %v2036_v37  ;;  %v2350_v47 = vpop.f32.mrf.mxu3 }
 0x325   :  { %v2483_v21 = vmax.f32 %v2467_v7, %v2469_v52  ;;  %v2386_v20 = vadd.f32 %v2350_v47, %v2150_v62  ;;  %v4292_v62 = vld [vmem:[%s6003_s5 + $0x44] sm:$0xf0] }
 0x326   :  { %v2406_v14 = vadd.f32 %v5650_v58, %v2272_v50  ;;  %v3931_v50 = vor.u32 %v4291_v57, %v3928_v18  ;;  %v3978_v18 = vld [vmem:[%s6003_s5 + $0x28] sm:$0xf0] }
 0x327   :  { %v2438_v38 = vadd.f32 %v5650_v58, %v2386_v20  ;;  %v2491_v28 = vpack.c.bf16 %v2483_v21, %v2483_v21  ;;  %v3927_v20 = vor.u32 %v4292_v62, %v3926_v31 }
 0x328   :  { %v2422_v33 = vmax.f32 %v2406_v14, 0.0  ;;  %2586 = vmatpush.bf16.msra.mxu2 %v3931_v50 }
 0x329   :  { %v2454_v42 = vmax.f32 %v2438_v38, 0.0  ;;  %v2595_v26 = vunpack.c.l.b16 %v2491_v28  ;;  %2572 = vmatpush.bf16.msra.mxu0 %v3927_v20 }
 0x32b   :  { %v2239_v63 = vpop.f32.mrf.mxu1  ;;  %v2470_v6 = vmax.f32 %v2422_v33, %v2454_v42  ;;  %v4290_v42 = vld [vmem:[%s6003_s5 + $0x34] sm:$0xf0] }
 0x32c   :  { %v2273_v53 = vadd.f32 %v2239_v63, %v2037_v61  ;;  %v2353_v56 = vpop.f32.mrf.mxu3  ;;  %v2152_v61 = vadd.f32 %v2119_v8, %v5545_v54  ;;  %v4289_v63 = vld [vmem:[%s6003_s5 + $0x34] sm:$0xf]  ;;  %v3986_v54 = vld [vmem:[%s6003_s5 + $0x38] sm:$0xf0] }
 0x32d   :  { %v2484_v7 = vmax.f32 %v2468_v48, %v2470_v6  ;;  %v2387_v37 = vadd.f32 %v2353_v56, %v2151_v60  ;;  %v5696_v48 = vpop.f32.mrf.mxu2  ;;  %v3985_v60 = vor.u32 %v4290_v42, %v3984_v32  ;;  %v3989_v28 = vor.u32 %v4289_v63, %v3986_v54  ;;  %v2013_v56 = vpop.f32.mrf.mxu0  ;;  %v3960_v63 = vld [vmem:[%s6003_s5] sm:$0xf] }
 0x32e   :  { %v2407_v11 = vadd.f32 %v5650_v58, %v2273_v53  ;;  %v2040_v54 = vadd.f32 %v5682_v9, %v5558_v59 }
 0x32f   :  { %v2492_v3 = vpack.c.bf16 %v2484_v7, %v2484_v7  ;;  %v2439_v22 = vadd.f32 %v5650_v58, %v2387_v37  ;;  %2645 = vmatpush.bf16.msrb.mxu0 %v3985_v60  ;;  %2659 = vmatpush.bf16.msrb.mxu2 %v3989_v28  ;;  %v4288_v37 = vld [vmem:[%s6003_s5 + $0x24] sm:$0xf0]  ;;  %v4283_v60 = vld [vmem:[%s6003_s5 + $0x4] sm:$0xf] }
 0x330   :  { %v2423_v47 = vmax.f32 %v2407_v11, 0.0  ;;  %v3976_v11 = vld [vmem:[%s6003_s5 + $0x20] sm:$0xf] }
 0x331   :  { %v2596_v52 = vunpack.c.l.b16 %v2492_v3  ;;  %v2455_v21 = vmax.f32 %v2439_v22, 0.0  ;;  %v4287_v3 = vld [vmem:[%s6003_s5 + $0x24] sm:$0xf]  ;;  %v2039_v22 = vadd.f32 %v2008_v0, %v5550_v4  ;;  %v3977_v57 = vor.u32 %v4288_v37, %v3976_v11  ;;  %v3968_v4 = vld [vmem:[%s6003_s5 + $0x10] sm:$0xf] }
 0x332   :  { %v3981_v50 = vor.u32 %v4287_v3, %v3978_v18  ;;  %v4286_v0 = vld [vmem:[%s6003_s5 + $0x14] sm:$0xf0] }
 0x333   :  { %v2241_v14 = vpop.f32.mrf.mxu1  ;;  %v5702_v33 = vpack.c.b16 %v2596_v52, %v2595_v26  ;;  %v2471_v16 = vmax.f32 %v2423_v47, %v2455_v21  ;;  %2646 = vmatpush.bf16.msrb.mxu0 %v3977_v57  ;;  %v2153_v47 = vadd.f32 %v2122_v15, %v5555_v13  ;;  %v3970_v13 = vld [vmem:[%s6003_s5 + $0x18] sm:$0xf0]  ;;  %v2154_v57 = vadd.f32 %v5696_v48, %v5561_v34 }
 0x334   :  { %v2274_v38 = vadd.f32 %v2241_v14, %v2038_v24  ;;  %v2355_v53 = vpop.f32.mrf.mxu3  ;;  %2660 = vmatpush.bf16.msrb.mxu2 %v3981_v50  ;;  %v4285_v14 = vld [vmem:[%s6003_s5 + $0x14] sm:$0xf] }
 0x335   :  { %v2388_v6 = vadd.f32 %v2355_v53, %v2152_v61  ;;  %v2127_v62 = vpop.f32.mrf.mxu2  ;;  %v3973_v32 = vor.u32 %v4285_v14, %v3970_v13  ;;  %v4284_v53 = vld [vmem:[%s6003_s5 + $0x4] sm:$0xf0]  ;;  %v2015_v28 = vpop.f32.mrf.mxu0 }
 0x336   :  { %v2408_v8 = vadd.f32 %v5650_v58, %v2274_v38  ;;  %v3969_v38 = vor.u32 %v4286_v0, %v3968_v4 }
 0x337   :  { %v2440_v7 = vadd.f32 %v5650_v58, %v2388_v6  ;;  %v3962_v6 = vld [vmem:[%s6003_s5 + $0x8] sm:$0xf0] }
 0x338   :  { %v2424_v31 = vmax.f32 %v2408_v8, 0.0  ;;  %2647 = vmatpush.bf16.msrb.mxu0 %v3969_v38  ;;  %2661 = vmatpush.bf16.msrb.mxu2 %v3973_v32  ;;  %v3961_v8 = vor.u32 %v4284_v53, %v3960_v63  ;;  %v3965_v3 = vor.u32 %v4283_v60, %v3962_v6  ;;  %v1674_v32 = vadd.f32 %v5457_v2, %v5449_v35  ;;  %v4028_v35 = vld [vmem:[%s6003_s5 + $0xb8] sm:$0xf0] }
 0x339   :  { %v2456_v24 = vmax.f32 %v2440_v7, 0.0 }
 0x33a   :  { %v1920_v2 = vadd.f32 %v5588_v19, %v1674_v32  ;;  %v4303_v19 = vld [vmem:[%s6003_s5 + $0xa4] sm:$0xf] }
 0x33b   :  { %v2244_v26 = vpop.f32.mrf.mxu1  ;;  %v2472_v21 = vmax.f32 %v2424_v31, %v2456_v24 }
 0x33c   :  { %v2275_v52 = vadd.f32 %v2244_v26, %v2039_v22  ;;  %v2358_v20 = vpop.f32.mrf.mxu3  ;;  %2648 = vmatpush.bf16.msrb.mxu0 %v3961_v8  ;;  %2662 = vmatpush.bf16.msrb.mxu2 %v3965_v3  ;;  %v4018_v3 = vld [vmem:[%s6003_s5 + $0xa0] sm:$0xf] }
 0x33d   :  { %v2389_v61 = vadd.f32 %v2358_v20, %v2153_v47  ;;  %v2129_v31 = vpop.f32.mrf.mxu2  ;;  %v2155_v20 = vadd.f32 %v2127_v62, %v5577_v43  ;;  %v2018_v38 = vpop.f32.mrf.mxu0  ;;  %v4306_v43 = vld [vmem:[%s6003_s5 + $0xb4] sm:$0xf0]  ;;  %v4305_v62 = vld [vmem:[%s6003_s5 + $0xb4] sm:$0xf] }
 0x33e   :  { %v2409_v15 = vadd.f32 %v5650_v58, %v2275_v52  ;;  %v2041_v52 = vadd.f32 %v2013_v56, %v5572_v40  ;;  %v4026_v40 = vld [vmem:[%s6003_s5 + $0xb0] sm:$0xf] }
 0x33f   :  { %v2441_v42 = vadd.f32 %v5650_v58, %v2389_v61 }
 0x340   :  { %v2425_v7 = vmax.f32 %v2409_v15, 0.0 }
 0x341   :  { %v2457_v11 = vmax.f32 %v2441_v42, 0.0 }
 0x343   :  { %v2246_v37 = vpop.f32.mrf.mxu1  ;;  %v2473_v18 = vmax.f32 %v2425_v7, %v2457_v11  ;;  %v4027_v11 = vor.u32 %v4306_v43, %v4026_v40  ;;  %v4002_v40 = vld [vmem:[%s6003_s5 + $0x80] sm:$0xf]  ;;  %v4004_v43 = vld [vmem:[%s6003_s5 + $0x88] sm:$0xf0] }
 0x344   :  { %v2276_v22 = vadd.f32 %v2246_v37, %v2040_v54  ;;  %v2360_v24 = vpop.f32.mrf.mxu3  ;;  %v4031_v37 = vor.u32 %v4305_v62, %v4028_v35 }
 0x345   :  { %v2485_v59 = vmax.f32 %v2471_v16, %v2473_v18  ;;  %v2390_v26 = vadd.f32 %v2360_v24, %v2154_v57  ;;  %v2132_v42 = vpop.f32.mrf.mxu2 }
 0x346   :  { %v2410_v9 = vadd.f32 %v5650_v58, %v2276_v22  ;;  %v2156_v22 = vadd.f32 %v2129_v31, %v1920_v2 }
 0x347   :  { %v2442_v50 = vadd.f32 %v5650_v58, %v2390_v26  ;;  %v2493_v13 = vpack.c.bf16 %v2485_v59, %v2485_v59  ;;  %v2020_v59 = vpop.f32.mrf.mxu0 }
 0x348   :  { %v2426_v47 = vmax.f32 %v2410_v9, 0.0 }
 0x349   :  { %v2458_v4 = vmax.f32 %v2442_v50, 0.0  ;;  %v2518_v53 = vunpack.c.l.b16 %v2493_v13 }
 0x34b   :  { %v2249_v0 = vpop.f32.mrf.mxu1  ;;  %v2474_v34 = vmax.f32 %v2426_v47, %v2458_v4  ;;  %v4302_v4 = vld [vmem:[%s6003_s5 + $0x94] sm:$0xf0] }
 0x34c   :  { %v2277_v14 = vadd.f32 %v2249_v0, %v2041_v52  ;;  %v2363_v48 = vpop.f32.mrf.mxu3  ;;  %v4010_v52 = vld [vmem:[%s6003_s5 + $0x90] sm:$0xf]  ;;  %v4301_v0 = vld [vmem:[%s6003_s5 + $0x94] sm:$0xf] }
 0x34d   :  { %v2486_v15 = vmax.f32 %v2472_v21, %v2474_v34  ;;  %v2391_v61 = vadd.f32 %v2363_v48, %v2155_v20  ;;  %v2042_v21 = vadd.f32 %v2015_v28, %v5586_v25  ;;  %v4304_v25 = vld [vmem:[%s6003_s5 + $0xa4] sm:$0xf0]  ;;  %v4020_v28 = vld [vmem:[%s6003_s5 + $0xa8] sm:$0xf0]  ;;  %v2043_v20 = vadd.f32 %v2018_v38, %v5593_v23  ;;  %v2134_v34 = vpop.f32.mrf.mxu2  ;;  %v4299_v38 = vld [vmem:[%s6003_s5 + $0x84] sm:$0xf] }
 0x34e   :  { %v2411_v16 = vadd.f32 %v5650_v58, %v2277_v14  ;;  %v4019_v26 = vor.u32 %v4304_v25, %v4018_v3  ;;  %v4023_v50 = vor.u32 %v4303_v19, %v4020_v28  ;;  %v4012_v14 = vld [vmem:[%s6003_s5 + $0x98] sm:$0xf0]  ;;  %v4300_v23 = vld [vmem:[%s6003_s5 + $0x84] sm:$0xf0]  ;;  %v4314_v28 = vld [vmem:[%s6003_s5 + $0xf4] sm:$0xf0] }
 0x34f   :  { %v2494_v56 = vpack.c.bf16 %v2486_v15, %v2486_v15  ;;  %v2443_v63 = vadd.f32 %v5650_v58, %v2391_v61  ;;  %v4011_v61 = vor.u32 %v4302_v4, %v4010_v52  ;;  %v4015_v32 = vor.u32 %v4301_v0, %v4012_v14 }
 0x350   :  { %v2427_v54 = vmax.f32 %v2411_v16, 0.0 }
 0x351   :  { %v2519_v60 = vunpack.c.l.b16 %v2494_v56  ;;  %v2459_v8 = vmax.f32 %v2443_v63, 0.0  ;;  %v2157_v56 = vadd.f32 %v2132_v42, %v5598_v1  ;;  %v4003_v1 = vor.u32 %v4300_v23, %v4002_v40 }
 0x352   :  { %v4007_v42 = vor.u32 %v4299_v38, %v4004_v43  ;;  %v4310_v38 = vld [vmem:[%s6003_s5 + $0xd4] sm:$0xf0] }
 0x353   :  { %v2251_v6 = vpop.f32.mrf.mxu1  ;;  %v2520_v57 = vpack.c.b16 %v2519_v60, %v2518_v53  ;;  %v5787_v18 = vmax.f32 %v2427_v54, %v2459_v8  ;;  %v2023_v53 = vpop.f32.mrf.mxu0  ;;  %v2044_v54 = vadd.f32 %v2020_v59, %v5601_v30  ;;  %v4068_v30 = vld [vmem:[%s6003_s5 + $0xf0] sm:$0xf] }
 0x354   :  { %v2278_v7 = vadd.f32 %v2251_v6, %v2042_v21  ;;  %v2365_v24 = vpop.f32.mrf.mxu3  ;;  %v1679_v21 = vadd.f32 %v5475_v55, %v5467_v46  ;;  %v4313_v46 = vld [vmem:[%s6003_s5 + $0xf4] sm:$0xf]  ;;  %v4070_v55 = vld [vmem:[%s6003_s5 + $0xf8] sm:$0xf0]  ;;  %v2045_v52 = vadd.f32 %v2023_v53, %v5614_v45  ;;  %v4046_v53 = vld [vmem:[%s6003_s5 + $0xc8] sm:$0xf0] }
 0x355   :  { %v2392_v31 = vadd.f32 %v2365_v24, %v2156_v22  ;;  %3956 = vmatmul.msk.bf16.vlgmr.msra.gmra.mxu0 %vm2561_vm3, %v2520_v57  ;;  %3957 = vmatmul.msk.bf16.vlgmr.msra.gmra.mxu2 %vm2561_vm3, %v2520_v57  ;;  %v4073_v19 = vor.u32 %v4313_v46, %v4070_v55  ;;  %v4309_v45 = vld [vmem:[%s6003_s5 + $0xd4] sm:$0xf] }
 0x356   :  { %v2412_v9 = vadd.f32 %v5650_v58, %v2278_v7  ;;  %2730 = vmatpush.bf16.msra.mxu0 %v4027_v11  ;;  %2744 = vmatpush.bf16.msra.mxu2 %v4031_v37  ;;  %v1922_v8 = vadd.f32 %v5603_v44, %v1679_v21  ;;  %v2137_v37 = vpop.f32.mrf.mxu2  ;;  %v4307_v21 = vld [vmem:[%s6003_s5 + $0xc4] sm:$0xf] }
 0x357   :  { %v2444_v47 = vadd.f32 %v5650_v58, %v2392_v31 }
 0x358   :  { %v2428_v48 = vmax.f32 %v2412_v9, 0.0  ;;  %v2158_v22 = vadd.f32 %v2134_v34, %v1922_v8  ;;  %v4069_v9 = vor.u32 %v4314_v28, %v4068_v30  ;;  %v4308_v8 = vld [vmem:[%s6003_s5 + $0xc4] sm:$0xf0] }
 0x359   :  { %v2460_v13 = vmax.f32 %v2444_v47, 0.0  ;;  %v4312_v47 = vld [vmem:[%s6003_s5 + $0xe4] sm:$0xf0] }
 0x35a   :  { %2731 = vmatpush.bf16.msra.mxu0 %v4019_v26  ;;  %2745 = vmatpush.bf16.msra.mxu2 %v4023_v50  ;;  %v4311_v26 = vld [vmem:[%s6003_s5 + $0xe4] sm:$0xf]  ;;  %v4060_v50 = vld [vmem:[%s6003_s5 + $0xe0] sm:$0xf] }
 0x35b   :  { %v2254_v15 = vpop.f32.mrf.mxu1  ;;  %v5819_v63 = vmax.f32 %v2428_v48, %v2460_v13  ;;  %v2025_v4 = vpop.f32.mrf.mxu0  ;;  %v4061_v34 = vor.u32 %v4312_v47, %v4060_v50  ;;  %v2159_v13 = vadd.f32 %v2137_v37, %v5619_v17 }
 0x35c   :  { %v2279_v16 = vadd.f32 %v2254_v15, %v2043_v20  ;;  %v2368_v62 = vpop.f32.mrf.mxu3 }
 0x35d   :  { %v2393_v2 = vadd.f32 %v2368_v62, %v2157_v56 }
 0x35e   :  { %v2413_v35 = vadd.f32 %v5650_v58, %v2279_v16  ;;  %2732 = vmatpush.bf16.msra.mxu0 %v4011_v61  ;;  %2746 = vmatpush.bf16.msra.mxu2 %v4015_v32  ;;  %v4054_v16 = vld [vmem:[%s6003_s5 + $0xd8] sm:$0xf0]  ;;  %v4052_v61 = vld [vmem:[%s6003_s5 + $0xd0] sm:$0xf]  ;;  %v2139_v32 = vpop.f32.mrf.mxu2 }
 0x35f   :  { %v2445_v60 = vadd.f32 %v5650_v58, %v2393_v2  ;;  %v4057_v17 = vor.u32 %v4309_v45, %v4054_v16  ;;  %v1684_v2 = vadd.f32 %v5493_v27, %v5485_v49  ;;  %v2046_v49 = vadd.f32 %v2025_v4, %v5622_v10 }
 0x360   :  { %v2429_v6 = vmax.f32 %v2413_v35, 0.0  ;;  %v4053_v35 = vor.u32 %v4310_v38, %v4052_v61  ;;  %v1689_v4 = vadd.f32 %v5519_v39, %v5507_v29 }
 0x361   :  { %v2461_v7 = vmax.f32 %v2445_v60, 0.0  ;;  %v1924_v60 = vadd.f32 %v5630_v36, %v1684_v2 }
 0x362   :  { %2733 = vmatpush.bf16.msra.mxu0 %v4003_v1  ;;  %2747 = vmatpush.bf16.msra.mxu2 %v4007_v42 }
 0x363   :  { %v2256_v11 = vpop.f32.mrf.mxu1  ;;  %v2477_v57 = vmax.f32 %v2429_v6, %v2461_v7  ;;  %v2028_v46 = vpop.f32.mrf.mxu0 }
 0x364   :  { %v2280_v3 = vadd.f32 %v2256_v11, %v2044_v54  ;;  %v2370_v25 = vpop.f32.mrf.mxu3  ;;  %v4049_v54 = vor.u32 %v4307_v21, %v4046_v53  ;;  %v2047_v28 = vadd.f32 %v2028_v46, %v5635_v12  ;;  %v4321_v21 = vld [vmem:[%s6005_s7 + $0x30] sm:$0xff] }
 0x365   :  { %v2487_v24 = vmax.f32 %v5787_v18, %v2477_v57  ;;  %v2394_v59 = vadd.f32 %v2370_v25, %v2158_v22  ;;  %3990 = vmatmul.msk.bf16.vlgmr.msrb.gmra.mxu0 %vm2561_vm3, %v5702_v33  ;;  %3991 = vmatmul.msk.bf16.vlgmr.msrb.gmra.mxu2 %vm2561_vm3, %v5702_v33  ;;  %v4062_v18 = vld [vmem:[%s6003_s5 + $0xe8] sm:$0xf0]  ;;  %v2160_v57 = vadd.f32 %v2139_v32, %v1924_v60  ;;  %v4329_v53 = vld [vmem:[%s6005_s7 + $0x70] sm:$0xff] }
 0x366   :  { %v2414_v44 = vadd.f32 %v5650_v58, %v2280_v3  ;;  %2833 = vmatpush.bf16.msrb.mxu2 %v4073_v19  ;;  %2819 = vmatpush.bf16.msrb.mxu0 %v4069_v9  ;;  %v4065_v33 = vor.u32 %v4311_v26, %v4062_v18  ;;  %v2142_v25 = vpop.f32.mrf.mxu2  ;;  %v4325_v46 = vld [vmem:[%s6005_s7 + $0x50] sm:$0xff] }
 0x367   :  { %v2446_v31 = vadd.f32 %v5650_v58, %v2394_v59  ;;  %v2495_v40 = vpack.c.bf16 %v2487_v24, %v2487_v24  ;;  %v2161_v26 = vadd.f32 %v2142_v25, %v5640_v5 }
 0x368   :  { %v2430_v0 = vmax.f32 %v2414_v44, 0.0 }
 0x369   :  { %v2462_v14 = vmax.f32 %v2446_v31, 0.0  ;;  %v2680_v27 = vunpack.c.l.b16 %v2495_v40 }
 0x36a   :  { %2834 = vmatpush.bf16.msrb.mxu2 %v4065_v33  ;;  %2820 = vmatpush.bf16.msrb.mxu0 %v4061_v34 }
 0x36b   :  { %v2259_v20 = vpop.f32.mrf.mxu1  ;;  %v2478_v15 = vmax.f32 %v2430_v0, %v2462_v14  ;;  %v2030_v33 = vpop.f32.mrf.mxu0 }
 0x36c   :  { %v2281_v48 = vadd.f32 %v2259_v20, %v2045_v52  ;;  %v2373_v23 = vpop.f32.mrf.mxu3  ;;  %v2048_v14 = vadd.f32 %v2030_v33, %v5643_v41  ;;  %v1926_v20 = vadd.f32 %v5645_v51, %v1689_v4 }
 0x36d   :  { %v2488_v43 = vmax.f32 %v5819_v63, %v2478_v15  ;;  %v2395_v62 = vadd.f32 %v2373_v23, %v2159_v13  ;;  %v4044_v63 = vld [vmem:[%s6003_s5 + $0xc0] sm:$0xf] }
 0x36e   :  { %v2415_v56 = vadd.f32 %v5650_v58, %v2281_v48  ;;  %2835 = vmatpush.bf16.msrb.mxu2 %v4057_v17  ;;  %2821 = vmatpush.bf16.msrb.mxu0 %v4053_v35  ;;  %v4045_v3 = vor.u32 %v4308_v8, %v4044_v63  ;;  %v2144_v12 = vpop.f32.mrf.mxu2  ;;  %v4320_v63 = vld [vmem:[%s6005_s7 + $0x28] sm:$0xff] }
 0x36f   :  { %v2496_v1 = vpack.c.bf16 %v2488_v43, %v2488_v43  ;;  %v2447_v42 = vadd.f32 %v5650_v58, %v2395_v62  ;;  %v2162_v15 = vadd.f32 %v2144_v12, %v1926_v20 }
 0x370   :  { %v2431_v7 = vmax.f32 %v2415_v56, 0.0 }
 0x371   :  { %v2681_v6 = vunpack.c.l.b16 %v2496_v1  ;;  %v2463_v11 = vmax.f32 %v2447_v42, 0.0  ;;  %v4322_v1 = vld [vmem:[%s6005_s7 + $0x38] sm:$0xff] }
 0x372   :  { %2836 = vmatpush.bf16.msrb.mxu2 %v4049_v54  ;;  %2822 = vmatpush.bf16.msrb.mxu0 %v4045_v3  ;;  %v4328_v54 = vld [vmem:[%s6005_s7 + $0x68] sm:$0xff]  ;;  %v4326_v3 = vld [vmem:[%s6005_s7 + $0x58] sm:$0xff] }
 0x373   :  { %v2261_v37 = vpop.f32.mrf.mxu1  ;;  %v2682_v55 = vpack.c.b16 %v2681_v6, %v2680_v27  ;;  %v2479_v30 = vmax.f32 %v2431_v7, %v2463_v11  ;;  %v4318_v6 = vld [vmem:[%s6005_s7 + $0x18] sm:$0xff]  ;;  %v4327_v7 = vld [vmem:[%s6005_s7 + $0x60] sm:$0xff] }
 0x374   :  { %v2282_v22 = vadd.f32 %v2261_v37, %v2046_v49  ;;  %v2375_v36 = vpop.f32.mrf.mxu3  ;;  %v4319_v49 = vld [vmem:[%s6005_s7 + $0x20] sm:$0xff]  ;;  %v4317_v37 = vld [vmem:[%s6005_s7 + $0x10] sm:$0xff] }
 0x375   :  { %v2396_v44 = vadd.f32 %v2375_v36, %v2160_v57  ;;  %4032 = vmatmul.msk.bf16.vlgmr.msra.gmra.mxu0 %vm2561_vm3, %v2682_v55  ;;  %4033 = vmatmul.msk.bf16.vlgmr.msra.gmra.mxu2 %vm2561_vm3, %v2682_v55  ;;  %v4315_v55 = vld [vmem:[%s6005_s7] sm:$0xff] }
 0x376   :  { %v2416_v10 = vadd.f32 %v5650_v58, %v2282_v22  ;;  %2995 = vmatpush.bf16.msra.mxu0 %v4322_v1  ;;  %v4316_v22 = vld [vmem:[%s6005_s7 + $0x8] sm:$0xff]  ;;  %v4323_v36 = vld [vmem:[%s6005_s7 + $0x40] sm:$0xff] }
 0x377   :  { %v2448_v19 = vadd.f32 %v5650_v58, %v2396_v44 }
 0x378   :  { %v2432_v24 = vmax.f32 %v2416_v10, 0.0  ;;  %v4324_v10 = vld [vmem:[%s6005_s7 + $0x48] sm:$0xff] }
 0x379   :  { %v2464_v59 = vmax.f32 %v2448_v19, 0.0 }
 0x37a   :  { %2996 = vmatpush.bf16.msra.mxu0 %v4321_v21 }
 0x37b   :  { %v2264_v9 = vpop.f32.mrf.mxu1  ;;  %v2480_v18 = vmax.f32 %v2432_v24, %v2464_v59  ;;  %v2847_v59 = vld [vmem:[%s6006_s6] sm:$0x3] }
 0x37c   :  { %v2283_v31 = vadd.f32 %v2264_v9, %v2047_v28  ;;  %v2378_v52 = vpop.f32.mrf.mxu3 }
 0x37d   :  { %v2397_v47 = vadd.f32 %v2378_v52, %v2161_v26 }
 0x37e   :  { %v2417_v50 = vadd.f32 %v5650_v58, %v2283_v31  ;;  %2997 = vmatpush.bf16.msra.mxu0 %v4320_v63 }
 0x37f   :  { %v2449_v0 = vadd.f32 %v5650_v58, %v2397_v47 }
 0x380   :  { %v2433_v34 = vmax.f32 %v2417_v50, 0.0 }
 0x381   :  { %v2465_v48 = vmax.f32 %v2449_v0, 0.0 }
 0x382   :  { %2998 = vmatpush.bf16.msra.mxu0 %v4319_v49  ;;  %v4338_v49 = vld [vmem:[%s6007_s10] ss:$0 sm:$0xff] }
 0x383   :  { %v2266_v13 = vpop.f32.mrf.mxu1  ;;  %v2481_v45 = vmax.f32 %v2433_v34, %v2465_v48  ;;  %v2850_v34 = vperm.slane %v2847_v59, 1 }
 0x384   :  { %v2284_v5 = vadd.f32 %v2266_v13, %v2048_v14  ;;  %v2380_v61 = vpop.f32.mrf.mxu3 }
 0x385   :  { %v2489_v32 = vmax.f32 %v2479_v30, %v2481_v45  ;;  %v2398_v40 = vadd.f32 %v2380_v61, %v2162_v15 }
 0x386   :  { %v2418_v16 = vadd.f32 %v5650_v58, %v2284_v5  ;;  %2999 = vmatpush.bf16.msra.mxu0 %v4318_v6 }
 0x387   :  { %v2450_v29 = vadd.f32 %v5650_v58, %v2398_v40  ;;  %v2497_v41 = vpack.c.bf16 %v2489_v32, %v2489_v32  ;;  %v4330_v58 = vld [vmem:[%s6005_s7 + $0x78] sm:$0xff] }
 0x388   :  { %v2434_v39 = vmax.f32 %v2418_v16, 0.0  ;;  %3009 = vmatpush.bf16.msra.mxu2 %v4330_v58 }
 0x389   :  { %v2466_v56 = vmax.f32 %v2450_v29, 0.0  ;;  %v2769_v51 = vunpack.c.l.b16 %v2497_v41  ;;  %v4333_v41 = vld [vmem:[%s6008_s9 + $0x10] sm:$0xff] }
 0x38a   :  { %3000 = vmatpush.bf16.msra.mxu0 %v4317_v37 }
 0x38b   :  { %v2482_v23 = vmax.f32 %v2434_v39, %v2466_v56 }
 0x38c   :  { %3010 = vmatpush.bf16.msra.mxu2 %v4329_v53 }
 0x38d   :  { %v2490_v17 = vmax.f32 %v2480_v18, %v2482_v23  ;;  %v2849_v18 = vperm.slane %v2847_v59, 0  ;;  %v4334_v23 = vld [vmem:[%s6008_s9 + $0x18] sm:$0xff] }
 0x38e   :  { %3001 = vmatpush.bf16.msra.mxu0 %v4316_v22 }
 0x38f   :  { %v2498_v38 = vpack.c.bf16 %v2490_v17, %v2490_v17  ;;  %v4332_v17 = vld [vmem:[%s6008_s9 + $0x8] sm:$0xff] }
 0x390   :  { %3011 = vmatpush.bf16.msra.mxu2 %v4328_v54 }
 0x391   :  { %v2770_v43 = vunpack.c.l.b16 %v2498_v38  ;;  %v4331_v38 = vld [vmem:[%s6008_s9] sm:$0xff] }
 0x392   :  { %3002 = vmatpush.bf16.msra.mxu0 %v4315_v55 }
 0x393   :  { %v2771_v62 = vpack.c.b16 %v2770_v43, %v2769_v51 }
 0x394   :  { %3012 = vmatpush.bf16.msra.mxu2 %v4327_v7 }
 0x395   :  { %4074 = vmatmul.msk.bf16.vlgmr.msrb.gmra.mxu0 %vm2561_vm3, %v2771_v62  ;;  %4075 = vmatmul.msk.bf16.vlgmr.msrb.gmra.mxu2 %vm2561_vm3, %v2771_v62  ;;  %v4337_v62 = vld [vmem:[%s6004_s8] ss:$0 sm:$0xff] }
 0x396   :  { %3069 = vmatpush.bf16.msrb.mxu0 %v4334_v23 }
 0x398   :  { %3013 = vmatpush.bf16.msra.mxu2 %v4326_v3 }
 0x39a   :  { %3070 = vmatpush.bf16.msrb.mxu0 %v4333_v41 }
 0x39c   :  { %3014 = vmatpush.bf16.msra.mxu2 %v4325_v46 }
 0x39e   :  { %3071 = vmatpush.bf16.msrb.mxu0 %v4332_v17 }
 0x3a0   :  { %3015 = vmatpush.bf16.msra.mxu2 %v4324_v10 }
 0x3a2   :  { %3072 = vmatpush.bf16.msrb.mxu0 %v4331_v38 }
 0x3a4   :  { %3016 = vmatpush.bf16.msra.mxu2 %v4323_v36 }
 0x3d2   :  { %v2574_v35 = vpop.f32.mrf.mxu0 }
 0x3d8   :  { %v2588_v2 = vpop.f32.mrf.mxu2 }
 0x3da   :  { %v2576_v42 = vpop.f32.mrf.mxu0 }
 0x3e0   :  { %v2590_v60 = vpop.f32.mrf.mxu2 }
 0x3e2   :  { %v2650_v27 = vpop.f32.mrf.mxu0 }
 0x3e3   :  { %v2651_v24 = vadd.f32 %v2650_v27, %v2574_v35 }
 0x3e8   :  { %v2664_v8 = vpop.f32.mrf.mxu2 }
 0x3e9   :  { %v2665_v52 = vadd.f32 %v2664_v8, %v2588_v2 }
 0x3ea   :  { %v2652_v11 = vpop.f32.mrf.mxu0 }
 0x3eb   :  { %v2653_v31 = vadd.f32 %v2652_v11, %v2576_v42 }
 0x3f0   :  { %v2666_v57 = vpop.f32.mrf.mxu2 }
 0x3f1   :  { %v2667_v12 = vadd.f32 %v2666_v57, %v2590_v60 }
 0x3f2   :  { %v2735_v30 = vpop.f32.mrf.mxu0 }
 0x3f3   :  { %v2754_v9 = vadd.f32 %v2735_v30, %v2651_v24 }
 0x3f8   :  { %v2749_v44 = vpop.f32.mrf.mxu2 }
 0x3f9   :  { %v2755_v4 = vadd.f32 %v2749_v44, %v2665_v52 }
 0x3fa   :  { %v2737_v25 = vpop.f32.mrf.mxu0 }
 0x3fb   :  { %v2756_v33 = vadd.f32 %v2737_v25, %v2653_v31 }
 0x400   :  { %v2751_v19 = vpop.f32.mrf.mxu2 }
 0x401   :  { %v2757_v13 = vadd.f32 %v2751_v19, %v2667_v12 }
 0x412   :  { %v2824_v28 = vpop.f32.mrf.mxu0 }
 0x413   :  { %v2843_v26 = vadd.f32 %v2824_v28, %v2754_v9 }
 0x415   :  { %v2853_v0 = vadd.f32 %v2849_v18, %v2843_v26 }
 0x417   :  { %v2857_v5 = vmax.f32 %v2853_v0, 0.0 }
 0x418   :  { %v2838_v50 = vpop.f32.mrf.mxu2 }
 0x419   :  { %v2844_v20 = vadd.f32 %v2838_v50, %v2755_v4 }
 0x41a   :  { %v2826_v47 = vpop.f32.mrf.mxu0 }
 0x41b   :  { %v2845_v14 = vadd.f32 %v2826_v47, %v2756_v33  ;;  %v2854_v16 = vadd.f32 %v2850_v34, %v2844_v20 }
 0x41d   :  { %v2855_v48 = vadd.f32 %v2849_v18, %v2845_v14  ;;  %v2858_v29 = vmax.f32 %v2854_v16, 0.0 }
 0x41f   :  { %v2859_v15 = vmax.f32 %v2855_v48, 0.0 }
 0x420   :  { %v2840_v45 = vpop.f32.mrf.mxu2 }
 0x421   :  { %v2861_v61 = vpack.c.bf16 %v2859_v15, %v2857_v5  ;;  %v2846_v32 = vadd.f32 %v2840_v45, %v2757_v13 }
 0x423   :  { %v2856_v40 = vadd.f32 %v2850_v34, %v2846_v32  ;;  %3003 = vmatmul.bf16.vlgmr.msra.gmra.mxu0 %v2861_v61 }
 0x425   :  { %v2860_v39 = vmax.f32 %v2856_v40, 0.0 }
 0x427   :  { %v2862_v56 = vpack.c.bf16 %v2860_v39, %v2858_v29 }
 0x429   :  { %3017 = vmatmul.bf16.vlgmr.msra.gmra.mxu2 %v2862_v56 }
 0x4a0   :  { %v3004_v51 = vpop.f32.mrf.mxu0 }
 0x4a1   :  { %v3005_v2 = vadd.f32 %v4337_v62, %v3004_v51 }
 0x4a8   :  { %v3006_v35 = vpop.f32.mrf.mxu0 }
 0x4a9   :  { %v3007_v1 = vadd.f32 %v4337_v62, %v3006_v35 }
 0x4ac   :  { %v3018_v43 = vpop.f32.mrf.mxu2 }
 0x4ad   :  { %v3019_v58 = vadd.f32 %v3018_v43, %v3005_v2 }
 0x4af   :  { %v3023_v53 = vmax.f32 %v3019_v58, 0.0 }
 0x4b4   :  { %v3020_v42 = vpop.f32.mrf.mxu2 }
 0x4b5   :  { %v3021_v21 = vadd.f32 %v3020_v42, %v3007_v1 }
 0x4b7   :  { %v3024_v63 = vmax.f32 %v3021_v21, 0.0 }
 0x4b9   :  { %v3025_v60 = vpack.c.bf16 %v3024_v63, %v3023_v53 }
 0x4bb   :  { %4156 = vmatmul.msk.bf16.vlgmr.msrb.gmra.mxu0 %vm2561_vm3, %v3025_v60 }
 0x538   :  { %v3074_v27 = vpop.f32.mrf.mxu0 }
 0x539   :  { %v3075_v54 = vadd.f32 %v4338_v49, %v3074_v27 }
 0x53b   :  { %v3080_v8 = vsel %vm3079_vm4, %v3075_v54, -inf }
 0x53c   :  { %3081 = vmax.xlane.f32.xlu0 %v3080_v8 }
 0x540   :  { %v3076_v6 = vpop.f32.mrf.mxu0 }
 0x541   :  { %v3077_v7 = vadd.f32 %v4338_v49, %v3076_v6 }
 0x543   :  { %v3083_v11 = vsel %vm3079_vm4, %v3077_v7, -inf }
 0x544   :  { %3084 = vmax.xlane.f32.xlu0 %v3083_v11 }
 0x5af   :  { %v3082_v37 = vpop.xlane.xlu0 %3081 }
 0x5b0   :  { %v3086_v3 = vsub.f32 %v3075_v54, %v3082_v37 }
 0x5b2   :  { %v3088_v22 = vmul.f32 1.442695, %v3086_v3 }
 0x5b4   :  { %4339 = vpow2.f32 %v3088_v22 }
 0x5b7   :  { %v3085_v57 = vpop.xlane.xlu0 %3084 }
 0x5b8   :  { %v3087_v46 = vsub.f32 %v3077_v7, %v3085_v57 }
 0x5ba   :  { %v4340_v55 = vpop.eup %4339  ;;  %v3090_v30 = vmul.f32 1.442695, %v3087_v46 }
 0x5bb   :  { %v3092_v10 = vsel %vm3079_vm4, %v4340_v55, 0.0 }
 0x5bc   :  { %4341 = vpow2.f32 %v3090_v30  ;;  %3093 = vadd.xlane.f32.xlu1 %v3092_v10 }
 0x5c2   :  { %v4342_v36 = vpop.eup %4341 }
 0x5c3   :  { %v3095_v44 = vsel %vm3079_vm4, %v4342_v36, 0.0 }
 0x5c4   :  { %3096 = vadd.xlane.f32.xlu1 %v3095_v44 }
 0x62f   :  { %v3094_v25 = vpop.xlane.xlu1 %3093 }
 0x630   :  { %4343 = vrcp.f32 %v3094_v25  ;;  %v3109_v9 = vand.u32 2147483648, %v3094_v25  ;;  %v3107_v26 = vand.u32 2147483647, %v3094_v25  ;;  %vm3103_vm6 = vweird.f32 %v3094_v25 }
 0x632   :  { %v3110_v52 = vor.u32 1.1754944e-38, %v3109_v9  ;;  %vm3108_vm8 = vcmp.eq.f32.partialorder %v3107_v26, 8.507059e+37 }
 0x636   :  { %v4344_v19 = vpop.eup %4343 }
 0x637   :  { %v3099_v28 = vmul.f32 %v4344_v19, %v3094_v25  ;;  %v3097_v24 = vpop.xlane.xlu1 %3096  ;;  %vm3104_vm5 = vweird.f32 %v4344_v19 }
 0x638   :  { %4345 = vrcp.f32 %v3097_v24  ;;  %vm3105_vm7 = vmor %vm3103_vm6, %vm3104_vm5  ;;  %v3124_v12 = vand.u32 2147483648, %v3097_v24  ;;  %v3122_v34 = vand.u32 2147483647, %v3097_v24  ;;  %vm3118_vm10 = vweird.f32 %v3097_v24 }
 0x639   :  { %v3100_v59 = vsub.f32 1.0, %v3099_v28 }
 0x63a   :  { %v3125_v13 = vor.u32 1.1754944e-38, %v3124_v12  ;;  %vm3123_vm12 = vcmp.eq.f32.partialorder %v3122_v34, 8.507059e+37 }
 0x63b   :  { %v3101_v31 = vmul.f32 %v4344_v19, %v3100_v59 }
 0x63d   :  { %v3102_v18 = vadd.f32 %v4344_v19, %v3101_v31 }
 0x63e   :  { %v4346_v50 = vpop.eup %4345 }
 0x63f   :  { %v3106_v33 = vsel %vm3105_vm7, %v4344_v19, %v3102_v18  ;;  %v3114_v47 = vmul.f32 %v4346_v50, %v3097_v24  ;;  %vm3119_vm9 = vweird.f32 %v4346_v50 }
 0x640   :  { %v3111_v4 = vsel %vm3108_vm8, %v3110_v52, %v3106_v33  ;;  %vm3120_vm11 = vmor %vm3118_vm10, %vm3119_vm9 }
 0x641   :  { %v3112_v0 = vmul.f32 %v4340_v55, %v3111_v4  ;;  %v3115_v14 = vsub.f32 1.0, %v3114_v47 }
 0x643   :  { %3128 = vst.msk [vmem:[%s6009_s11] sm:$0xff] %vm3079_vm4, %v3112_v0  ;;  %v3116_v20 = vmul.f32 %v4346_v50, %v3115_v14 }
 0x645   :  { %v3117_v48 = vadd.f32 %v4346_v50, %v3116_v20 }
 0x647   :  { %v3121_v5 = vsel %vm3120_vm11, %v4346_v50, %v3117_v48 }
 0x648   :  { %v3126_v15 = vsel %vm3123_vm12, %v3125_v13, %v3121_v5 }
 0x649   :  { %v3127_v45 = vmul.f32 %v4342_v36, %v3126_v15 }
 0x64b   :  { %3129 = vst.msk [vmem:[%s6009_s11 + $0x8] sm:$0xff] %vm3079_vm4, %v3127_v45 }

</bundles_post_ra>
